<compile_context>
chip_gen: v6e
topology: v6e:2x2x1
jax: 0.10.0
libtpu: 0.0.40
codegen_flags: <defaults>
</compile_context>

<pallas_src>
import functools
import math

import numpy as np
import jax
import jax.numpy as jnp
from jax.experimental import pallas as pl
from jax.experimental.pallas import tpu as pltpu

# --------------------------------------------------------------------------
# Config (mirrors the fields the PyTorch `config` object provides)
# --------------------------------------------------------------------------
CFG = dict(
    nb_levels=2,
    nb_encoder_units=[8, 16],
    encoder_kernel_sizes=[3, 3],
    encoder_strides=[2, 2],
    nb_decoder_units=[16, 8, 4, 1],      # nb_levels + 2 entries
    decoder_kernel_sizes=[2, 2, 1],
    decoder_strides=[2, 2, 1],
    hidden_size=16,
    leaky_relu_alpha=0.2,
    dropout=0.1,                          # identity at inference
    initializer_range=0.02,
)

IMG = 12          # input spatial size: 12 -> 6 -> 3 through the encoder convs
LANE = 128        # lane width (pad feature dims to multiples of this)
SUB = 8           # sublane width (pad batch rows to multiples of this)
HIGHEST = jax.lax.Precision.HIGHEST


def _ceil_to(x, m):
    return -(-x // m) * m


def _pad2(a, rm, cm):
    r, c = a.shape
    return jnp.pad(a, ((0, (-r) % rm), (0, (-c) % cm)))


# --------------------------------------------------------------------------
# Fused VAE Pallas kernel
# --------------------------------------------------------------------------
def _vae_kernel(*refs, n_enc, n_dec, alpha, hid_pad):
    """refs = [x, eps,
               (W, b) * n_enc             encoder convs (as dense matrices),
               W_lin, b_lin,              encoder Linear
               W_mulv, b_mulv,            fused fc1 | fc2
               W_dlin, b_dlin,            decoder Linear
               W * n_dec,                 decoder conv-transposes (dense, no bias)
               z, mu, logvar, recon]      outputs
    All matrices are pre-padded so every GEMM is lane-aligned (128 multiples).
    """
    it = iter(refs)
    x_ref, eps_ref = next(it), next(it)
    enc = [(next(it), next(it)) for _ in range(n_enc)]
    wl_ref, bl_ref = next(it), next(it)
    wml_ref, bml_ref = next(it), next(it)
    wdl_ref, bdl_ref = next(it), next(it)
    dec = [next(it) for _ in range(n_dec)]
    z_ref, mu_ref, lv_ref, rec_ref = next(it), next(it), next(it), next(it)

    def gemm(a, w_ref, b_ref=None, act=False):
        y = jnp.dot(a, w_ref[...], preferred_element_type=jnp.float32)
        if b_ref is not None:
            y = y + b_ref[...]                       # (1, Np) broadcast over rows
        if act:
            y = jnp.where(y >= 0, y, alpha * y)      # LeakyReLU
        return y

    # --- ConvEncoder ---
    h = x_ref[...]
    for w_ref, b_ref in enc:                         # Conv2d + bias + LeakyReLU (+Dropout=id)
        h = gemm(h, w_ref, b_ref, act=True)
    h = gemm(h, wl_ref, bl_ref, act=True)            # Linear + LeakyReLU
    ml = gemm(h, wml_ref, bml_ref, act=False)        # fused fc1 | fc2 GEMM
    mu = ml[:, :hid_pad]
    logvar = ml[:, hid_pad:]

    # --- reparametrize: z = mu + exp(0.5 * logvar) * eps ---
    z = mu + jnp.exp(0.5 * logvar) * eps_ref[...]
    z_ref[...] = z
    mu_ref[...] = mu
    lv_ref[...] = logvar

    # --- ConvDecoder ---
    d = gemm(z, wdl_ref, bdl_ref, act=False)         # Linear (no activation)
    for w_ref in dec:                                # ConvTranspose2d + LeakyReLU (+Dropout=id)
        d = gemm(d, w_ref, None, act=True)
    rec_ref[...] = d


# --------------------------------------------------------------------------
# Pack-time lowering: conv / conv-transpose -> dense (in_flat, out_flat) matrix
# (built once, outside the per-forward hot path)
# --------------------------------------------------------------------------
def _conv2d_matrix(w, stride, pad, H, W):
    """w: (Cout, Cin, k, k) PyTorch Conv2d weight.
    Returns M_T of shape (Cin*H*W, Cout*OH*OW) s.t. y_flat = x_flat @ M_T."""
    cout, cin, k, _ = w.shape
    basis = jnp.eye(cin * H * W, dtype=jnp.float32).reshape(cin * H * W, cin, H, W)
    out = jax.lax.conv_general_dilated(
        basis, w, window_strides=(stride, stride),
        padding=[(pad, pad), (pad, pad)],
        dimension_numbers=("NCHW", "OIHW", "NCHW"),
        precision=HIGHEST)
    oh, ow = out.shape[2], out.shape[3]
    return out.reshape(cin * H * W, cout * oh * ow), oh, ow


def _conv_transpose2d_matrix(w, stride, H, W):
    """w: (Cin, Cout, k, k) PyTorch ConvTranspose2d weight (no padding, no bias).
    Returns M_T of shape (Cin*H*W, Cout*OH*OW)."""
    cin, cout, k, _ = w.shape
    basis = jnp.eye(cin * H * W, dtype=jnp.float32).reshape(cin * H * W, cin, H, W)
    # transposed conv == conv(dilated input, spatially-flipped & channel-swapped weight)
    w_conv = jnp.transpose(jnp.flip(w, axis=(2, 3)), (1, 0, 2, 3))   # (Cout, Cin, k, k)
    out = jax.lax.conv_general_dilated(
        basis, w_conv, window_strides=(1, 1),
        padding=[(k - 1, k - 1), (k - 1, k - 1)],
        lhs_dilation=(stride, stride),
        dimension_numbers=("NCHW", "OIHW", "NCHW"),
        precision=HIGHEST)
    oh, ow = out.shape[2], out.shape[3]
    return out.reshape(cin * H * W, cout * oh * ow), oh, ow


# --------------------------------------------------------------------------
# Parameter init (deterministic, PyTorch-style normal(0, initializer_range))
# --------------------------------------------------------------------------
def init_params(key, cfg):
    std = cfg["initializer_range"]
    keys = iter(jax.random.split(key, 16))
    p = {}

    enc_units = [1] + cfg["nb_encoder_units"]
    enc_convs = []
    for i in range(cfg["nb_levels"]):
        cin, cout, k = enc_units[i], enc_units[i + 1], cfg["encoder_kernel_sizes"][i]
        w = std * jax.random.normal(next(keys), (cout, cin, k, k), jnp.float32)
        enc_convs.append((w, jnp.zeros((cout,), jnp.float32)))
    p["enc_convs"] = enc_convs

    feat = cfg["nb_encoder_units"][-1] * 3 * 3
    p["enc_lin"] = (std * jax.random.normal(next(keys), (32, feat), jnp.float32),
                    jnp.zeros((32,), jnp.float32))
    p["fc1"] = (std * jax.random.normal(next(keys), (cfg["hidden_size"], 32), jnp.float32),
                jnp.zeros((cfg["hidden_size"],), jnp.float32))
    p["fc2"] = (std * jax.random.normal(next(keys), (cfg["hidden_size"], 32), jnp.float32),
                jnp.zeros((cfg["hidden_size"],), jnp.float32))

    dec0 = cfg["nb_decoder_units"][0] * 3 * 3
    p["dec_lin"] = (std * jax.random.normal(next(keys), (dec0, cfg["hidden_size"]), jnp.float32),
                    jnp.zeros((dec0,), jnp.float32))

    dec_convs = []
    for i in range(1, cfg["nb_levels"] + 2):
        cin = cfg["nb_decoder_units"][i - 1]
        cout = cfg["nb_decoder_units"][i]
        k = cfg["decoder_kernel_sizes"][i - 1]
        dec_convs.append(std * jax.random.normal(next(keys), (cin, cout, k, k), jnp.float32))
    p["dec_convs"] = dec_convs
    return p


def pack_params(params, cfg):
    """One-time prepack: lower convs to dense matrices, transpose linears,
    zero-pad everything to lane-aligned shapes consumed by the fused kernel."""
    packed = []

    # encoder convs
    h_sp = w_sp = IMG
    for (wt, b), k, s in zip(params["enc_convs"],
                             cfg["encoder_kernel_sizes"], cfg["encoder_strides"]):
        pad = int(math.ceil(k / 2)) - 1
        m, oh, ow = _conv2d_matrix(wt, s, pad, h_sp, w_sp)
        b_flat = jnp.repeat(b, oh * ow)                 # bias broadcast over (OH,OW)
        packed += [_pad2(m, LANE, LANE), _pad2(b_flat[None, :], 1, LANE)]
        h_sp, w_sp = oh, ow

    # encoder linear
    wl, bl = params["enc_lin"]
    packed += [_pad2(wl.T, LANE, LANE), _pad2(bl[None, :], 1, LANE)]

    # fused fc1 | fc2 (mu | logvar)
    w1, b1 = params["fc1"]
    w2, b2 = params["fc2"]
    wml = jnp.concatenate([_pad2(w1.T, LANE, LANE), _pad2(w2.T, LANE, LANE)], axis=1)
    bml = jnp.concatenate([_pad2(b1[None, :], 1, LANE), _pad2(b2[None, :], 1, LANE)], axis=1)
    packed += [wml, bml]

    # decoder linear
    wd, bd = params["dec_lin"]
    packed += [_pad2(wd.T, LANE, LANE), _pad2(bd[None, :], 1, LANE)]

    # decoder conv-transposes (no bias)
    h_sp = w_sp = 3
    for wt, s in zip(params["dec_convs"], cfg["decoder_strides"]):
        m, oh, ow = _conv_transpose2d_matrix(wt, s, h_sp, w_sp)
        packed.append(_pad2(m, LANE, LANE))
        h_sp, w_sp = oh, ow

    return tuple(packed)


# --------------------------------------------------------------------------
# Forward (single fused pallas_call)
# --------------------------------------------------------------------------
def make_vae_forward(cfg):
    alpha = cfg["leaky_relu_alpha"]
    n_enc = cfg["nb_levels"]
    n_dec = cfg["nb_levels"] + 1
    hid = cfg["hidden_size"]
    hid_pad = _ceil_to(hid, LANE)

    # decoder output spatial size (3 -> ... through the conv-transposes)
    dec_sp = 3
    for k, s in zip(cfg["decoder_kernel_sizes"], cfg["decoder_strides"]):
        dec_sp = (dec_sp - 1) * s + k
    c_last = cfg["nb_decoder_units"][-1]
    rec_flat = c_last * dec_sp * dec_sp
    rec_pad = _ceil_to(rec_flat, LANE)

    kernel = functools.partial(_vae_kernel, n_enc=n_enc, n_dec=n_dec,
                               alpha=alpha, hid_pad=hid_pad)

    def forward(packed, x, eps):
        N = x.shape[0]
        in_flat = x.shape[1] * x.shape[2] * x.shape[3]
        in_pad = _ceil_to(in_flat, LANE)
        Mp = _ceil_to(N, SUB)

        xf = jnp.pad(x.reshape(N, in_flat), ((0, Mp - N), (0, in_pad - in_flat)))
        ef = jnp.pad(eps, ((0, Mp - N), (0, hid_pad - eps.shape[1])))

        n_in = 2 + len(packed)
        z_p, mu_p, lv_p, rec_p = pl.pallas_call(
            kernel,
            out_shape=(
                jax.ShapeDtypeStruct((Mp, hid_pad), jnp.float32),   # z
                jax.ShapeDtypeStruct((Mp, hid_pad), jnp.float32),   # mu
                jax.ShapeDtypeStruct((Mp, hid_pad), jnp.float32),   # logvar
                jax.ShapeDtypeStruct((Mp, rec_pad), jnp.float32),   # recon (flat)
            ),
            in_specs=[pl.BlockSpec(memory_space=pltpu.MemorySpace.VMEM)] * n_in,
            out_specs=tuple(pl.BlockSpec(memory_space=pltpu.MemorySpace.VMEM)
                            for _ in range(4)),
        )(xf, ef, *packed)

        z = z_p[:N, :hid]
        mu = mu_p[:N, :hid]
        logvar = lv_p[:N, :hid]
        recon = rec_p[:N, :rec_flat].reshape(N, c_last, dec_sp, dec_sp)
        return z, mu, logvar, recon

    return forward


# --------------------------------------------------------------------------
# Pure-JAX reference (same math as the PyTorch module) for validation
# --------------------------------------------------------------------------
def _ref_conv2d(x, w, b, stride, pad):
    y = jax.lax.conv_general_dilated(
        x, w, (stride, stride), [(pad, pad), (pad, pad)],
        dimension_numbers=("NCHW", "OIHW", "NCHW"), precision=HIGHEST)
    return y + b[None, :, None, None]


def _ref_conv_transpose2d(x, w, stride):
    k = w.shape[-1]
    w_conv = jnp.transpose(jnp.flip(w, axis=(2, 3)), (1, 0, 2, 3))
    return jax.lax.conv_general_dilated(
        x, w_conv, (1, 1), [(k - 1, k - 1), (k - 1, k - 1)],
        lhs_dilation=(stride, stride),
        dimension_numbers=("NCHW", "OIHW", "NCHW"), precision=HIGHEST)


def vae_reference(params, x, eps, cfg=CFG):
    alpha = cfg["leaky_relu_alpha"]
    lrelu = lambda v: jnp.where(v >= 0, v, alpha * v)
    mm = functools.partial(jnp.matmul, precision=HIGHEST)

    h = x
    for (w, b), k, s in zip(params["enc_convs"],
                            cfg["encoder_kernel_sizes"], cfg["encoder_strides"]):
        pad = int(math.ceil(k / 2)) - 1
        h = lrelu(_ref_conv2d(h, w, b, s, pad))
    h = h.reshape(h.shape[0], -1)
    wl, bl = params["enc_lin"]
    h = lrelu(mm(h, wl.T) + bl)
    w1, b1 = params["fc1"]
    w2, b2 = params["fc2"]
    mu = mm(h, w1.T) + b1
    logvar = mm(h, w2.T) + b2
    z = mu + jnp.exp(0.5 * logvar) * eps
    wd, bd = params["dec_lin"]
    d = (mm(z, wd.T) + bd).reshape(-1, cfg["nb_decoder_units"][0], 3, 3)
    for w, s in zip(params["dec_convs"], cfg["decoder_strides"]):
        d = lrelu(_ref_conv_transpose2d(d, w, s))
    return z, mu, logvar, d


# --------------------------------------------------------------------------
# Main
# --------------------------------------------------------------------------
if __name__ == "__main__":
    key = jax.random.PRNGKey(0)
    k_param, k_x, k_eps = jax.random.split(key, 3)

    params = init_params(k_param, CFG)
    packed = pack_params(params, CFG)          # one-time weight prepack (outside hot path)

    x = jax.random.normal(k_x, (2, 1, IMG, IMG), jnp.float32)        # NCHW, 1 channel
    # eps is passed explicitly (deterministic) instead of torch.randn inside reparametrize
    eps = jax.random.normal(k_eps, (2, CFG["hidden_size"]), jnp.float32)

    fwd = jax.jit(make_vae_forward(CFG))
    z, mu, logvar, x_recon = fwd(packed, x, eps)
    jax.block_until_ready((z, mu, logvar, x_recon))

    assert z.shape == (2, CFG["hidden_size"])
    assert mu.shape == (2, CFG["hidden_size"])
    assert logvar.shape == (2, CFG["hidden_size"])
    assert x_recon.shape == (2, 1, IMG, IMG)

    # validate the fused kernel against a plain-JAX reference of the module
    z_r, mu_r, lv_r, rec_r = jax.jit(functools.partial(vae_reference, cfg=CFG))(params, x, eps)
    jax.block_until_ready((z_r, mu_r, lv_r, rec_r))
    np.testing.assert_allclose(np.asarray(mu), np.asarray(mu_r), rtol=2e-2, atol=1e-6)
    np.testing.assert_allclose(np.asarray(logvar), np.asarray(lv_r), rtol=2e-2, atol=1e-6)
    np.testing.assert_allclose(np.asarray(z), np.asarray(z_r), rtol=2e-2, atol=1e-6)
    np.testing.assert_allclose(np.asarray(x_recon), np.asarray(rec_r), rtol=2e-2, atol=1e-6)

    print("KERNEL_OK")
</pallas_src>

<mosaic_0001>
module attributes {stable_mosaic.version = 11 : i64} {
  func.func @_vae_kernel(%arg0: memref<8x256xf32, #tpu.memory_space<vmem>>, %arg1: memref<8x128xf32, #tpu.memory_space<vmem>>, %arg2: memref<256x384xf32, #tpu.memory_space<vmem>>, %arg3: memref<1x384xf32, #tpu.memory_space<vmem>>, %arg4: memref<384x256xf32, #tpu.memory_space<vmem>>, %arg5: memref<1x256xf32, #tpu.memory_space<vmem>>, %arg6: memref<256x128xf32, #tpu.memory_space<vmem>>, %arg7: memref<1x128xf32, #tpu.memory_space<vmem>>, %arg8: memref<128x256xf32, #tpu.memory_space<vmem>>, %arg9: memref<1x256xf32, #tpu.memory_space<vmem>>, %arg10: memref<128x256xf32, #tpu.memory_space<vmem>>, %arg11: memref<1x256xf32, #tpu.memory_space<vmem>>, %arg12: memref<256x384xf32, #tpu.memory_space<vmem>>, %arg13: memref<384x640xf32, #tpu.memory_space<vmem>>, %arg14: memref<640x256xf32, #tpu.memory_space<vmem>>, %arg15: memref<8x128xf32, #tpu.memory_space<vmem>>, %arg16: memref<8x128xf32, #tpu.memory_space<vmem>>, %arg17: memref<8x128xf32, #tpu.memory_space<vmem>>, %arg18: memref<8x256xf32, #tpu.memory_space<vmem>>) attributes {dimension_semantics = [], scalar_prefetch = 0 : i64, scratch_operands = 0 : i64, tpu.core_type = #tpu.core_type<tc>} {
    %c0 = arith.constant 0 : index
    %c0_0 = arith.constant 0 : index
    %0 = vector.load %arg0[%c0, %c0_0] : memref<8x256xf32, #tpu.memory_space<vmem>>, vector<8x256xf32>
    %c0_1 = arith.constant 0 : index
    %c0_2 = arith.constant 0 : index
    %1 = vector.load %arg2[%c0_1, %c0_2] : memref<256x384xf32, #tpu.memory_space<vmem>>, vector<256x384xf32>
    %cst = arith.constant dense<0.000000e+00> : vector<8x384xf32>
    %2 = tpu.matmul %0, %1, %cst {dimension_numbers = #tpu.dot_dimension_numbers<[1], [0], [0], [1], [0, 0, 1, 1], [], []>} : vector<8x256xf32>, vector<256x384xf32>, vector<8x384xf32> -> vector<8x384xf32>
    %c0_3 = arith.constant 0 : index
    %c0_4 = arith.constant 0 : index
    %3 = vector.load %arg3[%c0_3, %c0_4] : memref<1x384xf32, #tpu.memory_space<vmem>>, vector<1x384xf32>
    %4 = vector.broadcast %3 : vector<1x384xf32> to vector<8x384xf32>
    %5 = arith.addf %2, %4 : vector<8x384xf32>
    %cst_5 = arith.constant 0.000000e+00 : f32
    %6 = vector.broadcast %cst_5 : f32 to vector<8x384xf32>
    %7 = arith.cmpf oge, %5, %6 : vector<8x384xf32>
    %cst_6 = arith.constant 2.000000e-01 : f32
    %8 = vector.broadcast %cst_6 : f32 to vector<8x384xf32>
    %9 = arith.mulf %8, %5 : vector<8x384xf32>
    %10 = arith.select %7, %5, %9 : vector<8x384xi1>, vector<8x384xf32>
    %c0_7 = arith.constant 0 : index
    %c0_8 = arith.constant 0 : index
    %11 = vector.load %arg4[%c0_7, %c0_8] : memref<384x256xf32, #tpu.memory_space<vmem>>, vector<384x256xf32>
    %cst_9 = arith.constant dense<0.000000e+00> : vector<8x256xf32>
    %12 = tpu.matmul %10, %11, %cst_9 {dimension_numbers = #tpu.dot_dimension_numbers<[1], [0], [0], [1], [0, 0, 1, 1], [], []>} : vector<8x384xf32>, vector<384x256xf32>, vector<8x256xf32> -> vector<8x256xf32>
    %c0_10 = arith.constant 0 : index
    %c0_11 = arith.constant 0 : index
    %13 = vector.load %arg5[%c0_10, %c0_11] : memref<1x256xf32, #tpu.memory_space<vmem>>, vector<1x256xf32>
    %14 = vector.broadcast %13 : vector<1x256xf32> to vector<8x256xf32>
    %15 = arith.addf %12, %14 : vector<8x256xf32>
    %cst_12 = arith.constant 0.000000e+00 : f32
    %16 = vector.broadcast %cst_12 : f32 to vector<8x256xf32>
    %17 = arith.cmpf oge, %15, %16 : vector<8x256xf32>
    %cst_13 = arith.constant 2.000000e-01 : f32
    %18 = vector.broadcast %cst_13 : f32 to vector<8x256xf32>
    %19 = arith.mulf %18, %15 : vector<8x256xf32>
    %20 = arith.select %17, %15, %19 : vector<8x256xi1>, vector<8x256xf32>
    %c0_14 = arith.constant 0 : index
    %c0_15 = arith.constant 0 : index
    %21 = vector.load %arg6[%c0_14, %c0_15] : memref<256x128xf32, #tpu.memory_space<vmem>>, vector<256x128xf32>
    %cst_16 = arith.constant dense<0.000000e+00> : vector<8x128xf32>
    %22 = tpu.matmul %20, %21, %cst_16 {dimension_numbers = #tpu.dot_dimension_numbers<[1], [0], [0], [1], [0, 0, 1, 1], [], []>} : vector<8x256xf32>, vector<256x128xf32>, vector<8x128xf32> -> vector<8x128xf32>
    %c0_17 = arith.constant 0 : index
    %c0_18 = arith.constant 0 : index
    %23 = vector.load %arg7[%c0_17, %c0_18] : memref<1x128xf32, #tpu.memory_space<vmem>>, vector<1x128xf32>
    %24 = vector.broadcast %23 : vector<1x128xf32> to vector<8x128xf32>
    %25 = arith.addf %22, %24 : vector<8x128xf32>
    %cst_19 = arith.constant 0.000000e+00 : f32
    %26 = vector.broadcast %cst_19 : f32 to vector<8x128xf32>
    %27 = arith.cmpf oge, %25, %26 : vector<8x128xf32>
    %cst_20 = arith.constant 2.000000e-01 : f32
    %28 = vector.broadcast %cst_20 : f32 to vector<8x128xf32>
    %29 = arith.mulf %28, %25 : vector<8x128xf32>
    %30 = arith.select %27, %25, %29 : vector<8x128xi1>, vector<8x128xf32>
    %c0_21 = arith.constant 0 : index
    %c0_22 = arith.constant 0 : index
    %31 = vector.load %arg8[%c0_21, %c0_22] : memref<128x256xf32, #tpu.memory_space<vmem>>, vector<128x256xf32>
    %cst_23 = arith.constant dense<0.000000e+00> : vector<8x256xf32>
    %32 = tpu.matmul %30, %31, %cst_23 {dimension_numbers = #tpu.dot_dimension_numbers<[1], [0], [0], [1], [0, 0, 1, 1], [], []>} : vector<8x128xf32>, vector<128x256xf32>, vector<8x256xf32> -> vector<8x256xf32>
    %c0_24 = arith.constant 0 : index
    %c0_25 = arith.constant 0 : index
    %33 = vector.load %arg9[%c0_24, %c0_25] : memref<1x256xf32, #tpu.memory_space<vmem>>, vector<1x256xf32>
    %34 = vector.broadcast %33 : vector<1x256xf32> to vector<8x256xf32>
    %35 = arith.addf %32, %34 : vector<8x256xf32>
    %36 = vector.extract_strided_slice %35 {offsets = [0, 0], sizes = [8, 128], strides = [1, 1]} : vector<8x256xf32> to vector<8x128xf32>
    %37 = vector.extract_strided_slice %35 {offsets = [0, 128], sizes = [8, 128], strides = [1, 1]} : vector<8x256xf32> to vector<8x128xf32>
    %cst_26 = arith.constant 5.000000e-01 : f32
    %38 = vector.broadcast %cst_26 : f32 to vector<8x128xf32>
    %39 = arith.mulf %38, %37 : vector<8x128xf32>
    %40 = math.exp %39 : vector<8x128xf32>
    %c0_27 = arith.constant 0 : index
    %c0_28 = arith.constant 0 : index
    %41 = vector.load %arg1[%c0_27, %c0_28] : memref<8x128xf32, #tpu.memory_space<vmem>>, vector<8x128xf32>
    %42 = arith.mulf %40, %41 : vector<8x128xf32>
    %43 = arith.addf %36, %42 : vector<8x128xf32>
    %c0_29 = arith.constant 0 : index
    %c0_30 = arith.constant 0 : index
    %44 = vector.load %arg15[%c0_29, %c0_30] : memref<8x128xf32, #tpu.memory_space<vmem>>, vector<8x128xf32>
    tpu.vector_store %arg15[%c0_29, %c0_30], %43 {strides = array<i32>} : memref<8x128xf32, #tpu.memory_space<vmem>>, vector<8x128xf32>,
    %c0_31 = arith.constant 0 : index
    %c0_32 = arith.constant 0 : index
    %45 = vector.load %arg16[%c0_31, %c0_32] : memref<8x128xf32, #tpu.memory_space<vmem>>, vector<8x128xf32>
    tpu.vector_store %arg16[%c0_31, %c0_32], %36 {strides = array<i32>} : memref<8x128xf32, #tpu.memory_space<vmem>>, vector<8x128xf32>,
    %c0_33 = arith.constant 0 : index
    %c0_34 = arith.constant 0 : index
    %46 = vector.load %arg17[%c0_33, %c0_34] : memref<8x128xf32, #tpu.memory_space<vmem>>, vector<8x128xf32>
    tpu.vector_store %arg17[%c0_33, %c0_34], %37 {strides = array<i32>} : memref<8x128xf32, #tpu.memory_space<vmem>>, vector<8x128xf32>,
    %c0_35 = arith.constant 0 : index
    %c0_36 = arith.constant 0 : index
    %47 = vector.load %arg10[%c0_35, %c0_36] : memref<128x256xf32, #tpu.memory_space<vmem>>, vector<128x256xf32>
    %cst_37 = arith.constant dense<0.000000e+00> : vector<8x256xf32>
    %48 = tpu.matmul %43, %47, %cst_37 {dimension_numbers = #tpu.dot_dimension_numbers<[1], [0], [0], [1], [0, 0, 1, 1], [], []>} : vector<8x128xf32>, vector<128x256xf32>, vector<8x256xf32> -> vector<8x256xf32>
    %c0_38 = arith.constant 0 : index
    %c0_39 = arith.constant 0 : index
    %49 = vector.load %arg11[%c0_38, %c0_39] : memref<1x256xf32, #tpu.memory_space<vmem>>, vector<1x256xf32>
    %50 = vector.broadcast %49 : vector<1x256xf32> to vector<8x256xf32>
    %51 = arith.addf %48, %50 : vector<8x256xf32>
    %c0_40 = arith.constant 0 : index
    %c0_41 = arith.constant 0 : index
    %52 = vector.load %arg12[%c0_40, %c0_41] : memref<256x384xf32, #tpu.memory_space<vmem>>, vector<256x384xf32>
    %cst_42 = arith.constant dense<0.000000e+00> : vector<8x384xf32>
    %53 = tpu.matmul %51, %52, %cst_42 {dimension_numbers = #tpu.dot_dimension_numbers<[1], [0], [0], [1], [0, 0, 1, 1], [], []>} : vector<8x256xf32>, vector<256x384xf32>, vector<8x384xf32> -> vector<8x384xf32>
    %cst_43 = arith.constant 0.000000e+00 : f32
    %54 = vector.broadcast %cst_43 : f32 to vector<8x384xf32>
    %55 = arith.cmpf oge, %53, %54 : vector<8x384xf32>
    %cst_44 = arith.constant 2.000000e-01 : f32
    %56 = vector.broadcast %cst_44 : f32 to vector<8x384xf32>
    %57 = arith.mulf %56, %53 : vector<8x384xf32>
    %58 = arith.select %55, %53, %57 : vector<8x384xi1>, vector<8x384xf32>
    %c0_45 = arith.constant 0 : index
    %c0_46 = arith.constant 0 : index
    %59 = vector.load %arg13[%c0_45, %c0_46] : memref<384x640xf32, #tpu.memory_space<vmem>>, vector<384x640xf32>
    %cst_47 = arith.constant dense<0.000000e+00> : vector<8x640xf32>
    %60 = tpu.matmul %58, %59, %cst_47 {dimension_numbers = #tpu.dot_dimension_numbers<[1], [0], [0], [1], [0, 0, 1, 1], [], []>} : vector<8x384xf32>, vector<384x640xf32>, vector<8x640xf32> -> vector<8x640xf32>
    %cst_48 = arith.constant 0.000000e+00 : f32
    %61 = vector.broadcast %cst_48 : f32 to vector<8x640xf32>
    %62 = arith.cmpf oge, %60, %61 : vector<8x640xf32>
    %cst_49 = arith.constant 2.000000e-01 : f32
    %63 = vector.broadcast %cst_49 : f32 to vector<8x640xf32>
    %64 = arith.mulf %63, %60 : vector<8x640xf32>
    %65 = arith.select %62, %60, %64 : vector<8x640xi1>, vector<8x640xf32>
    %c0_50 = arith.constant 0 : index
    %c0_51 = arith.constant 0 : index
    %66 = vector.load %arg14[%c0_50, %c0_51] : memref<640x256xf32, #tpu.memory_space<vmem>>, vector<640x256xf32>
    %cst_52 = arith.constant dense<0.000000e+00> : vector<8x256xf32>
    %67 = tpu.matmul %65, %66, %cst_52 {dimension_numbers = #tpu.dot_dimension_numbers<[1], [0], [0], [1], [0, 0, 1, 1], [], []>} : vector<8x640xf32>, vector<640x256xf32>, vector<8x256xf32> -> vector<8x256xf32>
    %cst_53 = arith.constant 0.000000e+00 : f32
    %68 = vector.broadcast %cst_53 : f32 to vector<8x256xf32>
    %69 = arith.cmpf oge, %67, %68 : vector<8x256xf32>
    %cst_54 = arith.constant 2.000000e-01 : f32
    %70 = vector.broadcast %cst_54 : f32 to vector<8x256xf32>
    %71 = arith.mulf %70, %67 : vector<8x256xf32>
    %72 = arith.select %69, %67, %71 : vector<8x256xi1>, vector<8x256xf32>
    %c0_55 = arith.constant 0 : index
    %c0_56 = arith.constant 0 : index
    %73 = vector.load %arg18[%c0_55, %c0_56] : memref<8x256xf32, #tpu.memory_space<vmem>>, vector<8x256xf32>
    tpu.vector_store %arg18[%c0_55, %c0_56], %72 {strides = array<i32>} : memref<8x256xf32, #tpu.memory_space<vmem>>, vector<8x256xf32>,
    return
  }
}

</mosaic_0001>

<bundles_post_ra>
// kernel: forward.1
= control target key start
LH: loop header
LB: loop body
LE: loop exit
PB: predicated region body
PF: predicated region fallthrough
CT: control target
= control target key end

     0   :  { %s2987_s0 = inlined_call_operand.vmem [shape: f32[8,256], index: 0, kind: input, shape index: {}]   ;;  %s2988_s1 = inlined_call_operand.vmem [shape: f32[8,128], index: 1, kind: input, shape index: {}]   ;;  %s2989_s2 = inlined_call_operand.hbm [shape: f32[256,384], index: 2, kind: input, shape index: {}]   ;;  %s2990_s3 = inlined_call_operand.vmem [shape: f32[1,384], index: 3, kind: input, shape index: {}]   ;;  %s2991_s4 = inlined_call_operand.hbm [shape: f32[384,256], index: 4, kind: input, shape index: {}]   ;;  %s2992_s5 = inlined_call_operand.vmem [shape: f32[1,256], index: 5, kind: input, shape index: {}]   ;;  %s2993_s6 = inlined_call_operand.hbm [shape: f32[256,128], index: 6, kind: input, shape index: {}]   ;;  %s2994_s7 = inlined_call_operand.vmem [shape: f32[1,128], index: 7, kind: input, shape index: {}]   ;;  %s2995_s8 = inlined_call_operand.hbm [shape: f32[128,256], index: 8, kind: input, shape index: {}]   ;;  %s2996_s9 = inlined_call_operand.vmem [shape: f32[1,256], index: 9, kind: input, shape index: {}]   ;;  %s2997_s10 = inlined_call_operand.hbm [shape: f32[128,256], index: 10, kind: input, shape index: {}]   ;;  %s2998_s11 = inlined_call_operand.vmem [shape: f32[1,256], index: 11, kind: input, shape index: {}]   ;;  %s2999_s12 = inlined_call_operand.hbm [shape: f32[256,384], index: 12, kind: input, shape index: {}]   ;;  %s3000_s13 = inlined_call_operand.hbm [shape: f32[384,640], index: 13, kind: input, shape index: {}]   ;;  %s3001_s14 = inlined_call_operand.hbm [shape: f32[640,256], index: 14, kind: input, shape index: {}]   ;;  %s3002_s15 = inlined_call_operand.vmem [shape: f32[8,128], index: 15, kind: output, shape index: {0}]   ;;  %s3003_s16 = inlined_call_operand.vmem [shape: f32[8,128], index: 16, kind: output, shape index: {1}]   ;;  %s3004_s17 = inlined_call_operand.vmem [shape: f32[8,128], index: 17, kind: output, shape index: {2}]   ;;  %s3005_s18 = inlined_call_operand.vmem [shape: f32[8,256], index: 18, kind: output, shape index: {3}]  }
   0x1   :  { %3007 = sst [smem:[#allocation20_spill]] %s2987_s0 }
   0x2   :  { %3008 = sst [smem:[#allocation21_spill]] %s2988_s1 }
   0x3   :  { %3009 = sst [smem:[#allocation22_spill]] %s2989_s2 }
   0x4   :  { %24 = vsyncpa [#allocation3], 0 }
   0x5   :  { %25 = vsyncpa [#allocation5], 0 }
   0x6   :  { %26 = vsyncpa [#allocation8], 0 }
   0x7   :  { %27 = vsyncpa [#allocation11], 0 }
   0x8   :  { %28 = vsyncpa [#allocation14], 0  ;;  %s2745_s27 = smov [#allocation4]  }
   0x9   :  { %s52_s28 = sshll.u32 %s2745_s27, 4  ;;  %s53_s28 = int_to_ptr.vmem [resolvable:$true] %s52_s28 }
   0xa   :  { %s2583_s29 = scalar_lea.vmem %s53_s28, 12288  ;;  %p2588_p1 = scmp.lt.s32.totalorder %s53_s28, %s53_s28 }
   0xb   :  { %p2584_p0 = scmp.ne.s32.totalorder %s53_s28, %s2583_s29  ;;  %p2589_p2 = scmp.lt.s32.totalorder %s2583_s29, %s2583_s29 }
   0xd   :  { %p2590_p3 = por %p2589_p2, %p2588_p1 }
   0xf   :  { %p2591_p4 = pnand %p2590_p3, %p2584_p0 }
  0x11   :  { %2594 = shalt.err (!%p2591_p4)
}
  0x12   :  { %s2746_s30 = smov 256   ;;  %s2747_s0 = smov 16  }
  0x13   :  { %58 = dma.hbm_to_vmem [thread:$0]  %s2991_s4, 12288, %s53_s28, [#allocation5], %s2746_s30, %s2746_s30, %s2747_s0  }
  0x14   :  { %s2748_s20 = smov [#allocation7]  }
  0x15   :  { %s80_s21 = sshll.u32 %s2748_s20, 4  ;;  %s81_s21 = int_to_ptr.vmem [resolvable:$true] %s80_s21 }
  0x16   :  { %s2603_s22 = scalar_lea.vmem %s81_s21, 4096  ;;  %p2608_p6 = scmp.lt.s32.totalorder %s81_s21, %s81_s21 }
  0x17   :  { %p2604_p5 = scmp.ne.s32.totalorder %s81_s21, %s2603_s22  ;;  %p2609_p7 = scmp.lt.s32.totalorder %s2603_s22, %s2603_s22 }
  0x19   :  { %p2610_p8 = por %p2609_p7, %p2608_p6 }
  0x1b   :  { %p2611_p9 = pnand %p2610_p8, %p2604_p5 }
  0x1d   :  { %2614 = shalt.err (!%p2611_p9)
}
  0x1e   :  { %86 = dma.hbm_to_vmem [thread:$0]  %s2995_s8, 4096, %s81_s21, [#allocation8], %s2746_s30, %s2746_s30, %s2747_s0  }
  0x1f   :  { %s2749_s24 = smov [#allocation10]   ;;  %s2750_s4 = smov [#allocation2]  }
  0x20   :  { %s108_s25 = sshll.u32 %s2749_s24, 4  ;;  %s38_s26 = sshll.u32 %s2750_s4, 4  ;;  %s109_s25 = int_to_ptr.vmem [resolvable:$true] %s108_s25  ;;  %s39_s26 = int_to_ptr.vmem [resolvable:$true] %s38_s26 }
  0x21   :  { %s2623_s27 = scalar_lea.vmem %s109_s25, 12288  ;;  %p2628_p11 = scmp.lt.s32.totalorder %s109_s25, %s109_s25 }
  0x22   :  { %p2624_p10 = scmp.ne.s32.totalorder %s109_s25, %s2623_s27  ;;  %p2629_p12 = scmp.lt.s32.totalorder %s2623_s27, %s2623_s27 }
  0x24   :  { %p2630_p13 = por %p2629_p12, %p2628_p11 }
  0x26   :  { %p2631_p0 = pnand %p2630_p13, %p2624_p10 }
  0x28   :  { %2634 = shalt.err (!%p2631_p0)
}
  0x29   :  { %s2751_s28 = smov 384   ;;  %s2752_s29 = smov 24  }
  0x2a   :  { %114 = dma.hbm_to_vmem [thread:$0]  %s2999_s12, 12288, %s109_s25, [#allocation11], %s2751_s28, %s2751_s28, %s2752_s29  }
  0x2b   :  { %s2643_s8 = scalar_lea.vmem %s39_s26, 12288  ;;  %p2648_p2 = scmp.lt.s32.totalorder %s39_s26, %s39_s26 }
  0x2c   :  { %p2644_p1 = scmp.ne.s32.totalorder %s39_s26, %s2643_s8  ;;  %p2649_p3 = scmp.lt.s32.totalorder %s2643_s8, %s2643_s8 }
  0x2e   :  { %p2650_p4 = por %p2649_p3, %p2648_p2 }
  0x30   :  { %p2651_p5 = pnand %p2650_p4, %p2644_p1 }
  0x32   :  { %2654 = shalt.err (!%p2651_p5)
}
  0x33   :  { %s3010_s22 = sld [smem:[#allocation22_spill]]  ;;  %s2753_s2 = smov [#allocation6]  }
  0x34   :  { %s66_s23 = sshll.u32 %s2753_s2, 4  ;;  %s67_s23 = int_to_ptr.vmem [resolvable:$true] %s66_s23 }
  0x35   :  { %s2663_s24 = scalar_lea.vmem %s67_s23, 4096  ;;  %p2668_p7 = scmp.lt.s32.totalorder %s67_s23, %s67_s23 }
  0x36   :  { %p2664_p6 = scmp.ne.s32.totalorder %s67_s23, %s2663_s24  ;;  %p2669_p8 = scmp.lt.s32.totalorder %s2663_s24, %s2663_s24 }
  0x38   :  { %p2670_p9 = por %p2669_p8, %p2668_p7 }
  0x39   :  { %44 = dma.hbm_to_vmem [thread:$0]  %s3010_s22, 12288, %s39_s26, [#allocation3], %s2751_s28, %s2751_s28, %s2752_s29  }
  0x3a   :  { %p2671_p10 = pnand %p2670_p9, %p2664_p6 }
  0x3c   :  { %2674 = shalt.err (!%p2671_p10)
}
  0x3d   :  { %s2754_s12 = smov 128   ;;  %s2755_s25 = smov 8  }
  0x3e   :  { %72 = dma.hbm_to_vmem [thread:$0]  %s2993_s6, 4096, %s67_s23, [#allocation5], %s2754_s12, %s2754_s12, %s2755_s25  }
  0x3f   :  { %s2756_s19 = smov [#allocation9]   ;;  %s2757_s26 = smov [#allocation12]  }
  0x40   :  { %s94_s1 = sshll.u32 %s2756_s19, 4  ;;  %s120_s28 = sshll.u32 %s2757_s26, 4  ;;  %s95_s1 = int_to_ptr.vmem [resolvable:$true] %s94_s1  ;;  %s121_s28 = int_to_ptr.vmem [resolvable:$true] %s120_s28 }
  0x41   :  { %s2683_s29 = scalar_lea.vmem %s95_s1, 4096  ;;  %p2688_p12 = scmp.lt.s32.totalorder %s95_s1, %s95_s1 }
  0x42   :  { %p2684_p11 = scmp.ne.s32.totalorder %s95_s1, %s2683_s29  ;;  %p2689_p13 = scmp.lt.s32.totalorder %s2683_s29, %s2683_s29 }
  0x44   :  { %p2690_p0 = por %p2689_p13, %p2688_p12 }
  0x46   :  { %p2691_p1 = pnand %p2690_p0, %p2684_p11 }
  0x48   :  { %2694 = shalt.err (!%p2691_p1)
}
  0x49   :  { %100 = dma.hbm_to_vmem [thread:$0]  %s2997_s10, 4096, %s95_s1, [#allocation8], %s2746_s30, %s2746_s30, %s2747_s0  }
  0x4a   :  { %s2703_s6 = scalar_lea.vmem %s121_s28, 30720  ;;  %p2708_p3 = scmp.lt.s32.totalorder %s121_s28, %s121_s28 }
  0x4b   :  { %p2704_p2 = scmp.ne.s32.totalorder %s121_s28, %s2703_s6  ;;  %p2709_p4 = scmp.lt.s32.totalorder %s2703_s6, %s2703_s6 }
  0x4d   :  { %p2710_p5 = por %p2709_p4, %p2708_p3 }
  0x4f   :  { %p2711_p6 = pnand %p2710_p5, %p2704_p2 }
  0x51   :  { %2714 = shalt.err (!%p2711_p6)
}
  0x52   :  { %s2758_s21 = smov 640   ;;  %s2759_s22 = smov 40  }
  0x53   :  { %126 = dma.hbm_to_vmem [thread:$0]  %s3000_s13, 30720, %s121_s28, [#allocation11], %s2758_s21, %s2758_s21, %s2759_s22  }
  0x54   :  { %s2760_s24 = smov [#allocation13]  }
  0x55   :  { %s132_s12 = sshll.u32 %s2760_s24, 4  ;;  %s133_s12 = int_to_ptr.vmem [resolvable:$true] %s132_s12 }
  0x56   :  { %s2723_s25 = scalar_lea.vmem %s133_s12, 20480  ;;  %p2728_p8 = scmp.lt.s32.totalorder %s133_s12, %s133_s12 }
  0x57   :  { %p2724_p7 = scmp.ne.s32.totalorder %s133_s12, %s2723_s25  ;;  %p2729_p9 = scmp.lt.s32.totalorder %s2723_s25, %s2723_s25 }
  0x59   :  { %p2730_p10 = por %p2729_p9, %p2728_p8 }
  0x5b   :  { %p2731_p11 = pnand %p2730_p10, %p2724_p7 }
  0x5d   :  { %2734 = shalt.err (!%p2731_p11)
}
  0x5e   :  { %138 = dma.hbm_to_vmem [thread:$0]  %s3001_s14, 20480, %s133_s12, [#allocation14], %s2746_s30, %s2746_s30, %s2747_s0  }
  0x5f   :  { %2735 = dma.done.wait [#allocation3], 12288  }
  0x60   :  { %2736 = vsyncadd [#allocation3], 4294955008 }
  0x61   :  { %2737 = dma.done.wait [#allocation5], 16384  }
  0x62   :  { %2738 = vsyncadd [#allocation5], 4294950912 }
  0x63   :  { %2739 = dma.done.wait [#allocation8], 8192  }
  0x64   :  { %2740 = vsyncadd [#allocation8], 4294959104 }
  0x65   :  { %2741 = dma.done.wait [#allocation11], 43008  }
  0x66   :  { %2742 = vsyncadd [#allocation11], 4294924288 }
  0x67   :  { %2743 = dma.done.wait [#allocation14], 20480  }
  0x68   :  { %2744 = vsyncadd [#allocation14], 4294946816  ;;  %v211_v0 = vld [vmem:[#allocation2 + $0x170] sm:$0xff]  ;;  %v210_v1 = vld [vmem:[#allocation2 + $0x168] sm:$0xff]  ;;  %s3011_s30 = sld [smem:[#allocation20_spill]]  ;;  %vm2762_vm9 = vmmov 0  }
  0x69   :  { %v208_v2 = vld [vmem:[#allocation2 + $0x158] sm:$0xff]  ;;  %278 = vmatprep.subr.mxu0 %v211_v0  ;;  %v207_v3 = vld [vmem:[#allocation2 + $0x150] sm:$0xff]  ;;  %v205_v4 = vld [vmem:[#allocation2 + $0x140] sm:$0xff]  ;;  %s3012_s2 = sld [smem:[#allocation21_spill]] }
  0x6a   :  { %279 = vmatpush1.msra.mxu0 %v210_v1  ;;  %v204_v5 = vld [vmem:[#allocation2 + $0x138] sm:$0xff]  ;;  %v202_v6 = vld [vmem:[#allocation2 + $0x128] sm:$0xff]  ;;  %v201_v7 = vld [vmem:[#allocation2 + $0x120] sm:$0xff] }
  0x6b   :  { %280 = vmatprep.subr.mxu0 %v208_v2  ;;  %v199_v8 = vld [vmem:[#allocation2 + $0x110] sm:$0xff]  ;;  %v198_v9 = vld [vmem:[#allocation2 + $0x108] sm:$0xff]  ;;  %v196_v10 = vld [vmem:[#allocation2 + $0xf8] sm:$0xff] }
  0x6c   :  { %281 = vmatpush1.msra.mxu0 %v207_v3  ;;  %v195_v11 = vld [vmem:[#allocation2 + $0xf0] sm:$0xff]  ;;  %v260_v12 = vld [vmem:[#allocation2 + $0x2f8] sm:$0xff]  ;;  %v193_v13 = vld [vmem:[#allocation2 + $0xe0] sm:$0xff] }
  0x6d   :  { %282 = vmatprep.subr.mxu0 %v205_v4  ;;  %2363 = vmatprep.subr.mxu1 %v260_v12  ;;  %v212_v14 = vld [vmem:[#allocation2 + $0x178] sm:$0xff]  ;;  %v257_v15 = vld [vmem:[#allocation2 + $0x2e0] sm:$0xff]  ;;  %v190_v18 = vld [vmem:[#allocation2 + $0xc8] sm:$0xff] }
  0x6e   :  { %283 = vmatpush1.msra.mxu0 %v204_v5  ;;  %v192_v16 = vld [vmem:[#allocation2 + $0xd8] sm:$0xff]  ;;  %2364 = vmatpush3.msra.mxu1 %v212_v14  ;;  %v209_v17 = vld [vmem:[#allocation2 + $0x160] sm:$0xff]  ;;  %v254_v19 = vld [vmem:[#allocation2 + $0x2c8] sm:$0xff] }
  0x6f   :  { %284 = vmatprep.subr.mxu0 %v202_v6  ;;  %2365 = vmatprep.subr.mxu1 %v257_v15  ;;  %v206_v20 = vld [vmem:[#allocation2 + $0x148] sm:$0xff]  ;;  %v189_v21 = vld [vmem:[#allocation2 + $0xc0] sm:$0xff]  ;;  %v251_v22 = vld [vmem:[#allocation2 + $0x2b0] sm:$0xff] }
  0x70   :  { %285 = vmatpush1.msra.mxu0 %v201_v7  ;;  %2366 = vmatpush3.msra.mxu1 %v209_v17  ;;  %v187_v23 = vld [vmem:[#allocation2 + $0xb0] sm:$0xff]  ;;  %v186_v25 = vld [vmem:[#allocation2 + $0xa8] sm:$0xff]  ;;  %v248_v26 = vld [vmem:[#allocation2 + $0x298] sm:$0xff] }
  0x71   :  { %286 = vmatprep.subr.mxu0 %v199_v8  ;;  %2367 = vmatprep.subr.mxu1 %v254_v19  ;;  %v203_v24 = vld [vmem:[#allocation2 + $0x130] sm:$0xff]  ;;  %v184_v27 = vld [vmem:[#allocation2 + $0x98] sm:$0xff]  ;;  %v245_v30 = vld [vmem:[#allocation2 + $0x280] sm:$0xff] }
  0x72   :  { %287 = vmatpush1.msra.mxu0 %v198_v9  ;;  %2368 = vmatpush3.msra.mxu1 %v206_v20  ;;  %v200_v28 = vld [vmem:[#allocation2 + $0x118] sm:$0xff]  ;;  %v183_v29 = vld [vmem:[#allocation2 + $0x90] sm:$0xff]  ;;  %v181_v31 = vld [vmem:[#allocation2 + $0x80] sm:$0xff] }
  0x73   :  { %288 = vmatprep.subr.mxu0 %v196_v10  ;;  %2369 = vmatprep.subr.mxu1 %v251_v22  ;;  %v197_v32 = vld [vmem:[#allocation2 + $0x100] sm:$0xff]  ;;  %v180_v33 = vld [vmem:[#allocation2 + $0x78] sm:$0xff]  ;;  %v242_v34 = vld [vmem:[#allocation2 + $0x268] sm:$0xff] }
  0x74   :  { %289 = vmatpush1.msra.mxu0 %v195_v11  ;;  %2370 = vmatpush3.msra.mxu1 %v203_v24  ;;  %v178_v35 = vld [vmem:[#allocation2 + $0x68] sm:$0xff]  ;;  %v177_v37 = vld [vmem:[#allocation2 + $0x60] sm:$0xff]  ;;  %v239_v38 = vld [vmem:[#allocation2 + $0x250] sm:$0xff] }
  0x75   :  { %290 = vmatprep.subr.mxu0 %v193_v13  ;;  %2371 = vmatprep.subr.mxu1 %v248_v26  ;;  %v194_v36 = vld [vmem:[#allocation2 + $0xe8] sm:$0xff]  ;;  %v175_v39 = vld [vmem:[#allocation2 + $0x50] sm:$0xff]  ;;  %v236_v42 = vld [vmem:[#allocation2 + $0x238] sm:$0xff] }
  0x76   :  { %291 = vmatpush1.msra.mxu0 %v192_v16  ;;  %2372 = vmatpush3.msra.mxu1 %v200_v28  ;;  %v191_v40 = vld [vmem:[#allocation2 + $0xd0] sm:$0xff]  ;;  %v174_v41 = vld [vmem:[#allocation2 + $0x48] sm:$0xff]  ;;  %v172_v43 = vld [vmem:[#allocation2 + $0x38] sm:$0xff] }
  0x77   :  { %292 = vmatprep.subr.mxu0 %v190_v18  ;;  %2373 = vmatprep.subr.mxu1 %v245_v30  ;;  %v188_v44 = vld [vmem:[#allocation2 + $0xb8] sm:$0xff]  ;;  %v171_v45 = vld [vmem:[#allocation2 + $0x30] sm:$0xff]  ;;  %v233_v46 = vld [vmem:[#allocation2 + $0x220] sm:$0xff] }
  0x78   :  { %293 = vmatpush1.msra.mxu0 %v189_v21  ;;  %2374 = vmatpush3.msra.mxu1 %v197_v32  ;;  %v169_v47 = vld [vmem:[#allocation2 + $0x20] sm:$0xff]  ;;  %v168_v49 = vld [vmem:[#allocation2 + $0x18] sm:$0xff]  ;;  %v230_v50 = vld [vmem:[#allocation2 + $0x208] sm:$0xff] }
  0x79   :  { %294 = vmatprep.subr.mxu0 %v187_v23  ;;  %2375 = vmatprep.subr.mxu1 %v242_v34  ;;  %v185_v48 = vld [vmem:[#allocation2 + $0xa0] sm:$0xff]  ;;  %v166_v51 = vld [vmem:[#allocation2 + $0x8] sm:$0xff]  ;;  %v227_v54 = vld [vmem:[#allocation2 + $0x1f0] sm:$0xff] }
  0x7a   :  { %295 = vmatpush1.msra.mxu0 %v186_v25  ;;  %2376 = vmatpush3.msra.mxu1 %v194_v36  ;;  %v182_v52 = vld [vmem:[#allocation2 + $0x88] sm:$0xff]  ;;  %v165_v53 = vld [vmem:[#allocation2] sm:$0xff]  ;;  %v259_v55 = vld [vmem:[#allocation2 + $0x2f0] sm:$0xff] }
  0x7b   :  { %296 = vmatprep.subr.mxu0 %v184_v27  ;;  %2377 = vmatprep.subr.mxu1 %v239_v38  ;;  %v179_v56 = vld [vmem:[#allocation2 + $0x70] sm:$0xff]  ;;  %v258_v57 = vld [vmem:[#allocation2 + $0x2e8] sm:$0xff]  ;;  %v224_v58 = vld [vmem:[#allocation2 + $0x1d8] sm:$0xff] }
  0x7c   :  { %297 = vmatpush1.msra.mxu0 %v183_v29  ;;  %2378 = vmatpush3.msra.mxu1 %v191_v40  ;;  %v256_v59 = vld [vmem:[#allocation2 + $0x2d8] sm:$0xff]  ;;  %v255_v61 = vld [vmem:[#allocation2 + $0x2d0] sm:$0xff]  ;;  %v221_v62 = vld [vmem:[#allocation2 + $0x1c0] sm:$0xff] }
  0x7d   :  { %298 = vmatprep.subr.mxu0 %v181_v31  ;;  %2379 = vmatprep.subr.mxu1 %v236_v42  ;;  %v176_v60 = vld [vmem:[#allocation2 + $0x58] sm:$0xff]  ;;  %v253_v63 = vld [vmem:[#allocation2 + $0x2c0] sm:$0xff]  ;;  %v218_v2 = vld [vmem:[#allocation2 + $0x1a8] sm:$0xff] }
  0x7e   :  { %299 = vmatpush1.msra.mxu0 %v180_v33  ;;  %2380 = vmatpush3.msra.mxu1 %v188_v44  ;;  %v173_v0 = vld [vmem:[#allocation2 + $0x40] sm:$0xff]  ;;  %v252_v1 = vld [vmem:[#allocation2 + $0x2b8] sm:$0xff]  ;;  %v250_v3 = vld [vmem:[#allocation2 + $0x2a8] sm:$0xff] }
  0x7f   :  { %300 = vmatprep.subr.mxu0 %v178_v35  ;;  %2381 = vmatprep.subr.mxu1 %v233_v46  ;;  %v170_v4 = vld [vmem:[#allocation2 + $0x28] sm:$0xff]  ;;  %v249_v5 = vld [vmem:[#allocation2 + $0x2a0] sm:$0xff]  ;;  %v215_v6 = vld [vmem:[#allocation2 + $0x190] sm:$0xff] }
  0x80   :  { %301 = vmatpush1.msra.mxu0 %v177_v37  ;;  %2382 = vmatpush3.msra.mxu1 %v185_v48  ;;  %v247_v7 = vld [vmem:[#allocation2 + $0x290] sm:$0xff]  ;;  %v246_v9 = vld [vmem:[#allocation2 + $0x288] sm:$0xff]  ;;  %v244_v11 = vld [vmem:[#allocation2 + $0x278] sm:$0xff] }
  0x81   :  { %302 = vmatprep.subr.mxu0 %v175_v39  ;;  %2383 = vmatprep.subr.mxu1 %v230_v50  ;;  %v167_v8 = vld [vmem:[#allocation2 + $0x10] sm:$0xff]  ;;  %v164_v10 = vld [vmem:[%s3011_s30 + $0x8] sm:$0xff]  ;;  %v2900_v12 = vld [vmem:[%s3011_s30] sm:$0xff] }
  0x82   :  { %303 = vmatpush1.msra.mxu0 %v174_v41  ;;  %2384 = vmatpush3.msra.mxu1 %v182_v52  ;;  %v243_v13 = vld [vmem:[#allocation2 + $0x270] sm:$0xff]  ;;  %v241_v14 = vld [vmem:[#allocation2 + $0x260] sm:$0xff]  ;;  %v459_v15 = vld [vmem:[#allocation4 + $0xf8] sm:$0xff] }
  0x83   :  { %304 = vmatprep.subr.mxu0 %v172_v43  ;;  %2385 = vmatprep.subr.mxu1 %v227_v54  ;;  %v240_v16 = vld [vmem:[#allocation2 + $0x258] sm:$0xff]  ;;  %v458_v17 = vld [vmem:[#allocation4 + $0xf0] sm:$0xff]  ;;  %v238_v18 = vld [vmem:[#allocation2 + $0x248] sm:$0xff] }
  0x84   :  { %305 = vmatpush1.msra.mxu0 %v171_v45  ;;  %2386 = vmatpush3.msra.mxu1 %v179_v56  ;;  %v457_v19 = vld [vmem:[#allocation4 + $0xe8] sm:$0xff]  ;;  %v237_v20 = vld [vmem:[#allocation2 + $0x240] sm:$0xff]  ;;  %v235_v22 = vld [vmem:[#allocation2 + $0x230] sm:$0xff] }
  0x85   :  { %306 = vmatprep.subr.mxu0 %v169_v47  ;;  %2387 = vmatprep.subr.mxu1 %v224_v58  ;;  %v456_v21 = vld [vmem:[#allocation4 + $0xe0] sm:$0xff]  ;;  %v455_v23 = vld [vmem:[#allocation4 + $0xd8] sm:$0xff]  ;;  %v234_v24 = vld [vmem:[#allocation2 + $0x228] sm:$0xff] }
  0x86   :  { %307 = vmatpush1.msra.mxu0 %v168_v49  ;;  %2388 = vmatpush3.msra.mxu1 %v176_v60  ;;  %v454_v25 = vld [vmem:[#allocation4 + $0xd0] sm:$0xff]  ;;  %v232_v26 = vld [vmem:[#allocation2 + $0x218] sm:$0xff]  ;;  %v453_v27 = vld [vmem:[#allocation4 + $0xc8] sm:$0xff] }
  0x87   :  { %308 = vmatprep.subr.mxu0 %v166_v51  ;;  %2389 = vmatprep.subr.mxu1 %v221_v62  ;;  %v231_v28 = vld [vmem:[#allocation2 + $0x210] sm:$0xff]  ;;  %v452_v29 = vld [vmem:[#allocation4 + $0xc0] sm:$0xff]  ;;  %v451_v31 = vld [vmem:[#allocation4 + $0xb8] sm:$0xff] }
  0x88   :  { %309 = vmatpush1.msra.mxu0 %v165_v53  ;;  %2390 = vmatpush3.msra.mxu1 %v173_v0  ;;  %v229_v30 = vld [vmem:[#allocation2 + $0x200] sm:$0xff]  ;;  %v228_v32 = vld [vmem:[#allocation2 + $0x1f8] sm:$0xff]  ;;  %v450_v33 = vld [vmem:[#allocation4 + $0xb0] sm:$0xff] }
  0x89   :  { %310 = vmatprep.subr.mxu0 %v259_v55  ;;  %2391 = vmatprep.subr.mxu1 %v218_v2  ;;  %v226_v34 = vld [vmem:[#allocation2 + $0x1e8] sm:$0xff]  ;;  %v225_v36 = vld [vmem:[#allocation2 + $0x1e0] sm:$0xff]  ;;  %v223_v38 = vld [vmem:[#allocation2 + $0x1d0] sm:$0xff] }
  0x8a   :  { %311 = vmatpush2.msra.mxu0 %v258_v57  ;;  %2392 = vmatpush3.msra.mxu1 %v170_v4  ;;  %v449_v35 = vld [vmem:[#allocation4 + $0xa8] sm:$0xff]  ;;  %v448_v37 = vld [vmem:[#allocation4 + $0xa0] sm:$0xff]  ;;  %v447_v39 = vld [vmem:[#allocation4 + $0x98] sm:$0xff] }
  0x8b   :  { %312 = vmatprep.subr.mxu0 %v256_v59  ;;  %2393 = vmatprep.subr.mxu1 %v215_v6  ;;  %v222_v40 = vld [vmem:[#allocation2 + $0x1c8] sm:$0xff]  ;;  %v446_v41 = vld [vmem:[#allocation4 + $0x90] sm:$0xff]  ;;  %v220_v42 = vld [vmem:[#allocation2 + $0x1b8] sm:$0xff] }
  0x8c   :  { %313 = vmatpush2.msra.mxu0 %v255_v61  ;;  %2394 = vmatpush3.msra.mxu1 %v167_v8  ;;  %v445_v43 = vld [vmem:[#allocation4 + $0x88] sm:$0xff]  ;;  %v219_v44 = vld [vmem:[#allocation2 + $0x1b0] sm:$0xff]  ;;  %v444_v45 = vld [vmem:[#allocation4 + $0x80] sm:$0xff] }
  0x8d   :  { %314 = vmatprep.subr.mxu0 %v253_v63  ;;  %413 = vmatprep.mubr.f32.mxu1 %v164_v10  ;;  %v217_v46 = vld [vmem:[#allocation2 + $0x1a0] sm:$0xff]  ;;  %v443_v47 = vld [vmem:[#allocation4 + $0x78] sm:$0xff]  ;;  %v442_v49 = vld [vmem:[#allocation4 + $0x70] sm:$0xff] }
  0x8e   :  { %315 = vmatpush2.msra.mxu0 %v252_v1  ;;  %414 = vmatmul.mubr.f32.vlgmr.msra.gmra.mxu1 %v2900_v12  ;;  %v216_v48 = vld [vmem:[#allocation2 + $0x198] sm:$0xff]  ;;  %v214_v50 = vld [vmem:[#allocation2 + $0x188] sm:$0xff]  ;;  %v213_v52 = vld [vmem:[#allocation2 + $0x180] sm:$0xff] }
  0x8f   :  { %316 = vmatprep.subr.mxu0 %v250_v3  ;;  %342 = vmatprep.mubr.f32.mxu0 %v164_v10  ;;  %v441_v51 = vld [vmem:[#allocation4 + $0x68] sm:$0xff]  ;;  %v440_v53 = vld [vmem:[#allocation4 + $0x60] sm:$0xff]  ;;  %v439_v54 = vld [vmem:[#allocation4 + $0x58] sm:$0xff] }
  0x90   :  { %317 = vmatpush2.msra.mxu0 %v249_v5  ;;  %536 = vmatprep.subr.mxu1 %v459_v15  ;;  %v438_v55 = vld [vmem:[#allocation4 + $0x50] sm:$0xff]  ;;  %v523_v56 = vld [vmem:[#allocation4 + $0x2f8] sm:$0xff]  ;;  %v437_v57 = vld [vmem:[#allocation4 + $0x48] sm:$0xff] }
  0x91   :  { %318 = vmatprep.subr.mxu0 %v247_v7  ;;  %537 = vmatpush1.msra.mxu1 %v458_v17  ;;  %v522_v58 = vld [vmem:[#allocation4 + $0x2f0] sm:$0xff]  ;;  %v436_v59 = vld [vmem:[#allocation4 + $0x40] sm:$0xff]  ;;  %v521_v60 = vld [vmem:[#allocation4 + $0x2e8] sm:$0xff] }
  0x92   :  { %319 = vmatpush2.msra.mxu0 %v246_v9  ;;  %538 = vmatprep.subr.mxu1 %v457_v19  ;;  %v435_v61 = vld [vmem:[#allocation4 + $0x38] sm:$0xff]  ;;  %v520_v62 = vld [vmem:[#allocation4 + $0x2e0] sm:$0xff]  ;;  %v434_v63 = vld [vmem:[#allocation4 + $0x30] sm:$0xff] }
  0x93   :  { %320 = vmatprep.subr.mxu0 %v244_v11  ;;  %539 = vmatpush1.msra.mxu1 %v456_v21  ;;  %v519_v0 = vld [vmem:[#allocation4 + $0x2d8] sm:$0xff]  ;;  %v433_v1 = vld [vmem:[#allocation4 + $0x28] sm:$0xff]  ;;  %v518_v2 = vld [vmem:[#allocation4 + $0x2d0] sm:$0xff] }
  0x94   :  { %321 = vmatpush2.msra.mxu0 %v243_v13  ;;  %540 = vmatprep.subr.mxu1 %v455_v23  ;;  %v432_v3 = vld [vmem:[#allocation4 + $0x20] sm:$0xff]  ;;  %v517_v4 = vld [vmem:[#allocation4 + $0x2c8] sm:$0xff]  ;;  %v431_v5 = vld [vmem:[#allocation4 + $0x18] sm:$0xff] }
  0x95   :  { %322 = vmatprep.subr.mxu0 %v241_v14  ;;  %541 = vmatpush1.msra.mxu1 %v454_v25  ;;  %v516_v6 = vld [vmem:[#allocation4 + $0x2c0] sm:$0xff]  ;;  %v430_v7 = vld [vmem:[#allocation4 + $0x10] sm:$0xff]  ;;  %v515_v8 = vld [vmem:[#allocation4 + $0x2b8] sm:$0xff] }
  0x96   :  { %323 = vmatpush2.msra.mxu0 %v240_v16  ;;  %542 = vmatprep.subr.mxu1 %v453_v27  ;;  %v429_v9 = vld [vmem:[#allocation4 + $0x8] sm:$0xff]  ;;  %v514_v10 = vld [vmem:[#allocation4 + $0x2b0] sm:$0xff]  ;;  %v428_v11 = vld [vmem:[#allocation4] sm:$0xff] }
  0x97   :  { %324 = vmatprep.subr.mxu0 %v238_v18  ;;  %543 = vmatpush1.msra.mxu1 %v452_v29  ;;  %v491_v13 = vld [vmem:[#allocation4 + $0x1f8] sm:$0xff]  ;;  %v512_v14 = vld [vmem:[#allocation4 + $0x2a0] sm:$0xff]  ;;  %v490_v15 = vld [vmem:[#allocation4 + $0x1f0] sm:$0xff] }
  0x98   :  { %325 = vmatpush2.msra.mxu0 %v237_v20  ;;  %544 = vmatprep.subr.mxu1 %v451_v31  ;;  %v511_v16 = vld [vmem:[#allocation4 + $0x298] sm:$0xff]  ;;  %v489_v17 = vld [vmem:[#allocation4 + $0x1e8] sm:$0xff]  ;;  %v510_v18 = vld [vmem:[#allocation4 + $0x290] sm:$0xff] }
  0x99   :  { %326 = vmatprep.subr.mxu0 %v235_v22  ;;  %545 = vmatpush1.msra.mxu1 %v450_v33  ;;  %v488_v19 = vld [vmem:[#allocation4 + $0x1e0] sm:$0xff]  ;;  %v509_v20 = vld [vmem:[#allocation4 + $0x288] sm:$0xff]  ;;  %v487_v21 = vld [vmem:[#allocation4 + $0x1d8] sm:$0xff] }
  0x9a   :  { %327 = vmatpush2.msra.mxu0 %v234_v24  ;;  %546 = vmatprep.subr.mxu1 %v449_v35  ;;  %v508_v22 = vld [vmem:[#allocation4 + $0x280] sm:$0xff]  ;;  %v486_v23 = vld [vmem:[#allocation4 + $0x1d0] sm:$0xff]  ;;  %v507_v24 = vld [vmem:[#allocation4 + $0x278] sm:$0xff] }
  0x9b   :  { %328 = vmatprep.subr.mxu0 %v232_v26  ;;  %547 = vmatpush1.msra.mxu1 %v448_v37  ;;  %v485_v25 = vld [vmem:[#allocation4 + $0x1c8] sm:$0xff]  ;;  %v506_v26 = vld [vmem:[#allocation4 + $0x270] sm:$0xff]  ;;  %v484_v27 = vld [vmem:[#allocation4 + $0x1c0] sm:$0xff] }
  0x9c   :  { %329 = vmatpush2.msra.mxu0 %v231_v28  ;;  %548 = vmatprep.subr.mxu1 %v447_v39  ;;  %v505_v28 = vld [vmem:[#allocation4 + $0x268] sm:$0xff]  ;;  %v483_v29 = vld [vmem:[#allocation4 + $0x1b8] sm:$0xff]  ;;  %v482_v31 = vld [vmem:[#allocation4 + $0x1b0] sm:$0xff] }
  0x9d   :  { %330 = vmatprep.subr.mxu0 %v229_v30  ;;  %549 = vmatpush1.msra.mxu1 %v446_v41  ;;  %v504_v30 = vld [vmem:[#allocation4 + $0x260] sm:$0xff]  ;;  %v481_v33 = vld [vmem:[#allocation4 + $0x1a8] sm:$0xff]  ;;  %v478_v37 = vld [vmem:[#allocation4 + $0x190] sm:$0xff] }
  0x9e   :  { %331 = vmatpush2.msra.mxu0 %v228_v32  ;;  %550 = vmatprep.subr.mxu1 %v445_v43  ;;  %v503_v32 = vld [vmem:[#allocation4 + $0x258] sm:$0xff]  ;;  %v480_v35 = vld [vmem:[#allocation4 + $0x1a0] sm:$0xff]  ;;  %v474_v41 = vld [vmem:[#allocation4 + $0x170] sm:$0xff] }
  0x9f   :  { %332 = vmatprep.subr.mxu0 %v226_v34  ;;  %551 = vmatpush1.msra.mxu1 %v444_v45  ;;  %v502_v34 = vld [vmem:[#allocation4 + $0x250] sm:$0xff]  ;;  %v476_v39 = vld [vmem:[#allocation4 + $0x180] sm:$0xff]  ;;  %v501_v43 = vld [vmem:[#allocation4 + $0x248] sm:$0xff] }
  0xa0   :  { %333 = vmatpush2.msra.mxu0 %v225_v36  ;;  %552 = vmatprep.subr.mxu1 %v443_v47  ;;  %v479_v36 = vld [vmem:[#allocation4 + $0x198] sm:$0xff]  ;;  %v500_v45 = vld [vmem:[#allocation4 + $0x240] sm:$0xff] }
  0xa1   :  { %334 = vmatprep.subr.mxu0 %v223_v38  ;;  %553 = vmatpush1.msra.mxu1 %v442_v49  ;;  %v477_v38 = vld [vmem:[#allocation4 + $0x188] sm:$0xff]  ;;  %v499_v47 = vld [vmem:[#allocation4 + $0x238] sm:$0xff]  ;;  %v498_v49 = vld [vmem:[#allocation4 + $0x230] sm:$0xff] }
  0xa2   :  { %335 = vmatpush2.msra.mxu0 %v222_v40  ;;  %554 = vmatprep.subr.mxu1 %v441_v51  ;;  %v475_v40 = vld [vmem:[#allocation4 + $0x178] sm:$0xff]  ;;  %v497_v51 = vld [vmem:[#allocation4 + $0x228] sm:$0xff] }
  0xa3   :  { %336 = vmatprep.subr.mxu0 %v220_v42  ;;  %555 = vmatpush1.msra.mxu1 %v440_v53  ;;  %v473_v42 = vld [vmem:[#allocation4 + $0x168] sm:$0xff]  ;;  %v496_v53 = vld [vmem:[#allocation4 + $0x220] sm:$0xff] }
  0xa4   :  { %337 = vmatpush2.msra.mxu0 %v219_v44  ;;  %556 = vmatprep.subr.mxu1 %v439_v54  ;;  %v472_v44 = vld [vmem:[#allocation4 + $0x160] sm:$0xff]  ;;  %v467_v54 = vld [vmem:[#allocation4 + $0x138] sm:$0xff] }
  0xa5   :  { %338 = vmatprep.subr.mxu0 %v217_v46  ;;  %557 = vmatpush1.msra.mxu1 %v438_v55  ;;  %v471_v46 = vld [vmem:[#allocation4 + $0x158] sm:$0xff] }
  0xa6   :  { %339 = vmatpush2.msra.mxu0 %v216_v48  ;;  %558 = vmatprep.subr.mxu1 %v437_v57  ;;  %v470_v48 = vld [vmem:[#allocation4 + $0x150] sm:$0xff]  ;;  %v495_v55 = vld [vmem:[#allocation4 + $0x218] sm:$0xff] }
  0xa7   :  { %340 = vmatprep.subr.mxu0 %v214_v50  ;;  %559 = vmatpush1.msra.mxu1 %v436_v59  ;;  %v469_v50 = vld [vmem:[#allocation4 + $0x148] sm:$0xff]  ;;  %v494_v57 = vld [vmem:[#allocation4 + $0x210] sm:$0xff] }
  0xa8   :  { %341 = vmatpush2.msra.mxu0 %v213_v52  ;;  %560 = vmatprep.subr.mxu1 %v435_v61  ;;  %v468_v52 = vld [vmem:[#allocation4 + $0x140] sm:$0xff]  ;;  %v493_v59 = vld [vmem:[#allocation4 + $0x208] sm:$0xff] }
  0xa9   :  { %343 = vmatmul.mubr.f32.vlgmr.msra.gmra.mxu0 %v2900_v12  ;;  %607 = vmatprep.subr.mxu0 %v523_v56  ;;  %v513_v12 = vld [vmem:[#allocation4 + $0x2a8] sm:$0xff]  ;;  %v466_v56 = vld [vmem:[#allocation4 + $0x130] sm:$0xff]  ;;  %v492_v61 = vld [vmem:[#allocation4 + $0x200] sm:$0xff] }
  0xaa   :  { %608 = vmatpush1.msra.mxu0 %v522_v58  ;;  %561 = vmatpush1.msra.mxu1 %v434_v63  ;;  %v465_v58 = vld [vmem:[#allocation4 + $0x128] sm:$0xff]  ;;  %v2761_v63 = vmov 0.0  }
  0xab   :  { %609 = vmatprep.subr.mxu0 %v521_v60  ;;  %562 = vmatprep.subr.mxu1 %v433_v1  ;;  %v464_v60 = vld [vmem:[#allocation4 + $0x120] sm:$0xff]  ;;  %v461_v1 = vld [vmem:[#allocation4 + $0x108] sm:$0xff] }
  0xac   :  { %610 = vmatpush1.msra.mxu0 %v520_v62  ;;  %563 = vmatpush1.msra.mxu1 %v432_v3  ;;  %v463_v62 = vld [vmem:[#allocation4 + $0x118] sm:$0xff] }
  0xad   :  { %611 = vmatprep.subr.mxu0 %v519_v0  ;;  %564 = vmatprep.subr.mxu1 %v431_v5  ;;  %v462_v0 = vld [vmem:[#allocation4 + $0x110] sm:$0xff]  ;;  %v715_v3 = vld [vmem:[#allocation6 + $0xf8] sm:$0xff] }
  0xae   :  { %612 = vmatpush1.msra.mxu0 %v518_v2  ;;  %565 = vmatpush1.msra.mxu1 %v430_v7  ;;  %v460_v2 = vld [vmem:[#allocation4 + $0x100] sm:$0xff] }
  0xaf   :  { %613 = vmatprep.subr.mxu0 %v517_v4  ;;  %566 = vmatprep.subr.mxu1 %v429_v9  ;;  %v263_v4 = vlaneseq  ;;  %v261_v7 = vld [vmem:[%s2990_s3] sm:$0x7] }
  0xb0   :  { %614 = vmatpush1.msra.mxu0 %v516_v6  ;;  %567 = vmatpush1.msra.mxu1 %v428_v11 }
  0xb1   :  { %615 = vmatprep.subr.mxu0 %v515_v8  ;;  %568 = vmatprep.subr.mxu1 %v491_v13  ;;  %v264_v5 = vshrl.u32 %v263_v4, 7  ;;  %v818_v4 = vld [vmem:[#allocation7 + $0xb0] sm:$0xff] }
  0xb2   :  { %616 = vmatpush1.msra.mxu0 %v514_v10  ;;  %569 = vmatpush2.msra.mxu1 %v490_v15 }
  0xb3   :  { %617 = vmatprep.subr.mxu0 %v513_v12  ;;  %570 = vmatprep.subr.mxu1 %v489_v17  ;;  %v273_v6 = vsub.s32 2, %v264_v5  ;;  %v698_v17 = vld [vmem:[#allocation6 + $0x70] sm:$0xff] }
  0xb4   :  { %618 = vmatpush1.msra.mxu0 %v512_v14  ;;  %571 = vmatpush2.msra.mxu1 %v488_v19  ;;  %v699_v14 = vld [vmem:[#allocation6 + $0x78] sm:$0xff]  ;;  %v697_v19 = vld [vmem:[#allocation6 + $0x68] sm:$0xff] }
  0xb5   :  { %619 = vmatprep.subr.mxu0 %v511_v16  ;;  %572 = vmatprep.subr.mxu1 %v487_v21  ;;  %v274_v9 = vrot.slane %v261_v7, %v273_v6  ;;  %v714_v16 = vld [vmem:[#allocation6 + $0xf0] sm:$0xff]  ;;  %v696_v21 = vld [vmem:[#allocation6 + $0x60] sm:$0xff] }
  0xb6   :  { %620 = vmatpush1.msra.mxu0 %v510_v18  ;;  %573 = vmatpush2.msra.mxu1 %v486_v23  ;;  %v713_v18 = vld [vmem:[#allocation6 + $0xe8] sm:$0xff]  ;;  %v711_v23 = vld [vmem:[#allocation6 + $0xd8] sm:$0xff]  ;;  %v816_v6 = vld [vmem:[#allocation7 + $0xa0] sm:$0xff] }
  0xb7   :  { %621 = vmatprep.subr.mxu0 %v509_v20  ;;  %574 = vmatprep.subr.mxu1 %v485_v25  ;;  %v712_v20 = vld [vmem:[#allocation6 + $0xe0] sm:$0xff]  ;;  %v2910_v25 = vsub.s32 1, %v264_v5 }
  0xb8   :  { %622 = vmatpush1.msra.mxu0 %v508_v22  ;;  %575 = vmatpush2.msra.mxu1 %v484_v27  ;;  %v2908_v22 = vsub.s32 0, %v264_v5  ;;  %v694_v27 = vld [vmem:[#allocation6 + $0x50] sm:$0xff]  ;;  %v817_v5 = vld [vmem:[#allocation7 + $0xa8] sm:$0xff] }
  0xb9   :  { %623 = vmatprep.subr.mxu0 %v507_v24  ;;  %576 = vmatprep.subr.mxu1 %v483_v29  ;;  %v695_v24 = vld [vmem:[#allocation6 + $0x58] sm:$0xff]  ;;  %v709_v29 = vld [vmem:[#allocation6 + $0xc8] sm:$0xff] }
  0xba   :  { %624 = vmatpush1.msra.mxu0 %v506_v26  ;;  %577 = vmatpush2.msra.mxu1 %v482_v31  ;;  %v710_v26 = vld [vmem:[#allocation6 + $0xd0] sm:$0xff]  ;;  %v270_v31 = vrot.slane %v261_v7, %v2910_v25 }
  0xbb   :  { %625 = vmatprep.subr.mxu0 %v505_v28  ;;  %578 = vmatprep.subr.mxu1 %v481_v33  ;;  %v266_v28 = vrot.slane %v261_v7, %v2908_v22  ;;  %v815_v7 = vld [vmem:[#allocation7 + $0x98] sm:$0xff] }
  0xbc   :  { %626 = vmatpush1.msra.mxu0 %v504_v30  ;;  %579 = vmatpush2.msra.mxu1 %v480_v35  ;;  %v693_v30 = vld [vmem:[#allocation6 + $0x48] sm:$0xff] }
  0xbd   :  { %627 = vmatprep.subr.mxu0 %v503_v32  ;;  %580 = vmatprep.subr.mxu1 %v479_v36  ;;  %v708_v32 = vld [vmem:[#allocation6 + $0xc0] sm:$0xff]  ;;  %v707_v36 = vld [vmem:[#allocation6 + $0xb8] sm:$0xff] }
  0xbe   :  { %628 = vmatpush1.msra.mxu0 %v502_v34  ;;  %581 = vmatpush2.msra.mxu1 %v478_v37  ;;  %v692_v34 = vld [vmem:[#allocation6 + $0x40] sm:$0xff] }
  0xbf   :  { %582 = vmatprep.subr.mxu1 %v477_v38  ;;  %629 = vmatprep.subr.mxu0 %v501_v43  ;;  %v691_v43 = vld [vmem:[#allocation6 + $0x38] sm:$0xff] }
  0xc0   :  { %583 = vmatpush2.msra.mxu1 %v476_v39  ;;  %630 = vmatpush1.msra.mxu0 %v500_v45  ;;  %v690_v45 = vld [vmem:[#allocation6 + $0x30] sm:$0xff] }
  0xc1   :  { %584 = vmatprep.subr.mxu1 %v475_v40  ;;  %631 = vmatprep.subr.mxu0 %v499_v47  ;;  %v689_v47 = vld [vmem:[#allocation6 + $0x28] sm:$0xff] }
  0xc2   :  { %585 = vmatpush2.msra.mxu1 %v474_v41  ;;  %632 = vmatpush1.msra.mxu0 %v498_v49  ;;  %v688_v49 = vld [vmem:[#allocation6 + $0x20] sm:$0xff] }
  0xc3   :  { %586 = vmatprep.subr.mxu1 %v473_v42  ;;  %633 = vmatprep.subr.mxu0 %v497_v51  ;;  %v687_v51 = vld [vmem:[#allocation6 + $0x18] sm:$0xff] }
  0xc4   :  { %587 = vmatpush2.msra.mxu1 %v472_v44  ;;  %634 = vmatpush1.msra.mxu0 %v496_v53  ;;  %v706_v44 = vld [vmem:[#allocation6 + $0xb0] sm:$0xff] }
  0xc5   :  { %588 = vmatprep.subr.mxu1 %v471_v46  ;;  %635 = vmatprep.subr.mxu0 %v495_v55  ;;  %v705_v46 = vld [vmem:[#allocation6 + $0xa8] sm:$0xff]  ;;  %v686_v53 = vld [vmem:[#allocation6 + $0x10] sm:$0xff] }
  0xc6   :  { %589 = vmatpush2.msra.mxu1 %v470_v48  ;;  %636 = vmatpush1.msra.mxu0 %v494_v57  ;;  %v704_v48 = vld [vmem:[#allocation6 + $0xa0] sm:$0xff]  ;;  %v685_v55 = vld [vmem:[#allocation6 + $0x8] sm:$0xff] }
  0xc7   :  { %590 = vmatprep.subr.mxu1 %v469_v50  ;;  %637 = vmatprep.subr.mxu0 %v493_v59  ;;  %v703_v50 = vld [vmem:[#allocation6 + $0x98] sm:$0xff]  ;;  %v684_v57 = vld [vmem:[#allocation6] sm:$0xff]  ;;  %v826_v59 = vld [vmem:[#allocation7 + $0xf0] sm:$0xff] }
  0xc8   :  { %591 = vmatpush2.msra.mxu1 %v468_v52  ;;  %638 = vmatpush1.msra.mxu0 %v492_v61  ;;  %v702_v52 = vld [vmem:[#allocation6 + $0x90] sm:$0xff]  ;;  %v824_v61 = vld [vmem:[#allocation7 + $0xe0] sm:$0xff] }
  0xc9   :  { %592 = vmatprep.subr.mxu1 %v467_v54  ;;  %671 = vmatprep.mubr.f32.mxu0 %v2761_v63  ;;  %v701_v54 = vld [vmem:[#allocation6 + $0x88] sm:$0xff] }
  0xca   :  { %593 = vmatpush2.msra.mxu1 %v466_v56  ;;  %2398 = vmatprep.subr.mxu0 %v715_v3  ;;  %v700_v56 = vld [vmem:[#allocation6 + $0x80] sm:$0xff]  ;;  %v819_v3 = vld [vmem:[#allocation7 + $0xb8] sm:$0xff] }
  0xcb   :  { %594 = vmatprep.subr.mxu1 %v465_v58  ;;  %v827_v58 = vld [vmem:[#allocation7 + $0xf8] sm:$0xff] }
  0xcc   :  { %595 = vmatpush2.msra.mxu1 %v464_v60  ;;  %v825_v60 = vld [vmem:[#allocation7 + $0xe8] sm:$0xff] }
  0xcd   :  { %596 = vmatprep.subr.mxu1 %v463_v62  ;;  %v823_v62 = vld [vmem:[#allocation7 + $0xd8] sm:$0xff] }
  0xce   :  { %597 = vmatpush2.msra.mxu1 %v462_v0  ;;  %v822_v0 = vld [vmem:[#allocation7 + $0xd0] sm:$0xff] }
  0xcf   :  { %598 = vmatprep.subr.mxu1 %v461_v1  ;;  %v821_v1 = vld [vmem:[#allocation7 + $0xc8] sm:$0xff] }
  0xd0   :  { %599 = vmatpush2.msra.mxu1 %v460_v2  ;;  %v820_v2 = vld [vmem:[#allocation7 + $0xc0] sm:$0xff] }
  0xd1   :  { %840 = vmatprep.subr.mxu1 %v827_v58  ;;  %v944_v58 = vld [vmem:[#allocation9 + $0xc0] sm:$0xff] }
 0x14e   :  { %v2395_v8 = vpop.f32.mrf.mxu1 }
 0x150   :  { %v2396_v10 = vpop.f32.mrf.mxu1 }
 0x151   :  { %v2397_v11 = vadd.f32 %v2396_v10, %v2395_v8  ;;  %v814_v8 = vld [vmem:[#allocation7 + $0x90] sm:$0xff]  ;;  %v812_v10 = vld [vmem:[#allocation7 + $0x80] sm:$0xff] }
 0x153   :  { %v416_v12 = vadd.f32 %v2397_v11, %v274_v9  ;;  %v813_v9 = vld [vmem:[#allocation7 + $0x88] sm:$0xff]  ;;  %v811_v11 = vld [vmem:[#allocation7 + $0x78] sm:$0xff] }
 0x155   :  { %v424_v13 = vmul.f32 0.2, %v416_v12  ;;  %vm421_vm0 = vcmp.ge.f32.partialorder %v416_v12, 0.0 }
 0x157   :  { %v427_v15 = vsel %vm421_vm0, %v416_v12, %v424_v13  ;;  %v810_v12 = vld [vmem:[#allocation7 + $0x70] sm:$0xff]  ;;  %v809_v13 = vld [vmem:[#allocation7 + $0x68] sm:$0xff] }
 0x158   :  { %672 = vmatmul.mubr.f32.vlgmr.msra.gmra.mxu0 %v427_v15  ;;  %v807_v15 = vld [vmem:[#allocation7 + $0x58] sm:$0xff] }
 0x159   :  { %2399 = vmatpush3.msra.mxu0 %v699_v14  ;;  %v808_v14 = vld [vmem:[#allocation7 + $0x60] sm:$0xff] }
 0x15a   :  { %2400 = vmatprep.subr.mxu0 %v714_v16  ;;  %v806_v16 = vld [vmem:[#allocation7 + $0x50] sm:$0xff] }
 0x15b   :  { %2401 = vmatpush3.msra.mxu0 %v698_v17  ;;  %v524_v17 = vld [vmem:[%s2992_s5] sm:$0x3] }
 0x15c   :  { %2402 = vmatprep.subr.mxu0 %v713_v18  ;;  %v529_v18 = vrot.slane %v524_v17, %v2908_v22 }
 0x15d   :  { %2403 = vmatpush3.msra.mxu0 %v697_v19  ;;  %v533_v19 = vrot.slane %v524_v17, %v2910_v25  ;;  %v922_v17 = vld [vmem:[#allocation9 + $0x10] sm:$0xff] }
 0x15e   :  { %2404 = vmatprep.subr.mxu0 %v712_v20 }
 0x15f   :  { %2405 = vmatpush3.msra.mxu0 %v696_v21 }
 0x160   :  { %2406 = vmatprep.subr.mxu0 %v711_v23 }
 0x161   :  { %2407 = vmatpush3.msra.mxu0 %v695_v24 }
 0x162   :  { %2408 = vmatprep.subr.mxu0 %v710_v26 }
 0x163   :  { %2409 = vmatpush3.msra.mxu0 %v694_v27 }
 0x164   :  { %2410 = vmatprep.subr.mxu0 %v709_v29 }
 0x165   :  { %2411 = vmatpush3.msra.mxu0 %v693_v30 }
 0x166   :  { %2412 = vmatprep.subr.mxu0 %v708_v32 }
 0x167   :  { %2413 = vmatpush3.msra.mxu0 %v692_v34  ;;  %v805_v34 = vld [vmem:[#allocation7 + $0x48] sm:$0xff] }
 0x168   :  { %2414 = vmatprep.subr.mxu0 %v707_v36  ;;  %v803_v36 = vld [vmem:[#allocation7 + $0x38] sm:$0xff] }
 0x169   :  { %v344_v33 = vpop.f32.mrf.mxu0  ;;  %2415 = vmatpush3.msra.mxu0 %v691_v43  ;;  %v796_v43 = vld [vmem:[#allocation7] sm:$0xff] }
 0x16a   :  { %v345_v35 = vadd.f32 %v344_v33, %v266_v28  ;;  %2416 = vmatprep.subr.mxu0 %v706_v44  ;;  %v951_v44 = vld [vmem:[#allocation9 + $0xf8] sm:$0xff] }
 0x16b   :  { %v346_v37 = vpop.f32.mrf.mxu0  ;;  %2417 = vmatpush3.msra.mxu0 %v690_v45  ;;  %v950_v45 = vld [vmem:[#allocation9 + $0xf0] sm:$0xff] }
 0x16c   :  { %v347_v38 = vadd.f32 %v346_v37, %v270_v31  ;;  %v422_v39 = vmul.f32 0.2, %v345_v35  ;;  %vm419_vm1 = vcmp.ge.f32.partialorder %v345_v35, 0.0  ;;  %2418 = vmatprep.subr.mxu0 %v705_v46  ;;  %v802_v37 = vld [vmem:[#allocation7 + $0x30] sm:$0xff]  ;;  %v949_v46 = vld [vmem:[#allocation9 + $0xe8] sm:$0xff] }
 0x16d   :  { %2419 = vmatpush3.msra.mxu0 %v689_v47  ;;  %v948_v47 = vld [vmem:[#allocation9 + $0xe0] sm:$0xff] }
 0x16e   :  { %v423_v40 = vmul.f32 0.2, %v347_v38  ;;  %vm420_vm2 = vcmp.ge.f32.partialorder %v347_v38, 0.0  ;;  %v425_v42 = vsel %vm419_vm1, %v345_v35, %v422_v39  ;;  %2420 = vmatprep.subr.mxu0 %v704_v48  ;;  %v804_v35 = vld [vmem:[#allocation7 + $0x40] sm:$0xff]  ;;  %v947_v48 = vld [vmem:[#allocation9 + $0xd8] sm:$0xff] }
 0x16f   :  { %2421 = vmatpush3.msra.mxu0 %v688_v49  ;;  %v800_v39 = vld [vmem:[#allocation7 + $0x20] sm:$0xff] }
 0x170   :  { %v426_v41 = vsel %vm420_vm2, %v347_v38, %v423_v40  ;;  %2422 = vmatprep.subr.mxu0 %v703_v50  ;;  %v801_v38 = vld [vmem:[#allocation7 + $0x28] sm:$0xff]  ;;  %v799_v40 = vld [vmem:[#allocation7 + $0x18] sm:$0xff]  ;;  %v2362_v50 = vld [vmem:[%s2994_s7] ss:$0 sm:$0xff] }
 0x171   :  { %600 = vmatprep.mubr.f32.mxu1 %v426_v41  ;;  %2423 = vmatpush3.msra.mxu0 %v687_v51  ;;  %v798_v41 = vld [vmem:[#allocation7 + $0x10] sm:$0xff] }
 0x172   :  { %601 = vmatmul.mubr.f32.vlgmr.msra.gmra.mxu1 %v425_v42  ;;  %2424 = vmatprep.subr.mxu0 %v702_v52  ;;  %v797_v42 = vld [vmem:[#allocation7 + $0x8] sm:$0xff] }
 0x173   :  { %904 = vmatprep.mubr.f32.mxu1 %v2761_v63  ;;  %2425 = vmatpush3.msra.mxu0 %v686_v53 }
 0x174   :  { %2426 = vmatprep.subr.mxu0 %v701_v54  ;;  %841 = vmatpush1.msra.mxu1 %v826_v59  ;;  %v943_v59 = vld [vmem:[#allocation9 + $0xb8] sm:$0xff] }
 0x175   :  { %2427 = vmatpush3.msra.mxu0 %v685_v55  ;;  %842 = vmatprep.subr.mxu1 %v825_v60  ;;  %v942_v60 = vld [vmem:[#allocation9 + $0xb0] sm:$0xff] }
 0x176   :  { %2428 = vmatprep.subr.mxu0 %v700_v56  ;;  %843 = vmatpush1.msra.mxu1 %v824_v61  ;;  %v946_v56 = vld [vmem:[#allocation9 + $0xd0] sm:$0xff]  ;;  %v941_v61 = vld [vmem:[#allocation9 + $0xa8] sm:$0xff] }
 0x177   :  { %2429 = vmatpush3.msra.mxu0 %v684_v57  ;;  %844 = vmatprep.subr.mxu1 %v823_v62  ;;  %v945_v57 = vld [vmem:[#allocation9 + $0xc8] sm:$0xff]  ;;  %v940_v62 = vld [vmem:[#allocation9 + $0xa0] sm:$0xff] }
 0x178   :  { %845 = vmatpush1.msra.mxu1 %v822_v0  ;;  %964 = vmatprep.subr.mxu0 %v951_v44  ;;  %v939_v0 = vld [vmem:[#allocation9 + $0x98] sm:$0xff] }
 0x179   :  { %846 = vmatprep.subr.mxu1 %v821_v1  ;;  %v938_v1 = vld [vmem:[#allocation9 + $0x90] sm:$0xff]  ;;  %v1050_v44 = vld [vmem:[#allocation10 + $0x78] sm:$0xff] }
 0x17a   :  { %847 = vmatpush1.msra.mxu1 %v820_v2  ;;  %v937_v2 = vld [vmem:[#allocation9 + $0x88] sm:$0xff] }
 0x17b   :  { %848 = vmatprep.subr.mxu1 %v819_v3  ;;  %v936_v3 = vld [vmem:[#allocation9 + $0x80] sm:$0xff] }
 0x17c   :  { %849 = vmatpush1.msra.mxu1 %v818_v4  ;;  %v935_v4 = vld [vmem:[#allocation9 + $0x78] sm:$0xff] }
 0x17d   :  { %850 = vmatprep.subr.mxu1 %v817_v5  ;;  %v934_v5 = vld [vmem:[#allocation9 + $0x70] sm:$0xff] }
 0x17e   :  { %851 = vmatpush1.msra.mxu1 %v816_v6  ;;  %v933_v6 = vld [vmem:[#allocation9 + $0x68] sm:$0xff] }
 0x17f   :  { %852 = vmatprep.subr.mxu1 %v815_v7  ;;  %v932_v7 = vld [vmem:[#allocation9 + $0x60] sm:$0xff] }
 0x180   :  { %853 = vmatpush1.msra.mxu1 %v814_v8  ;;  %v931_v8 = vld [vmem:[#allocation9 + $0x58] sm:$0xff] }
 0x181   :  { %854 = vmatprep.subr.mxu1 %v813_v9  ;;  %v930_v9 = vld [vmem:[#allocation9 + $0x50] sm:$0xff] }
 0x182   :  { %855 = vmatpush1.msra.mxu1 %v812_v10  ;;  %v929_v10 = vld [vmem:[#allocation9 + $0x48] sm:$0xff] }
 0x183   :  { %856 = vmatprep.subr.mxu1 %v811_v11  ;;  %v928_v11 = vld [vmem:[#allocation9 + $0x40] sm:$0xff] }
 0x184   :  { %857 = vmatpush1.msra.mxu1 %v810_v12  ;;  %v927_v12 = vld [vmem:[#allocation9 + $0x38] sm:$0xff] }
 0x185   :  { %858 = vmatprep.subr.mxu1 %v809_v13  ;;  %v926_v13 = vld [vmem:[#allocation9 + $0x30] sm:$0xff] }
 0x186   :  { %859 = vmatpush1.msra.mxu1 %v808_v14  ;;  %v925_v14 = vld [vmem:[#allocation9 + $0x28] sm:$0xff] }
 0x187   :  { %860 = vmatprep.subr.mxu1 %v807_v15  ;;  %v924_v15 = vld [vmem:[#allocation9 + $0x20] sm:$0xff] }
 0x188   :  { %861 = vmatpush1.msra.mxu1 %v806_v16  ;;  %v923_v16 = vld [vmem:[#allocation9 + $0x18] sm:$0xff] }
 0x189   :  { %862 = vmatprep.subr.mxu1 %v805_v34  ;;  %v1063_v34 = vld [vmem:[#allocation10 + $0xe0] sm:$0xff] }
 0x18a   :  { %863 = vmatpush1.msra.mxu1 %v804_v35  ;;  %v1062_v35 = vld [vmem:[#allocation10 + $0xd8] sm:$0xff] }
 0x18b   :  { %864 = vmatprep.subr.mxu1 %v803_v36  ;;  %v1130_v36 = vld [vmem:[#allocation10 + $0x2f8] sm:$0xff] }
 0x18c   :  { %865 = vmatpush1.msra.mxu1 %v802_v37  ;;  %v1060_v37 = vld [vmem:[#allocation10 + $0xc8] sm:$0xff] }
 0x18d   :  { %866 = vmatprep.subr.mxu1 %v801_v38  ;;  %v1059_v38 = vld [vmem:[#allocation10 + $0xc0] sm:$0xff] }
 0x18e   :  { %867 = vmatpush1.msra.mxu1 %v800_v39  ;;  %v1057_v39 = vld [vmem:[#allocation10 + $0xb0] sm:$0xff] }
 0x18f   :  { %868 = vmatprep.subr.mxu1 %v799_v40  ;;  %v1056_v40 = vld [vmem:[#allocation10 + $0xa8] sm:$0xff] }
 0x190   :  { %869 = vmatpush1.msra.mxu1 %v798_v41  ;;  %v1054_v41 = vld [vmem:[#allocation10 + $0x98] sm:$0xff] }
 0x191   :  { %870 = vmatprep.subr.mxu1 %v797_v42  ;;  %v1053_v42 = vld [vmem:[#allocation10 + $0x90] sm:$0xff] }
 0x192   :  { %871 = vmatpush1.msra.mxu1 %v796_v43  ;;  %v1051_v43 = vld [vmem:[#allocation10 + $0x80] sm:$0xff] }
 0x218   :  { %v673_v20 = vpop.f32.mrf.mxu0 }
 0x21a   :  { %v675_v28 = vpop.f32.mrf.mxu0 }
 0x232   :  { %v602_v21 = vpop.f32.mrf.mxu1 }
 0x233   :  { %v603_v23 = vadd.f32 %v602_v21, %v529_v18  ;;  %v921_v18 = vld [vmem:[#allocation9 + $0x8] sm:$0xff] }
 0x234   :  { %v604_v24 = vpop.f32.mrf.mxu1  ;;  %v1080_v21 = vld [vmem:[#allocation10 + $0x168] sm:$0xff] }
 0x235   :  { %v674_v26 = vadd.f32 %v673_v20, %v603_v23  ;;  %v605_v27 = vadd.f32 %v604_v24, %v533_v19  ;;  %v920_v19 = vld [vmem:[#allocation9] sm:$0xff]  ;;  %v1081_v20 = vld [vmem:[#allocation10 + $0x170] sm:$0xff]  ;;  %v1078_v23 = vld [vmem:[#allocation10 + $0x158] sm:$0xff] }
 0x236   :  { %1131 = vmatprep.subr.mxu1 %v1081_v20  ;;  %v1077_v24 = vld [vmem:[#allocation10 + $0x150] sm:$0xff] }
 0x237   :  { %v676_v29 = vadd.f32 %v675_v28, %v605_v27  ;;  %v680_v30 = vmul.f32 0.2, %v674_v26  ;;  %vm678_vm4 = vcmp.ge.f32.partialorder %v674_v26, 0.0  ;;  %v1074_v27 = vld [vmem:[#allocation10 + $0x138] sm:$0xff]  ;;  %v1072_v28 = vld [vmem:[#allocation10 + $0x128] sm:$0xff] }
 0x239   :  { %vm679_vm3 = vcmp.ge.f32.partialorder %v676_v29, 0.0  ;;  %v681_v31 = vmul.f32 0.2, %v676_v29  ;;  %v682_v33 = vsel %vm678_vm4, %v674_v26, %v680_v30  ;;  %v1075_v26 = vld [vmem:[#allocation10 + $0x140] sm:$0xff]  ;;  %v1069_v30 = vld [vmem:[#allocation10 + $0x110] sm:$0xff] }
 0x23b   :  { %v683_v32 = vsel %vm679_vm3, %v676_v29, %v681_v31  ;;  %v1071_v29 = vld [vmem:[#allocation10 + $0x120] sm:$0xff]  ;;  %v1068_v31 = vld [vmem:[#allocation10 + $0x108] sm:$0xff] }
 0x23c   :  { %787 = vmatprep.mubr.f32.mxu0 %v683_v32  ;;  %v1066_v32 = vld [vmem:[#allocation10 + $0xf8] sm:$0xff] }
 0x23d   :  { %788 = vmatmul.mubr.f32.vlgmr.msra.gmra.mxu0 %v682_v33  ;;  %v1065_v33 = vld [vmem:[#allocation10 + $0xf0] sm:$0xff] }
 0x23e   :  { %1028 = vmatprep.mubr.f32.mxu0 %v2761_v63  ;;  %965 = vmatpush1.msra.mxu0 %v950_v45  ;;  %v1048_v45 = vld [vmem:[#allocation10 + $0x68] sm:$0xff] }
 0x23f   :  { %966 = vmatprep.subr.mxu0 %v949_v46  ;;  %v1047_v46 = vld [vmem:[#allocation10 + $0x60] sm:$0xff] }
 0x240   :  { %967 = vmatpush1.msra.mxu0 %v948_v47  ;;  %v1045_v47 = vld [vmem:[#allocation10 + $0x50] sm:$0xff] }
 0x241   :  { %968 = vmatprep.subr.mxu0 %v947_v48  ;;  %v1044_v48 = vld [vmem:[#allocation10 + $0x48] sm:$0xff] }
 0x242   :  { %969 = vmatpush1.msra.mxu0 %v946_v56  ;;  %v1128_v56 = vld [vmem:[#allocation10 + $0x2e8] sm:$0xff] }
 0x243   :  { %970 = vmatprep.subr.mxu0 %v945_v57  ;;  %v1126_v57 = vld [vmem:[#allocation10 + $0x2d8] sm:$0xff] }
 0x244   :  { %971 = vmatpush1.msra.mxu0 %v944_v58  ;;  %v1125_v58 = vld [vmem:[#allocation10 + $0x2d0] sm:$0xff] }
 0x245   :  { %972 = vmatprep.subr.mxu0 %v943_v59  ;;  %v1123_v59 = vld [vmem:[#allocation10 + $0x2c0] sm:$0xff] }
 0x246   :  { %973 = vmatpush1.msra.mxu0 %v942_v60  ;;  %v1122_v60 = vld [vmem:[#allocation10 + $0x2b8] sm:$0xff] }
 0x247   :  { %974 = vmatprep.subr.mxu0 %v941_v61  ;;  %v1120_v61 = vld [vmem:[#allocation10 + $0x2a8] sm:$0xff] }
 0x248   :  { %975 = vmatpush1.msra.mxu0 %v940_v62  ;;  %v1119_v62 = vld [vmem:[#allocation10 + $0x2a0] sm:$0xff] }
 0x249   :  { %976 = vmatprep.subr.mxu0 %v939_v0  ;;  %v1117_v0 = vld [vmem:[#allocation10 + $0x290] sm:$0xff] }
 0x24a   :  { %977 = vmatpush1.msra.mxu0 %v938_v1  ;;  %v1116_v1 = vld [vmem:[#allocation10 + $0x288] sm:$0xff] }
 0x24b   :  { %978 = vmatprep.subr.mxu0 %v937_v2  ;;  %v1114_v2 = vld [vmem:[#allocation10 + $0x278] sm:$0xff] }
 0x24c   :  { %979 = vmatpush1.msra.mxu0 %v936_v3  ;;  %v1113_v3 = vld [vmem:[#allocation10 + $0x270] sm:$0xff] }
 0x24d   :  { %980 = vmatprep.subr.mxu0 %v935_v4  ;;  %v1111_v4 = vld [vmem:[#allocation10 + $0x260] sm:$0xff] }
 0x24e   :  { %981 = vmatpush1.msra.mxu0 %v934_v5  ;;  %v1110_v5 = vld [vmem:[#allocation10 + $0x258] sm:$0xff] }
 0x24f   :  { %982 = vmatprep.subr.mxu0 %v933_v6  ;;  %v1108_v6 = vld [vmem:[#allocation10 + $0x248] sm:$0xff] }
 0x250   :  { %983 = vmatpush1.msra.mxu0 %v932_v7  ;;  %v1107_v7 = vld [vmem:[#allocation10 + $0x240] sm:$0xff] }
 0x251   :  { %984 = vmatprep.subr.mxu0 %v931_v8  ;;  %v1105_v8 = vld [vmem:[#allocation10 + $0x230] sm:$0xff] }
 0x252   :  { %985 = vmatpush1.msra.mxu0 %v930_v9  ;;  %v1104_v9 = vld [vmem:[#allocation10 + $0x228] sm:$0xff] }
 0x253   :  { %986 = vmatprep.subr.mxu0 %v929_v10  ;;  %v1102_v10 = vld [vmem:[#allocation10 + $0x218] sm:$0xff] }
 0x254   :  { %987 = vmatpush1.msra.mxu0 %v928_v11  ;;  %v1101_v11 = vld [vmem:[#allocation10 + $0x210] sm:$0xff] }
 0x255   :  { %988 = vmatprep.subr.mxu0 %v927_v12  ;;  %v1099_v12 = vld [vmem:[#allocation10 + $0x200] sm:$0xff] }
 0x256   :  { %989 = vmatpush1.msra.mxu0 %v926_v13  ;;  %v1098_v13 = vld [vmem:[#allocation10 + $0x1f8] sm:$0xff] }
 0x257   :  { %990 = vmatprep.subr.mxu0 %v925_v14  ;;  %v1096_v14 = vld [vmem:[#allocation10 + $0x1e8] sm:$0xff] }
 0x258   :  { %991 = vmatpush1.msra.mxu0 %v924_v15  ;;  %v1095_v15 = vld [vmem:[#allocation10 + $0x1e0] sm:$0xff] }
 0x259   :  { %992 = vmatprep.subr.mxu0 %v923_v16  ;;  %v1093_v16 = vld [vmem:[#allocation10 + $0x1d0] sm:$0xff] }
 0x25a   :  { %993 = vmatpush1.msra.mxu0 %v922_v17  ;;  %v1092_v17 = vld [vmem:[#allocation10 + $0x1c8] sm:$0xff] }
 0x25b   :  { %994 = vmatprep.subr.mxu0 %v921_v18  ;;  %v828_v18 = vld [vmem:[%s2996_s9] sm:$0x3] }
 0x25c   :  { %995 = vmatpush1.msra.mxu0 %v920_v19  ;;  %v833_v19 = vrot.slane %v828_v18, %v2908_v22  ;;  %v837_v20 = vrot.slane %v828_v18, %v2910_v25  ;;  %v1352_v18 = vld [vmem:[#allocation12 + $0x238] sm:$0xff] }
 0x25d   :  { %2433 = vmatprep.subr.mxu0 %v1130_v36  ;;  %v1124_v36 = vld [vmem:[#allocation10 + $0x2c8] sm:$0xff] }
 0x2fd   :  { %v2430_v49 = vpop.f32.mrf.mxu0 }
 0x2ff   :  { %v2431_v51 = vpop.f32.mrf.mxu0 }
 0x300   :  { %v2432_v52 = vadd.f32 %v2431_v51, %v2430_v49  ;;  %v1042_v49 = vld [vmem:[#allocation10 + $0x38] sm:$0xff]  ;;  %v1039_v51 = vld [vmem:[#allocation10 + $0x20] sm:$0xff] }
 0x302   :  { %v790_v53 = vadd.f32 %v2432_v52, %v2362_v50  ;;  %v1041_v50 = vld [vmem:[#allocation10 + $0x30] sm:$0xff]  ;;  %v1038_v52 = vld [vmem:[#allocation10 + $0x18] sm:$0xff] }
 0x304   :  { %v794_v54 = vmul.f32 0.2, %v790_v53  ;;  %vm793_vm5 = vcmp.ge.f32.partialorder %v790_v53, 0.0 }
 0x306   :  { %v795_v55 = vsel %vm793_vm5, %v790_v53, %v794_v54  ;;  %v1036_v53 = vld [vmem:[#allocation10 + $0x8] sm:$0xff]  ;;  %v1035_v54 = vld [vmem:[#allocation10] sm:$0xff] }
 0x307   :  { %905 = vmatmul.mubr.f32.vlgmr.msra.gmra.mxu1 %v795_v55  ;;  %v1129_v55 = vld [vmem:[#allocation10 + $0x2f0] sm:$0xff] }
 0x308   :  { %1132 = vmatpush1.msra.mxu1 %v1080_v21 }
 0x309   :  { %1133 = vmatprep.subr.mxu1 %v1078_v23 }
 0x30a   :  { %1134 = vmatpush1.msra.mxu1 %v1077_v24 }
 0x30b   :  { %1135 = vmatprep.subr.mxu1 %v1075_v26 }
 0x30c   :  { %1136 = vmatpush1.msra.mxu1 %v1074_v27 }
 0x30d   :  { %1137 = vmatprep.subr.mxu1 %v1072_v28 }
 0x30e   :  { %1138 = vmatpush1.msra.mxu1 %v1071_v29  ;;  %v914_v29 = vld [vmem:[%s3012_s2] sm:$0xff] }
 0x30f   :  { %1139 = vmatprep.subr.mxu1 %v1069_v30 }
 0x310   :  { %1140 = vmatpush1.msra.mxu1 %v1068_v31 }
 0x311   :  { %1141 = vmatprep.subr.mxu1 %v1066_v32 }
 0x312   :  { %1142 = vmatpush1.msra.mxu1 %v1065_v33  ;;  %v1082_v33 = vld [vmem:[#allocation10 + $0x178] sm:$0xff] }
 0x313   :  { %1143 = vmatprep.subr.mxu1 %v1063_v34  ;;  %v1127_v34 = vld [vmem:[#allocation10 + $0x2e0] sm:$0xff] }
 0x314   :  { %1144 = vmatpush1.msra.mxu1 %v1062_v35  ;;  %v1079_v35 = vld [vmem:[#allocation10 + $0x160] sm:$0xff] }
 0x315   :  { %1145 = vmatprep.subr.mxu1 %v1060_v37  ;;  %v1076_v37 = vld [vmem:[#allocation10 + $0x148] sm:$0xff] }
 0x316   :  { %1146 = vmatpush1.msra.mxu1 %v1059_v38  ;;  %v1121_v38 = vld [vmem:[#allocation10 + $0x2b0] sm:$0xff] }
 0x317   :  { %1147 = vmatprep.subr.mxu1 %v1057_v39  ;;  %v1073_v39 = vld [vmem:[#allocation10 + $0x130] sm:$0xff] }
 0x318   :  { %1148 = vmatpush1.msra.mxu1 %v1056_v40  ;;  %v1118_v40 = vld [vmem:[#allocation10 + $0x298] sm:$0xff] }
 0x319   :  { %1149 = vmatprep.subr.mxu1 %v1054_v41  ;;  %v1070_v41 = vld [vmem:[#allocation10 + $0x118] sm:$0xff] }
 0x31a   :  { %1150 = vmatpush1.msra.mxu1 %v1053_v42  ;;  %v1115_v42 = vld [vmem:[#allocation10 + $0x280] sm:$0xff] }
 0x31b   :  { %1151 = vmatprep.subr.mxu1 %v1051_v43  ;;  %v1067_v43 = vld [vmem:[#allocation10 + $0x100] sm:$0xff] }
 0x31c   :  { %1152 = vmatpush1.msra.mxu1 %v1050_v44  ;;  %v1112_v44 = vld [vmem:[#allocation10 + $0x268] sm:$0xff] }
 0x31d   :  { %1153 = vmatprep.subr.mxu1 %v1048_v45  ;;  %v1064_v45 = vld [vmem:[#allocation10 + $0xe8] sm:$0xff] }
 0x31e   :  { %1154 = vmatpush1.msra.mxu1 %v1047_v46  ;;  %v1109_v46 = vld [vmem:[#allocation10 + $0x250] sm:$0xff] }
 0x31f   :  { %1155 = vmatprep.subr.mxu1 %v1045_v47  ;;  %v1061_v47 = vld [vmem:[#allocation10 + $0xd0] sm:$0xff] }
 0x320   :  { %1156 = vmatpush1.msra.mxu1 %v1044_v48  ;;  %v1106_v48 = vld [vmem:[#allocation10 + $0x238] sm:$0xff] }
 0x321   :  { %1157 = vmatprep.subr.mxu1 %v1042_v49  ;;  %v1058_v49 = vld [vmem:[#allocation10 + $0xb8] sm:$0xff] }
 0x322   :  { %1158 = vmatpush1.msra.mxu1 %v1041_v50  ;;  %v1103_v50 = vld [vmem:[#allocation10 + $0x220] sm:$0xff] }
 0x323   :  { %1159 = vmatprep.subr.mxu1 %v1039_v51  ;;  %v1055_v51 = vld [vmem:[#allocation10 + $0xa0] sm:$0xff] }
 0x324   :  { %1160 = vmatpush1.msra.mxu1 %v1038_v52  ;;  %v1100_v52 = vld [vmem:[#allocation10 + $0x208] sm:$0xff] }
 0x325   :  { %1161 = vmatprep.subr.mxu1 %v1036_v53  ;;  %v1052_v53 = vld [vmem:[#allocation10 + $0x88] sm:$0xff] }
 0x326   :  { %1162 = vmatpush1.msra.mxu1 %v1035_v54  ;;  %v1097_v54 = vld [vmem:[#allocation10 + $0x1f0] sm:$0xff] }
 0x327   :  { %1163 = vmatprep.subr.mxu1 %v1129_v55  ;;  %v1049_v55 = vld [vmem:[#allocation10 + $0x70] sm:$0xff] }
 0x328   :  { %1164 = vmatpush2.msra.mxu1 %v1128_v56  ;;  %v1094_v56 = vld [vmem:[#allocation10 + $0x1d8] sm:$0xff] }
 0x329   :  { %1165 = vmatprep.subr.mxu1 %v1126_v57  ;;  %v1046_v57 = vld [vmem:[#allocation10 + $0x58] sm:$0xff] }
 0x32a   :  { %1166 = vmatpush2.msra.mxu1 %v1125_v58  ;;  %v1090_v58 = vld [vmem:[#allocation10 + $0x1b8] sm:$0xff] }
 0x32b   :  { %1167 = vmatprep.subr.mxu1 %v1123_v59  ;;  %v1091_v59 = vld [vmem:[#allocation10 + $0x1c0] sm:$0xff] }
 0x32c   :  { %1168 = vmatpush2.msra.mxu1 %v1122_v60  ;;  %v1089_v60 = vld [vmem:[#allocation10 + $0x1b0] sm:$0xff] }
 0x32d   :  { %1169 = vmatprep.subr.mxu1 %v1120_v61  ;;  %v1043_v61 = vld [vmem:[#allocation10 + $0x40] sm:$0xff] }
 0x32e   :  { %1170 = vmatpush2.msra.mxu1 %v1119_v62  ;;  %v1087_v62 = vld [vmem:[#allocation10 + $0x1a0] sm:$0xff] }
 0x32f   :  { %1171 = vmatprep.subr.mxu1 %v1117_v0  ;;  %v1088_v0 = vld [vmem:[#allocation10 + $0x1a8] sm:$0xff] }
 0x330   :  { %1172 = vmatpush2.msra.mxu1 %v1116_v1  ;;  %v1086_v1 = vld [vmem:[#allocation10 + $0x198] sm:$0xff] }
 0x331   :  { %1173 = vmatprep.subr.mxu1 %v1114_v2  ;;  %v1040_v2 = vld [vmem:[#allocation10 + $0x28] sm:$0xff] }
 0x332   :  { %1174 = vmatpush2.msra.mxu1 %v1113_v3  ;;  %v1084_v3 = vld [vmem:[#allocation10 + $0x188] sm:$0xff] }
 0x333   :  { %1175 = vmatprep.subr.mxu1 %v1111_v4  ;;  %v1085_v4 = vld [vmem:[#allocation10 + $0x190] sm:$0xff] }
 0x334   :  { %1176 = vmatpush2.msra.mxu1 %v1110_v5  ;;  %v1083_v5 = vld [vmem:[#allocation10 + $0x180] sm:$0xff] }
 0x335   :  { %1177 = vmatprep.subr.mxu1 %v1108_v6  ;;  %v1037_v6 = vld [vmem:[#allocation10 + $0x10] sm:$0xff] }
 0x336   :  { %1178 = vmatpush2.msra.mxu1 %v1107_v7  ;;  %v1357_v7 = vld [vmem:[#allocation12 + $0x260] sm:$0xff] }
 0x337   :  { %1179 = vmatprep.subr.mxu1 %v1105_v8  ;;  %v1517_v8 = vld [vmem:[#allocation12 + $0x760] sm:$0xff] }
 0x338   :  { %1180 = vmatpush2.msra.mxu1 %v1104_v9  ;;  %v952_v9 = vld [vmem:[%s2998_s11] sm:$0x3] }
 0x339   :  { %1181 = vmatprep.subr.mxu1 %v1102_v10  ;;  %v961_v10 = vrot.slane %v952_v9, %v2910_v25  ;;  %v1507_v25 = vld [vmem:[#allocation12 + $0x710] sm:$0xff] }
 0x33a   :  { %1182 = vmatpush2.msra.mxu1 %v1101_v11  ;;  %v957_v11 = vrot.slane %v952_v9, %v2908_v22  ;;  %v1346_v22 = vld [vmem:[#allocation12 + $0x208] sm:$0xff]  ;;  %v1436_v9 = vld [vmem:[#allocation12 + $0x4d8] sm:$0xff] }
 0x33b   :  { %1183 = vmatprep.subr.mxu1 %v1099_v12 }
 0x33c   :  { %1184 = vmatpush2.msra.mxu1 %v1098_v13 }
 0x33d   :  { %1185 = vmatprep.subr.mxu1 %v1096_v14 }
 0x33e   :  { %1186 = vmatpush2.msra.mxu1 %v1095_v15 }
 0x33f   :  { %1187 = vmatprep.subr.mxu1 %v1093_v16  ;;  %v1356_v16 = vld [vmem:[#allocation12 + $0x258] sm:$0xff] }
 0x340   :  { %1188 = vmatpush2.msra.mxu1 %v1092_v17  ;;  %v1516_v17 = vld [vmem:[#allocation12 + $0x758] sm:$0xff] }
 0x341   :  { %1189 = vmatprep.subr.mxu1 %v1090_v58  ;;  %v1302_v58 = vld [vmem:[#allocation12 + $0xa8] sm:$0xff] }
 0x342   :  { %1190 = vmatpush2.msra.mxu1 %v1089_v60  ;;  %v1301_v60 = vld [vmem:[#allocation12 + $0xa0] sm:$0xff] }
 0x343   :  { %1191 = vmatprep.subr.mxu1 %v1087_v62  ;;  %v1297_v62 = vld [vmem:[#allocation12 + $0x80] sm:$0xff] }
 0x344   :  { %1192 = vmatpush2.msra.mxu1 %v1086_v1  ;;  %v1296_v1 = vld [vmem:[#allocation12 + $0x78] sm:$0xff] }
 0x345   :  { %1193 = vmatprep.subr.mxu1 %v1084_v3  ;;  %v1291_v3 = vld [vmem:[#allocation12 + $0x50] sm:$0xff] }
 0x346   :  { %1194 = vmatpush2.msra.mxu1 %v1083_v5  ;;  %v1286_v5 = vld [vmem:[#allocation12 + $0x28] sm:$0xff] }
 0x347   :  { %1592 = vmatprep.subr.mxu1 %v1517_v8  ;;  %v1437_v8 = vld [vmem:[#allocation12 + $0x4e0] sm:$0xff] }
 0x3c7   :  { %v906_v21 = vpop.f32.mrf.mxu1 }
 0x3c8   :  { %v907_v23 = vadd.f32 %v906_v21, %v833_v19  ;;  %v1512_v19 = vld [vmem:[#allocation12 + $0x738] sm:$0xff]  ;;  %v1511_v21 = vld [vmem:[#allocation12 + $0x730] sm:$0xff] }
 0x3c9   :  { %v908_v24 = vpop.f32.mrf.mxu1 }
 0x3ca   :  { %918 = vst [vmem:[%s3003_s16] sm:$0xff] %v907_v23  ;;  %v909_v26 = vadd.f32 %v908_v24, %v837_v20  ;;  %v1351_v20 = vld [vmem:[#allocation12 + $0x230] sm:$0xff]  ;;  %v1506_v24 = vld [vmem:[#allocation12 + $0x708] sm:$0xff] }
 0x3cc   :  { %v911_v27 = vmul.f32 0.5, %v909_v26  ;;  %919 = vst [vmem:[%s3004_s17] sm:$0xff] %v909_v26  ;;  %v1342_v26 = vld [vmem:[#allocation12 + $0x1e8] sm:$0xff] }
 0x3ce   :  { %v912_v28 = vmul.f32 1.442695, %v911_v27  ;;  %v1502_v27 = vld [vmem:[#allocation12 + $0x6e8] sm:$0xff] }
 0x3d0   :  { %2573 = vpow2.f32 %v912_v28  ;;  %v1341_v28 = vld [vmem:[#allocation12 + $0x1e0] sm:$0xff] }
 0x3dd   :  { %v2574_v30 = vpop.eup %2573 }
 0x3de   :  { %v915_v31 = vmul.f32 %v2574_v30, %v914_v29  ;;  %v1501_v29 = vld [vmem:[#allocation12 + $0x6e0] sm:$0xff] }
 0x3df   :  { %v1337_v30 = vld [vmem:[#allocation12 + $0x1c0] sm:$0xff] }
 0x3e0   :  { %v916_v32 = vadd.f32 %v915_v31, %v907_v23  ;;  %v1347_v23 = vld [vmem:[#allocation12 + $0x210] sm:$0xff]  ;;  %v1497_v31 = vld [vmem:[#allocation12 + $0x6c0] sm:$0xff] }
 0x3e2   :  { %917 = vst [vmem:[%s3002_s15] sm:$0xff] %v916_v32  ;;  %1029 = vmatmul.mubr.f32.vlgmr.msra.gmra.mxu0 %v916_v32  ;;  %v1336_v32 = vld [vmem:[#allocation12 + $0x1b8] sm:$0xff] }
 0x3e3   :  { %2434 = vmatpush3.msra.mxu0 %v1082_v33  ;;  %v1496_v33 = vld [vmem:[#allocation12 + $0x6b8] sm:$0xff] }
 0x3e4   :  { %2435 = vmatprep.subr.mxu0 %v1127_v34  ;;  %v1332_v34 = vld [vmem:[#allocation12 + $0x198] sm:$0xff] }
 0x3e5   :  { %2436 = vmatpush3.msra.mxu0 %v1079_v35  ;;  %v1492_v35 = vld [vmem:[#allocation12 + $0x698] sm:$0xff] }
 0x3e6   :  { %2437 = vmatprep.subr.mxu0 %v1124_v36  ;;  %v1331_v36 = vld [vmem:[#allocation12 + $0x190] sm:$0xff] }
 0x3e7   :  { %2438 = vmatpush3.msra.mxu0 %v1076_v37  ;;  %v1491_v37 = vld [vmem:[#allocation12 + $0x690] sm:$0xff] }
 0x3e8   :  { %2439 = vmatprep.subr.mxu0 %v1121_v38  ;;  %v1327_v38 = vld [vmem:[#allocation12 + $0x170] sm:$0xff] }
 0x3e9   :  { %2440 = vmatpush3.msra.mxu0 %v1073_v39  ;;  %v1487_v39 = vld [vmem:[#allocation12 + $0x670] sm:$0xff] }
 0x3ea   :  { %2441 = vmatprep.subr.mxu0 %v1118_v40  ;;  %v1326_v40 = vld [vmem:[#allocation12 + $0x168] sm:$0xff] }
 0x3eb   :  { %2442 = vmatpush3.msra.mxu0 %v1070_v41  ;;  %v1486_v41 = vld [vmem:[#allocation12 + $0x668] sm:$0xff] }
 0x3ec   :  { %2443 = vmatprep.subr.mxu0 %v1115_v42  ;;  %v1322_v42 = vld [vmem:[#allocation12 + $0x148] sm:$0xff] }
 0x3ed   :  { %2444 = vmatpush3.msra.mxu0 %v1067_v43  ;;  %v1482_v43 = vld [vmem:[#allocation12 + $0x648] sm:$0xff] }
 0x3ee   :  { %2445 = vmatprep.subr.mxu0 %v1112_v44  ;;  %v1321_v44 = vld [vmem:[#allocation12 + $0x140] sm:$0xff] }
 0x3ef   :  { %2446 = vmatpush3.msra.mxu0 %v1064_v45  ;;  %v1481_v45 = vld [vmem:[#allocation12 + $0x640] sm:$0xff] }
 0x3f0   :  { %2447 = vmatprep.subr.mxu0 %v1109_v46  ;;  %v1317_v46 = vld [vmem:[#allocation12 + $0x120] sm:$0xff] }
 0x3f1   :  { %2448 = vmatpush3.msra.mxu0 %v1061_v47  ;;  %v1477_v47 = vld [vmem:[#allocation12 + $0x620] sm:$0xff] }
 0x3f2   :  { %2449 = vmatprep.subr.mxu0 %v1106_v48  ;;  %v1316_v48 = vld [vmem:[#allocation12 + $0x118] sm:$0xff] }
 0x3f3   :  { %2450 = vmatpush3.msra.mxu0 %v1058_v49  ;;  %v1476_v49 = vld [vmem:[#allocation12 + $0x618] sm:$0xff] }
 0x3f4   :  { %2451 = vmatprep.subr.mxu0 %v1103_v50  ;;  %v1312_v50 = vld [vmem:[#allocation12 + $0xf8] sm:$0xff] }
 0x3f5   :  { %2452 = vmatpush3.msra.mxu0 %v1055_v51  ;;  %v1472_v51 = vld [vmem:[#allocation12 + $0x5f8] sm:$0xff] }
 0x3f6   :  { %2453 = vmatprep.subr.mxu0 %v1100_v52  ;;  %v1311_v52 = vld [vmem:[#allocation12 + $0xf0] sm:$0xff] }
 0x3f7   :  { %2454 = vmatpush3.msra.mxu0 %v1052_v53  ;;  %v1471_v53 = vld [vmem:[#allocation12 + $0x5f0] sm:$0xff] }
 0x3f8   :  { %2455 = vmatprep.subr.mxu0 %v1097_v54  ;;  %v1307_v54 = vld [vmem:[#allocation12 + $0xd0] sm:$0xff] }
 0x3f9   :  { %2456 = vmatpush3.msra.mxu0 %v1049_v55  ;;  %v1467_v55 = vld [vmem:[#allocation12 + $0x5d0] sm:$0xff] }
 0x3fa   :  { %2457 = vmatprep.subr.mxu0 %v1094_v56  ;;  %v1306_v56 = vld [vmem:[#allocation12 + $0xc8] sm:$0xff] }
 0x3fb   :  { %2458 = vmatpush3.msra.mxu0 %v1046_v57  ;;  %v1466_v57 = vld [vmem:[#allocation12 + $0x5c8] sm:$0xff] }
 0x3fc   :  { %2459 = vmatprep.subr.mxu0 %v1091_v59  ;;  %v1462_v59 = vld [vmem:[#allocation12 + $0x5a8] sm:$0xff] }
 0x3fd   :  { %2460 = vmatpush3.msra.mxu0 %v1043_v61  ;;  %v1461_v61 = vld [vmem:[#allocation12 + $0x5a0] sm:$0xff] }
 0x3fe   :  { %2461 = vmatprep.subr.mxu0 %v1088_v0  ;;  %v1457_v0 = vld [vmem:[#allocation12 + $0x580] sm:$0xff] }
 0x3ff   :  { %2462 = vmatpush3.msra.mxu0 %v1040_v2  ;;  %v1292_v2 = vld [vmem:[#allocation12 + $0x58] sm:$0xff] }
 0x400   :  { %2463 = vmatprep.subr.mxu0 %v1085_v4  ;;  %v1287_v4 = vld [vmem:[#allocation12 + $0x30] sm:$0xff] }
 0x401   :  { %2464 = vmatpush3.msra.mxu0 %v1037_v6  ;;  %v1282_v6 = vld [vmem:[#allocation12 + $0x8] sm:$0xff] }
 0x402   :  { %1521 = vmatprep.subr.mxu0 %v1357_v7  ;;  %v1281_v7 = vld [vmem:[#allocation12] sm:$0xff] }
 0x4a2   :  { %v1030_v12 = vpop.f32.mrf.mxu0 }
 0x4a3   :  { %v1031_v15 = vadd.f32 %v1030_v12, %v957_v11  ;;  %v1431_v11 = vld [vmem:[#allocation12 + $0x4b0] sm:$0xff] }
 0x4a4   :  { %v1032_v13 = vpop.f32.mrf.mxu0  ;;  %v1427_v12 = vld [vmem:[#allocation12 + $0x490] sm:$0xff] }
 0x4a5   :  { %v1033_v14 = vadd.f32 %v1032_v13, %v961_v10  ;;  %v1432_v10 = vld [vmem:[#allocation12 + $0x4b8] sm:$0xff]  ;;  %v1426_v13 = vld [vmem:[#allocation12 + $0x488] sm:$0xff] }
 0x4a7   :  { %1195 = vmatprep.mubr.f32.mxu1 %v1033_v14  ;;  %1266 = vmatprep.mubr.f32.mxu0 %v1033_v14  ;;  %v1422_v14 = vld [vmem:[#allocation12 + $0x468] sm:$0xff] }
 0x4a8   :  { %1196 = vmatmul.mubr.f32.vlgmr.msra.gmra.mxu1 %v1031_v15  ;;  %1267 = vmatmul.mubr.f32.vlgmr.msra.gmra.mxu0 %v1031_v15  ;;  %v1421_v15 = vld [vmem:[#allocation12 + $0x460] sm:$0xff] }
 0x4a9   :  { %1522 = vmatpush1.msra.mxu0 %v1356_v16  ;;  %1593 = vmatpush1.msra.mxu1 %v1516_v17  ;;  %v1417_v16 = vld [vmem:[#allocation12 + $0x440] sm:$0xff]  ;;  %v1416_v17 = vld [vmem:[#allocation12 + $0x438] sm:$0xff] }
 0x4aa   :  { %1523 = vmatprep.subr.mxu0 %v1352_v18  ;;  %1594 = vmatprep.subr.mxu1 %v1512_v19  ;;  %v1412_v18 = vld [vmem:[#allocation12 + $0x418] sm:$0xff]  ;;  %v1411_v19 = vld [vmem:[#allocation12 + $0x410] sm:$0xff] }
 0x4ab   :  { %1524 = vmatpush1.msra.mxu0 %v1351_v20  ;;  %1595 = vmatpush1.msra.mxu1 %v1511_v21  ;;  %v1407_v20 = vld [vmem:[#allocation12 + $0x3f0] sm:$0xff]  ;;  %v1406_v21 = vld [vmem:[#allocation12 + $0x3e8] sm:$0xff] }
 0x4ac   :  { %1525 = vmatprep.subr.mxu0 %v1347_v23  ;;  %1596 = vmatprep.subr.mxu1 %v1507_v25  ;;  %v1402_v23 = vld [vmem:[#allocation12 + $0x3c8] sm:$0xff]  ;;  %v1401_v25 = vld [vmem:[#allocation12 + $0x3c0] sm:$0xff] }
 0x4ad   :  { %1526 = vmatpush1.msra.mxu0 %v1346_v22  ;;  %1597 = vmatpush1.msra.mxu1 %v1506_v24  ;;  %v1397_v22 = vld [vmem:[#allocation12 + $0x3a0] sm:$0xff]  ;;  %v1396_v24 = vld [vmem:[#allocation12 + $0x398] sm:$0xff] }
 0x4ae   :  { %1527 = vmatprep.subr.mxu0 %v1342_v26  ;;  %1598 = vmatprep.subr.mxu1 %v1502_v27  ;;  %v1392_v26 = vld [vmem:[#allocation12 + $0x378] sm:$0xff]  ;;  %v1391_v27 = vld [vmem:[#allocation12 + $0x370] sm:$0xff] }
 0x4af   :  { %1528 = vmatpush1.msra.mxu0 %v1341_v28  ;;  %1599 = vmatpush1.msra.mxu1 %v1501_v29  ;;  %v1387_v28 = vld [vmem:[#allocation12 + $0x350] sm:$0xff]  ;;  %v1386_v29 = vld [vmem:[#allocation12 + $0x348] sm:$0xff] }
 0x4b0   :  { %1529 = vmatprep.subr.mxu0 %v1337_v30  ;;  %1600 = vmatprep.subr.mxu1 %v1497_v31  ;;  %v1382_v30 = vld [vmem:[#allocation12 + $0x328] sm:$0xff]  ;;  %v1381_v31 = vld [vmem:[#allocation12 + $0x320] sm:$0xff] }
 0x4b1   :  { %1530 = vmatpush1.msra.mxu0 %v1336_v32  ;;  %1601 = vmatpush1.msra.mxu1 %v1496_v33  ;;  %v1377_v32 = vld [vmem:[#allocation12 + $0x300] sm:$0xff]  ;;  %v1376_v33 = vld [vmem:[#allocation12 + $0x2f8] sm:$0xff] }
 0x4b2   :  { %1531 = vmatprep.subr.mxu0 %v1332_v34  ;;  %1602 = vmatprep.subr.mxu1 %v1492_v35  ;;  %v1372_v34 = vld [vmem:[#allocation12 + $0x2d8] sm:$0xff] }
 0x4b3   :  { %1532 = vmatpush1.msra.mxu0 %v1331_v36  ;;  %1603 = vmatpush1.msra.mxu1 %v1491_v37  ;;  %v1456_v35 = vld [vmem:[#allocation12 + $0x578] sm:$0xff]  ;;  %v1371_v36 = vld [vmem:[#allocation12 + $0x2d0] sm:$0xff] }
 0x4b4   :  { %1533 = vmatprep.subr.mxu0 %v1327_v38  ;;  %1604 = vmatprep.subr.mxu1 %v1487_v39  ;;  %v1452_v37 = vld [vmem:[#allocation12 + $0x558] sm:$0xff]  ;;  %v1367_v38 = vld [vmem:[#allocation12 + $0x2b0] sm:$0xff] }
 0x4b5   :  { %1534 = vmatpush1.msra.mxu0 %v1326_v40  ;;  %1605 = vmatpush1.msra.mxu1 %v1486_v41  ;;  %v1451_v39 = vld [vmem:[#allocation12 + $0x550] sm:$0xff]  ;;  %v1366_v40 = vld [vmem:[#allocation12 + $0x2a8] sm:$0xff] }
 0x4b6   :  { %1535 = vmatprep.subr.mxu0 %v1322_v42  ;;  %1606 = vmatprep.subr.mxu1 %v1482_v43  ;;  %v1447_v41 = vld [vmem:[#allocation12 + $0x530] sm:$0xff]  ;;  %v1362_v42 = vld [vmem:[#allocation12 + $0x288] sm:$0xff] }
 0x4b7   :  { %1536 = vmatpush1.msra.mxu0 %v1321_v44  ;;  %1607 = vmatpush1.msra.mxu1 %v1481_v45  ;;  %v1446_v43 = vld [vmem:[#allocation12 + $0x528] sm:$0xff]  ;;  %v1361_v44 = vld [vmem:[#allocation12 + $0x280] sm:$0xff] }
 0x4b8   :  { %1537 = vmatprep.subr.mxu0 %v1317_v46  ;;  %1608 = vmatprep.subr.mxu1 %v1477_v47  ;;  %v1442_v45 = vld [vmem:[#allocation12 + $0x508] sm:$0xff]  ;;  %v1441_v46 = vld [vmem:[#allocation12 + $0x500] sm:$0xff]  ;;  %v1519_v47 = vld [vmem:[#allocation12 + $0x770] sm:$0xff] }
 0x4b9   :  { %1538 = vmatpush1.msra.mxu0 %v1316_v48  ;;  %1609 = vmatpush1.msra.mxu1 %v1476_v49  ;;  %v1359_v48 = vld [vmem:[#allocation12 + $0x270] sm:$0xff] }
 0x4ba   :  { %1539 = vmatprep.subr.mxu0 %v1312_v50  ;;  %1610 = vmatprep.subr.mxu1 %v1472_v51 }
 0x4bb   :  { %1540 = vmatpush1.msra.mxu0 %v1311_v52  ;;  %1611 = vmatpush1.msra.mxu1 %v1471_v53 }
 0x4bc   :  { %1541 = vmatprep.subr.mxu0 %v1307_v54  ;;  %1612 = vmatprep.subr.mxu1 %v1467_v55 }
 0x4bd   :  { %1542 = vmatpush1.msra.mxu0 %v1306_v56  ;;  %1613 = vmatpush1.msra.mxu1 %v1466_v57 }
 0x4be   :  { %1543 = vmatprep.subr.mxu0 %v1302_v58  ;;  %1614 = vmatprep.subr.mxu1 %v1462_v59  ;;  %v1518_v58 = vld [vmem:[#allocation12 + $0x768] sm:$0xff] }
 0x4bf   :  { %1544 = vmatpush1.msra.mxu0 %v1301_v60  ;;  %1615 = vmatpush1.msra.mxu1 %v1461_v61  ;;  %v1358_v60 = vld [vmem:[#allocation12 + $0x268] sm:$0xff] }
 0x4c0   :  { %1545 = vmatprep.subr.mxu0 %v1297_v62  ;;  %1616 = vmatprep.subr.mxu1 %v1457_v0  ;;  %v1514_v61 = vld [vmem:[#allocation12 + $0x748] sm:$0xff] }
 0x4c1   :  { %1546 = vmatpush1.msra.mxu0 %v1296_v1  ;;  %1656 = vmatprep.mubr.f32.mxu1 %v2761_v63  ;;  %v1354_v0 = vld [vmem:[#allocation12 + $0x248] sm:$0xff]  ;;  %v1513_v1 = vld [vmem:[#allocation12 + $0x740] sm:$0xff] }
 0x4c2   :  { %1547 = vmatprep.subr.mxu0 %v1292_v2  ;;  %1617 = vmatpush1.msra.mxu1 %v1456_v35  ;;  %v1353_v2 = vld [vmem:[#allocation12 + $0x240] sm:$0xff] }
 0x4c3   :  { %1548 = vmatpush1.msra.mxu0 %v1291_v3  ;;  %1618 = vmatprep.subr.mxu1 %v1452_v37  ;;  %v1509_v3 = vld [vmem:[#allocation12 + $0x720] sm:$0xff]  ;;  %v1468_v37 = vld [vmem:[#allocation12 + $0x5d8] sm:$0xff] }
 0x4c4   :  { %1549 = vmatprep.subr.mxu0 %v1287_v4  ;;  %1619 = vmatpush1.msra.mxu1 %v1451_v39  ;;  %v1349_v4 = vld [vmem:[#allocation12 + $0x220] sm:$0xff]  ;;  %v1464_v39 = vld [vmem:[#allocation12 + $0x5b8] sm:$0xff] }
 0x4c5   :  { %1550 = vmatpush1.msra.mxu0 %v1286_v5  ;;  %1620 = vmatprep.subr.mxu1 %v1447_v41  ;;  %v1508_v5 = vld [vmem:[#allocation12 + $0x718] sm:$0xff]  ;;  %v1469_v35 = vld [vmem:[#allocation12 + $0x5e0] sm:$0xff]  ;;  %v1463_v41 = vld [vmem:[#allocation12 + $0x5b0] sm:$0xff] }
 0x4c6   :  { %1551 = vmatprep.subr.mxu0 %v1282_v6  ;;  %1621 = vmatpush1.msra.mxu1 %v1446_v43  ;;  %v1348_v6 = vld [vmem:[#allocation12 + $0x218] sm:$0xff]  ;;  %v1459_v43 = vld [vmem:[#allocation12 + $0x590] sm:$0xff] }
 0x4c7   :  { %1552 = vmatpush1.msra.mxu0 %v1281_v7  ;;  %1622 = vmatprep.subr.mxu1 %v1442_v45  ;;  %v1504_v7 = vld [vmem:[#allocation12 + $0x6f8] sm:$0xff]  ;;  %v1458_v45 = vld [vmem:[#allocation12 + $0x588] sm:$0xff] }
 0x4c8   :  { %1553 = vmatprep.subr.mxu0 %v1437_v8  ;;  %1623 = vmatpush1.msra.mxu1 %v1441_v46  ;;  %v1344_v8 = vld [vmem:[#allocation12 + $0x1f8] sm:$0xff]  ;;  %v1298_v46 = vld [vmem:[#allocation12 + $0x88] sm:$0xff] }
 0x4c9   :  { %1554 = vmatpush2.msra.mxu0 %v1436_v9  ;;  %1663 = vmatprep.subr.mxu1 %v1359_v48  ;;  %v1503_v9 = vld [vmem:[#allocation12 + $0x6f0] sm:$0xff]  ;;  %v1294_v48 = vld [vmem:[#allocation12 + $0x68] sm:$0xff] }
 0x4ca   :  { %1555 = vmatprep.subr.mxu0 %v1432_v10  ;;  %v1343_v10 = vld [vmem:[#allocation12 + $0x1f0] sm:$0xff] }
 0x4cb   :  { %1556 = vmatpush2.msra.mxu0 %v1431_v11  ;;  %v1499_v11 = vld [vmem:[#allocation12 + $0x6d0] sm:$0xff] }
 0x4cc   :  { %1557 = vmatprep.subr.mxu0 %v1427_v12  ;;  %v1339_v12 = vld [vmem:[#allocation12 + $0x1d0] sm:$0xff] }
 0x4cd   :  { %1558 = vmatpush2.msra.mxu0 %v1426_v13  ;;  %v1498_v13 = vld [vmem:[#allocation12 + $0x6c8] sm:$0xff] }
 0x4ce   :  { %1559 = vmatprep.subr.mxu0 %v1422_v14  ;;  %v1338_v14 = vld [vmem:[#allocation12 + $0x1c8] sm:$0xff] }
 0x4cf   :  { %1560 = vmatpush2.msra.mxu0 %v1421_v15  ;;  %v1494_v15 = vld [vmem:[#allocation12 + $0x6a8] sm:$0xff] }
 0x4d0   :  { %1561 = vmatprep.subr.mxu0 %v1417_v16  ;;  %v1334_v16 = vld [vmem:[#allocation12 + $0x1a8] sm:$0xff] }
 0x4d1   :  { %1562 = vmatpush2.msra.mxu0 %v1416_v17  ;;  %v1493_v17 = vld [vmem:[#allocation12 + $0x6a0] sm:$0xff] }
 0x4d2   :  { %1563 = vmatprep.subr.mxu0 %v1412_v18  ;;  %v1333_v18 = vld [vmem:[#allocation12 + $0x1a0] sm:$0xff] }
 0x4d3   :  { %1564 = vmatpush2.msra.mxu0 %v1411_v19  ;;  %v1489_v19 = vld [vmem:[#allocation12 + $0x680] sm:$0xff] }
 0x4d4   :  { %1565 = vmatprep.subr.mxu0 %v1407_v20  ;;  %v1329_v20 = vld [vmem:[#allocation12 + $0x180] sm:$0xff] }
 0x4d5   :  { %1566 = vmatpush2.msra.mxu0 %v1406_v21  ;;  %v1488_v21 = vld [vmem:[#allocation12 + $0x678] sm:$0xff] }
 0x4d6   :  { %1567 = vmatprep.subr.mxu0 %v1402_v23  ;;  %v1328_v23 = vld [vmem:[#allocation12 + $0x178] sm:$0xff] }
 0x4d7   :  { %1568 = vmatpush2.msra.mxu0 %v1401_v25  ;;  %v1484_v25 = vld [vmem:[#allocation12 + $0x658] sm:$0xff] }
 0x4d8   :  { %1569 = vmatprep.subr.mxu0 %v1397_v22  ;;  %v1324_v22 = vld [vmem:[#allocation12 + $0x158] sm:$0xff] }
 0x4d9   :  { %1570 = vmatpush2.msra.mxu0 %v1396_v24  ;;  %v1483_v24 = vld [vmem:[#allocation12 + $0x650] sm:$0xff] }
 0x4da   :  { %1571 = vmatprep.subr.mxu0 %v1392_v26  ;;  %v1323_v26 = vld [vmem:[#allocation12 + $0x150] sm:$0xff] }
 0x4db   :  { %1572 = vmatpush2.msra.mxu0 %v1391_v27  ;;  %v1479_v27 = vld [vmem:[#allocation12 + $0x630] sm:$0xff] }
 0x4dc   :  { %1573 = vmatprep.subr.mxu0 %v1387_v28  ;;  %v1319_v28 = vld [vmem:[#allocation12 + $0x130] sm:$0xff] }
 0x4dd   :  { %1574 = vmatpush2.msra.mxu0 %v1386_v29  ;;  %v1478_v29 = vld [vmem:[#allocation12 + $0x628] sm:$0xff] }
 0x4de   :  { %1575 = vmatprep.subr.mxu0 %v1382_v30  ;;  %v1318_v30 = vld [vmem:[#allocation12 + $0x128] sm:$0xff] }
 0x4df   :  { %1576 = vmatpush2.msra.mxu0 %v1381_v31  ;;  %v1474_v31 = vld [vmem:[#allocation12 + $0x608] sm:$0xff] }
 0x4e0   :  { %1577 = vmatprep.subr.mxu0 %v1377_v32  ;;  %v1314_v32 = vld [vmem:[#allocation12 + $0x108] sm:$0xff] }
 0x4e1   :  { %1578 = vmatpush2.msra.mxu0 %v1376_v33  ;;  %v1473_v33 = vld [vmem:[#allocation12 + $0x600] sm:$0xff] }
 0x4e2   :  { %1579 = vmatprep.subr.mxu0 %v1372_v34  ;;  %v1313_v34 = vld [vmem:[#allocation12 + $0x100] sm:$0xff] }
 0x4e3   :  { %1580 = vmatpush2.msra.mxu0 %v1371_v36  ;;  %v1309_v36 = vld [vmem:[#allocation12 + $0xe0] sm:$0xff] }
 0x4e4   :  { %1581 = vmatprep.subr.mxu0 %v1367_v38  ;;  %v1308_v38 = vld [vmem:[#allocation12 + $0xd8] sm:$0xff] }
 0x4e5   :  { %1582 = vmatpush2.msra.mxu0 %v1366_v40  ;;  %v1304_v40 = vld [vmem:[#allocation12 + $0xb8] sm:$0xff] }
 0x4e6   :  { %1583 = vmatprep.subr.mxu0 %v1362_v42  ;;  %v1303_v42 = vld [vmem:[#allocation12 + $0xb0] sm:$0xff] }
 0x4e7   :  { %1584 = vmatpush2.msra.mxu0 %v1361_v44  ;;  %v1299_v44 = vld [vmem:[#allocation12 + $0x90] sm:$0xff] }
 0x4e8   :  { %1734 = vmatprep.subr.mxu0 %v1519_v47  ;;  %v1454_v47 = vld [vmem:[#allocation12 + $0x568] sm:$0xff] }
 0x568   :  { %v1197_v49 = vpop.f32.mrf.mxu1  ;;  %v2465_v50 = vpop.f32.mrf.mxu0 }
 0x569   :  { %v1275_v51 = vmul.f32 0.2, %v1197_v49  ;;  %vm1272_vm6 = vcmp.ge.f32.partialorder %v1197_v49, 0.0 }
 0x56a   :  { %v1199_v52 = vpop.f32.mrf.mxu1  ;;  %v2466_v53 = vpop.f32.mrf.mxu0 }
 0x56b   :  { %vm1273_vm7 = vcmp.ge.f32.partialorder %v1199_v52, 0.0  ;;  %v1276_v54 = vmul.f32 0.2, %v1199_v52  ;;  %v2467_v55 = vadd.f32 %v2466_v53, %v2465_v50  ;;  %v2950_v59 = vsel %vm1272_vm6, %v1197_v49, %v1275_v51  ;;  %v1453_v49 = vld [vmem:[#allocation12 + $0x560] sm:$0xff]  ;;  %v1448_v53 = vld [vmem:[#allocation12 + $0x538] sm:$0xff] }
 0x56c   :  { %v1293_v50 = vld [vmem:[#allocation12 + $0x60] sm:$0xff] }
 0x56d   :  { %vm1274_vm8 = vcmp.ge.f32.partialorder %v2467_v55, 0.0  ;;  %v1277_v56 = vmul.f32 0.2, %v2467_v55  ;;  %v2947_v57 = vsel %vm1273_vm7, %v1199_v52, %v1276_v54  ;;  %v1449_v51 = vld [vmem:[#allocation12 + $0x540] sm:$0xff]  ;;  %v1288_v54 = vld [vmem:[#allocation12 + $0x38] sm:$0xff] }
 0x56e   :  { %1585 = vmatprep.mubr.f32.mxu0 %v2947_v57  ;;  %v1289_v52 = vld [vmem:[#allocation12 + $0x40] sm:$0xff] }
 0x56f   :  { %1586 = vmatmul.mubr.f32.vlgmr.msra.gmra.mxu0 %v2950_v59  ;;  %v2953_v62 = vsel %vm1274_vm8, %v2467_v55, %v1277_v56  ;;  %v1444_v55 = vld [vmem:[#allocation12 + $0x518] sm:$0xff] }
 0x570   :  { %1735 = vmatpush1.msra.mxu0 %v1518_v58  ;;  %1657 = vmatmul.mubr.f32.vlgmr.msra.gmra.mxu1 %v2953_v62  ;;  %v1284_v56 = vld [vmem:[#allocation12 + $0x18] sm:$0xff]  ;;  %v1443_v58 = vld [vmem:[#allocation12 + $0x510] sm:$0xff] }
 0x571   :  { %1664 = vmatpush1.msra.mxu1 %v1358_v60  ;;  %1736 = vmatprep.subr.mxu0 %v1514_v61  ;;  %v1283_v60 = vld [vmem:[#allocation12 + $0x10] sm:$0xff]  ;;  %v1440_v61 = vld [vmem:[#allocation12 + $0x4f8] sm:$0xff] }
 0x572   :  { %1665 = vmatprep.subr.mxu1 %v1354_v0  ;;  %1727 = vmatprep.mubr.f32.mxu1 %v2947_v57  ;;  %v1439_v0 = vld [vmem:[#allocation12 + $0x4f0] sm:$0xff] }
 0x573   :  { %1737 = vmatpush1.msra.mxu0 %v1513_v1  ;;  %1666 = vmatpush1.msra.mxu1 %v1353_v2  ;;  %v1360_v1 = vld [vmem:[#allocation12 + $0x278] sm:$0xff]  ;;  %v1438_v2 = vld [vmem:[#allocation12 + $0x4e8] sm:$0xff] }
 0x574   :  { %1738 = vmatprep.subr.mxu0 %v1509_v3  ;;  %1667 = vmatprep.subr.mxu1 %v1349_v4  ;;  %v1435_v3 = vld [vmem:[#allocation12 + $0x4d0] sm:$0xff]  ;;  %v1434_v4 = vld [vmem:[#allocation12 + $0x4c8] sm:$0xff] }
 0x575   :  { %1739 = vmatpush1.msra.mxu0 %v1508_v5  ;;  %1668 = vmatpush1.msra.mxu1 %v1348_v6  ;;  %v1355_v5 = vld [vmem:[#allocation12 + $0x250] sm:$0xff]  ;;  %v1433_v6 = vld [vmem:[#allocation12 + $0x4c0] sm:$0xff] }
 0x576   :  { %1740 = vmatprep.subr.mxu0 %v1504_v7  ;;  %1669 = vmatprep.subr.mxu1 %v1344_v8  ;;  %v1430_v7 = vld [vmem:[#allocation12 + $0x4a8] sm:$0xff]  ;;  %v1429_v8 = vld [vmem:[#allocation12 + $0x4a0] sm:$0xff] }
 0x577   :  { %1741 = vmatpush1.msra.mxu0 %v1503_v9  ;;  %1670 = vmatpush1.msra.mxu1 %v1343_v10  ;;  %v1350_v9 = vld [vmem:[#allocation12 + $0x228] sm:$0xff]  ;;  %v1428_v10 = vld [vmem:[#allocation12 + $0x498] sm:$0xff] }
 0x578   :  { %1742 = vmatprep.subr.mxu0 %v1499_v11  ;;  %1671 = vmatprep.subr.mxu1 %v1339_v12  ;;  %v1425_v11 = vld [vmem:[#allocation12 + $0x480] sm:$0xff]  ;;  %v1424_v12 = vld [vmem:[#allocation12 + $0x478] sm:$0xff] }
 0x579   :  { %1743 = vmatpush1.msra.mxu0 %v1498_v13  ;;  %1672 = vmatpush1.msra.mxu1 %v1338_v14  ;;  %v1345_v13 = vld [vmem:[#allocation12 + $0x200] sm:$0xff]  ;;  %v1423_v14 = vld [vmem:[#allocation12 + $0x470] sm:$0xff] }
 0x57a   :  { %1744 = vmatprep.subr.mxu0 %v1494_v15  ;;  %1673 = vmatprep.subr.mxu1 %v1334_v16  ;;  %v1420_v15 = vld [vmem:[#allocation12 + $0x458] sm:$0xff] }
 0x57b   :  { %1745 = vmatpush1.msra.mxu0 %v1493_v17  ;;  %1674 = vmatpush1.msra.mxu1 %v1333_v18  ;;  %v1340_v16 = vld [vmem:[#allocation12 + $0x1d8] sm:$0xff]  ;;  %v1418_v17 = vld [vmem:[#allocation12 + $0x448] sm:$0xff]  ;;  %v1415_v18 = vld [vmem:[#allocation12 + $0x430] sm:$0xff] }
 0x57c   :  { %1746 = vmatprep.subr.mxu0 %v1489_v19  ;;  %1675 = vmatprep.subr.mxu1 %v1329_v20  ;;  %v1414_v19 = vld [vmem:[#allocation12 + $0x428] sm:$0xff]  ;;  %v1335_v20 = vld [vmem:[#allocation12 + $0x1b0] sm:$0xff] }
 0x57d   :  { %1747 = vmatpush1.msra.mxu0 %v1488_v21  ;;  %1676 = vmatpush1.msra.mxu1 %v1328_v23  ;;  %v1413_v21 = vld [vmem:[#allocation12 + $0x420] sm:$0xff]  ;;  %v1410_v23 = vld [vmem:[#allocation12 + $0x408] sm:$0xff] }
 0x57e   :  { %1748 = vmatprep.subr.mxu0 %v1484_v25  ;;  %1677 = vmatprep.subr.mxu1 %v1324_v22  ;;  %v1409_v25 = vld [vmem:[#allocation12 + $0x400] sm:$0xff]  ;;  %v1330_v22 = vld [vmem:[#allocation12 + $0x188] sm:$0xff] }
 0x57f   :  { %1749 = vmatpush1.msra.mxu0 %v1483_v24  ;;  %1678 = vmatpush1.msra.mxu1 %v1323_v26  ;;  %v1408_v24 = vld [vmem:[#allocation12 + $0x3f8] sm:$0xff]  ;;  %v1405_v26 = vld [vmem:[#allocation12 + $0x3e0] sm:$0xff] }
 0x580   :  { %1750 = vmatprep.subr.mxu0 %v1479_v27  ;;  %1679 = vmatprep.subr.mxu1 %v1319_v28  ;;  %v1404_v27 = vld [vmem:[#allocation12 + $0x3d8] sm:$0xff]  ;;  %v1325_v28 = vld [vmem:[#allocation12 + $0x160] sm:$0xff] }
 0x581   :  { %1751 = vmatpush1.msra.mxu0 %v1478_v29  ;;  %1680 = vmatpush1.msra.mxu1 %v1318_v30  ;;  %v1403_v29 = vld [vmem:[#allocation12 + $0x3d0] sm:$0xff]  ;;  %v1400_v30 = vld [vmem:[#allocation12 + $0x3b8] sm:$0xff] }
 0x582   :  { %1752 = vmatprep.subr.mxu0 %v1474_v31  ;;  %1681 = vmatprep.subr.mxu1 %v1314_v32  ;;  %v1399_v31 = vld [vmem:[#allocation12 + $0x3b0] sm:$0xff]  ;;  %v1320_v32 = vld [vmem:[#allocation12 + $0x138] sm:$0xff] }
 0x583   :  { %1753 = vmatpush1.msra.mxu0 %v1473_v33  ;;  %1682 = vmatpush1.msra.mxu1 %v1313_v34  ;;  %v1398_v33 = vld [vmem:[#allocation12 + $0x3a8] sm:$0xff]  ;;  %v1395_v34 = vld [vmem:[#allocation12 + $0x390] sm:$0xff] }
 0x584   :  { %1754 = vmatprep.subr.mxu0 %v1469_v35  ;;  %1683 = vmatprep.subr.mxu1 %v1309_v36  ;;  %v1394_v35 = vld [vmem:[#allocation12 + $0x388] sm:$0xff]  ;;  %v1315_v36 = vld [vmem:[#allocation12 + $0x110] sm:$0xff] }
 0x585   :  { %1755 = vmatpush1.msra.mxu0 %v1468_v37  ;;  %1684 = vmatpush1.msra.mxu1 %v1308_v38  ;;  %v1393_v37 = vld [vmem:[#allocation12 + $0x380] sm:$0xff]  ;;  %v1390_v38 = vld [vmem:[#allocation12 + $0x368] sm:$0xff] }
 0x586   :  { %1756 = vmatprep.subr.mxu0 %v1464_v39  ;;  %1685 = vmatprep.subr.mxu1 %v1304_v40  ;;  %v1389_v39 = vld [vmem:[#allocation12 + $0x360] sm:$0xff]  ;;  %v1310_v40 = vld [vmem:[#allocation12 + $0xe8] sm:$0xff] }
 0x587   :  { %1757 = vmatpush1.msra.mxu0 %v1463_v41  ;;  %1686 = vmatpush1.msra.mxu1 %v1303_v42  ;;  %v1388_v41 = vld [vmem:[#allocation12 + $0x358] sm:$0xff]  ;;  %v1385_v42 = vld [vmem:[#allocation12 + $0x340] sm:$0xff] }
 0x588   :  { %1758 = vmatprep.subr.mxu0 %v1459_v43  ;;  %1687 = vmatprep.subr.mxu1 %v1299_v44  ;;  %v1384_v43 = vld [vmem:[#allocation12 + $0x338] sm:$0xff]  ;;  %v1305_v44 = vld [vmem:[#allocation12 + $0xc0] sm:$0xff] }
 0x589   :  { %1759 = vmatpush1.msra.mxu0 %v1458_v45  ;;  %1688 = vmatpush1.msra.mxu1 %v1298_v46  ;;  %v1383_v45 = vld [vmem:[#allocation12 + $0x330] sm:$0xff]  ;;  %v1380_v46 = vld [vmem:[#allocation12 + $0x318] sm:$0xff] }
 0x58a   :  { %1760 = vmatprep.subr.mxu0 %v1454_v47  ;;  %1689 = vmatprep.subr.mxu1 %v1294_v48  ;;  %v1379_v47 = vld [vmem:[#allocation12 + $0x310] sm:$0xff]  ;;  %v1300_v48 = vld [vmem:[#allocation12 + $0x98] sm:$0xff] }
 0x58b   :  { %1761 = vmatpush1.msra.mxu0 %v1453_v49  ;;  %1690 = vmatpush1.msra.mxu1 %v1293_v50  ;;  %v1378_v49 = vld [vmem:[#allocation12 + $0x308] sm:$0xff]  ;;  %v1375_v50 = vld [vmem:[#allocation12 + $0x2f0] sm:$0xff] }
 0x58c   :  { %1762 = vmatprep.subr.mxu0 %v1449_v51  ;;  %1691 = vmatprep.subr.mxu1 %v1289_v52  ;;  %v1374_v51 = vld [vmem:[#allocation12 + $0x2e8] sm:$0xff]  ;;  %v1295_v52 = vld [vmem:[#allocation12 + $0x70] sm:$0xff] }
 0x58d   :  { %1763 = vmatpush1.msra.mxu0 %v1448_v53  ;;  %1692 = vmatpush1.msra.mxu1 %v1288_v54  ;;  %v1373_v53 = vld [vmem:[#allocation12 + $0x2e0] sm:$0xff]  ;;  %v1370_v54 = vld [vmem:[#allocation12 + $0x2c8] sm:$0xff] }
 0x58e   :  { %1764 = vmatprep.subr.mxu0 %v1444_v55  ;;  %1693 = vmatprep.subr.mxu1 %v1284_v56  ;;  %v1369_v55 = vld [vmem:[#allocation12 + $0x2c0] sm:$0xff]  ;;  %v1290_v56 = vld [vmem:[#allocation12 + $0x48] sm:$0xff] }
 0x58f   :  { %1765 = vmatpush1.msra.mxu0 %v1443_v58  ;;  %1798 = vmatprep.mubr.f32.mxu0 %v2761_v63  ;;  %v1368_v58 = vld [vmem:[#allocation12 + $0x2b8] sm:$0xff] }
 0x590   :  { %1694 = vmatpush1.msra.mxu1 %v1283_v60  ;;  %1799 = vmatmul.mubr.f32.vlgmr.msra.gmra.mxu0 %v2953_v62  ;;  %v1365_v60 = vld [vmem:[#allocation12 + $0x2a0] sm:$0xff] }
 0x591   :  { %2468 = vmatprep.subr.mxu0 %v1440_v61  ;;  %1695 = vmatprep.subr.mxu1 %v1439_v0  ;;  %v1364_v61 = vld [vmem:[#allocation12 + $0x298] sm:$0xff]  ;;  %v1285_v0 = vld [vmem:[#allocation12 + $0x20] sm:$0xff] }
 0x592   :  { %2469 = vmatpush3.msra.mxu0 %v1360_v1  ;;  %1869 = vmatprep.mubr.f32.mxu0 %v2947_v57  ;;  %v1419_v57 = vld [vmem:[#allocation12 + $0x450] sm:$0xff] }
 0x593   :  { %1696 = vmatpush2.msra.mxu1 %v1438_v2  ;;  %2470 = vmatprep.subr.mxu0 %v1435_v3  ;;  %v1363_v1 = vld [vmem:[#allocation12 + $0x290] sm:$0xff]  ;;  %v1520_v2 = vld [vmem:[#allocation12 + $0x778] sm:$0xff] }
 0x594   :  { %1697 = vmatprep.subr.mxu1 %v1434_v4  ;;  %2471 = vmatpush3.msra.mxu0 %v1355_v5  ;;  %v1991_v3 = vld [vmem:[#allocation13 + $0xf8] sm:$0xff]  ;;  %v1515_v4 = vld [vmem:[#allocation12 + $0x750] sm:$0xff] }
 0x595   :  { %1698 = vmatpush2.msra.mxu1 %v1433_v6  ;;  %2472 = vmatprep.subr.mxu0 %v1430_v7  ;;  %v1990_v5 = vld [vmem:[#allocation13 + $0xf0] sm:$0xff]  ;;  %v1989_v6 = vld [vmem:[#allocation13 + $0xe8] sm:$0xff] }
 0x596   :  { %1699 = vmatprep.subr.mxu1 %v1429_v8  ;;  %2473 = vmatpush3.msra.mxu0 %v1350_v9  ;;  %v1510_v7 = vld [vmem:[#allocation12 + $0x728] sm:$0xff]  ;;  %v1988_v8 = vld [vmem:[#allocation13 + $0xe0] sm:$0xff]  ;;  %v1987_v9 = vld [vmem:[#allocation13 + $0xd8] sm:$0xff] }
 0x597   :  { %1700 = vmatpush2.msra.mxu1 %v1428_v10  ;;  %2474 = vmatprep.subr.mxu0 %v1425_v11  ;;  %v1986_v10 = vld [vmem:[#allocation13 + $0xd0] sm:$0xff]  ;;  %v1985_v11 = vld [vmem:[#allocation13 + $0xc8] sm:$0xff] }
 0x598   :  { %1701 = vmatprep.subr.mxu1 %v1424_v12  ;;  %2475 = vmatpush3.msra.mxu0 %v1345_v13  ;;  %v1500_v12 = vld [vmem:[#allocation12 + $0x6d8] sm:$0xff]  ;;  %v1984_v13 = vld [vmem:[#allocation13 + $0xc0] sm:$0xff] }
 0x599   :  { %1702 = vmatpush2.msra.mxu1 %v1423_v14  ;;  %2476 = vmatprep.subr.mxu0 %v1420_v15  ;;  %v1983_v14 = vld [vmem:[#allocation13 + $0xb8] sm:$0xff]  ;;  %v1495_v15 = vld [vmem:[#allocation12 + $0x6b0] sm:$0xff] }
 0x59a   :  { %1703 = vmatprep.subr.mxu1 %v1419_v57  ;;  %2477 = vmatpush3.msra.mxu0 %v1340_v16  ;;  %v1982_v57 = vld [vmem:[#allocation13 + $0xb0] sm:$0xff]  ;;  %v1981_v16 = vld [vmem:[#allocation13 + $0xa8] sm:$0xff] }
 0x59b   :  { %1704 = vmatpush2.msra.mxu1 %v1418_v17  ;;  %2478 = vmatprep.subr.mxu0 %v1415_v18  ;;  %v1490_v17 = vld [vmem:[#allocation12 + $0x688] sm:$0xff]  ;;  %v1980_v18 = vld [vmem:[#allocation13 + $0xa0] sm:$0xff] }
 0x59c   :  { %1705 = vmatprep.subr.mxu1 %v1414_v19  ;;  %2479 = vmatpush3.msra.mxu0 %v1335_v20  ;;  %v1979_v19 = vld [vmem:[#allocation13 + $0x98] sm:$0xff]  ;;  %v1485_v20 = vld [vmem:[#allocation12 + $0x660] sm:$0xff] }
 0x59d   :  { %1706 = vmatpush2.msra.mxu1 %v1413_v21  ;;  %2480 = vmatprep.subr.mxu0 %v1410_v23  ;;  %v1978_v21 = vld [vmem:[#allocation13 + $0x90] sm:$0xff]  ;;  %v1977_v23 = vld [vmem:[#allocation13 + $0x88] sm:$0xff] }
 0x59e   :  { %1707 = vmatprep.subr.mxu1 %v1409_v25  ;;  %2481 = vmatpush3.msra.mxu0 %v1330_v22  ;;  %v1480_v25 = vld [vmem:[#allocation12 + $0x638] sm:$0xff]  ;;  %v1976_v22 = vld [vmem:[#allocation13 + $0x80] sm:$0xff] }
 0x59f   :  { %1708 = vmatpush2.msra.mxu1 %v1408_v24  ;;  %2482 = vmatprep.subr.mxu0 %v1405_v26  ;;  %v1975_v24 = vld [vmem:[#allocation13 + $0x78] sm:$0xff]  ;;  %v1475_v26 = vld [vmem:[#allocation12 + $0x610] sm:$0xff] }
 0x5a0   :  { %1709 = vmatprep.subr.mxu1 %v1404_v27  ;;  %2483 = vmatpush3.msra.mxu0 %v1325_v28  ;;  %v1974_v27 = vld [vmem:[#allocation13 + $0x70] sm:$0xff]  ;;  %v1973_v28 = vld [vmem:[#allocation13 + $0x68] sm:$0xff] }
 0x5a1   :  { %1710 = vmatpush2.msra.mxu1 %v1403_v29  ;;  %2484 = vmatprep.subr.mxu0 %v1400_v30  ;;  %v1470_v29 = vld [vmem:[#allocation12 + $0x5e8] sm:$0xff]  ;;  %v1972_v30 = vld [vmem:[#allocation13 + $0x60] sm:$0xff] }
 0x5a2   :  { %1711 = vmatprep.subr.mxu1 %v1399_v31  ;;  %2485 = vmatpush3.msra.mxu0 %v1320_v32  ;;  %v1971_v31 = vld [vmem:[#allocation13 + $0x58] sm:$0xff]  ;;  %v1465_v32 = vld [vmem:[#allocation12 + $0x5c0] sm:$0xff] }
 0x5a3   :  { %1712 = vmatpush2.msra.mxu1 %v1398_v33  ;;  %2486 = vmatprep.subr.mxu0 %v1395_v34  ;;  %v1970_v33 = vld [vmem:[#allocation13 + $0x50] sm:$0xff]  ;;  %v1969_v34 = vld [vmem:[#allocation13 + $0x48] sm:$0xff] }
 0x5a4   :  { %1713 = vmatprep.subr.mxu1 %v1394_v35  ;;  %2487 = vmatpush3.msra.mxu0 %v1315_v36  ;;  %v1460_v35 = vld [vmem:[#allocation12 + $0x598] sm:$0xff]  ;;  %v1968_v36 = vld [vmem:[#allocation13 + $0x40] sm:$0xff] }
 0x5a5   :  { %1714 = vmatpush2.msra.mxu1 %v1393_v37  ;;  %2488 = vmatprep.subr.mxu0 %v1390_v38  ;;  %v1967_v37 = vld [vmem:[#allocation13 + $0x38] sm:$0xff]  ;;  %v1455_v38 = vld [vmem:[#allocation12 + $0x570] sm:$0xff] }
 0x5a6   :  { %1715 = vmatprep.subr.mxu1 %v1389_v39  ;;  %2489 = vmatpush3.msra.mxu0 %v1310_v40  ;;  %v1966_v39 = vld [vmem:[#allocation13 + $0x30] sm:$0xff]  ;;  %v1965_v40 = vld [vmem:[#allocation13 + $0x28] sm:$0xff] }
 0x5a7   :  { %1716 = vmatpush2.msra.mxu1 %v1388_v41  ;;  %2490 = vmatprep.subr.mxu0 %v1385_v42  ;;  %v1450_v41 = vld [vmem:[#allocation12 + $0x548] sm:$0xff]  ;;  %v1964_v42 = vld [vmem:[#allocation13 + $0x20] sm:$0xff] }
 0x5a8   :  { %1717 = vmatprep.subr.mxu1 %v1384_v43  ;;  %2491 = vmatpush3.msra.mxu0 %v1305_v44  ;;  %v1963_v43 = vld [vmem:[#allocation13 + $0x18] sm:$0xff]  ;;  %v1445_v44 = vld [vmem:[#allocation12 + $0x520] sm:$0xff] }
 0x5a9   :  { %1718 = vmatpush2.msra.mxu1 %v1383_v45  ;;  %2492 = vmatprep.subr.mxu0 %v1380_v46  ;;  %v1962_v45 = vld [vmem:[#allocation13 + $0x10] sm:$0xff]  ;;  %v1961_v46 = vld [vmem:[#allocation13 + $0x8] sm:$0xff] }
 0x5aa   :  { %1719 = vmatprep.subr.mxu1 %v1379_v47  ;;  %2493 = vmatpush3.msra.mxu0 %v1300_v48  ;;  %v1960_v47 = vld [vmem:[#allocation13] sm:$0xff]  ;;  %v2055_v48 = vld [vmem:[#allocation13 + $0x2f8] sm:$0xff] }
 0x5ab   :  { %1720 = vmatpush2.msra.mxu1 %v1378_v49  ;;  %2494 = vmatprep.subr.mxu0 %v1375_v50  ;;  %v2023_v49 = vld [vmem:[#allocation13 + $0x1f8] sm:$0xff]  ;;  %v2054_v50 = vld [vmem:[#allocation13 + $0x2f0] sm:$0xff] }
 0x5ac   :  { %1721 = vmatprep.subr.mxu1 %v1374_v51  ;;  %2495 = vmatpush3.msra.mxu0 %v1295_v52  ;;  %v2022_v51 = vld [vmem:[#allocation13 + $0x1f0] sm:$0xff]  ;;  %v2053_v52 = vld [vmem:[#allocation13 + $0x2e8] sm:$0xff] }
 0x5ad   :  { %1722 = vmatpush2.msra.mxu1 %v1373_v53  ;;  %2496 = vmatprep.subr.mxu0 %v1370_v54  ;;  %v2021_v53 = vld [vmem:[#allocation13 + $0x1e8] sm:$0xff]  ;;  %v2052_v54 = vld [vmem:[#allocation13 + $0x2e0] sm:$0xff] }
 0x5ae   :  { %1723 = vmatprep.subr.mxu1 %v1369_v55  ;;  %2497 = vmatpush3.msra.mxu0 %v1290_v56  ;;  %v2020_v55 = vld [vmem:[#allocation13 + $0x1e0] sm:$0xff]  ;;  %v2051_v56 = vld [vmem:[#allocation13 + $0x2d8] sm:$0xff] }
 0x5af   :  { %1724 = vmatpush2.msra.mxu1 %v1368_v58  ;;  %2498 = vmatprep.subr.mxu0 %v1365_v60  ;;  %v2019_v58 = vld [vmem:[#allocation13 + $0x1d8] sm:$0xff]  ;;  %v2050_v60 = vld [vmem:[#allocation13 + $0x2d0] sm:$0xff] }
 0x5b0   :  { %1725 = vmatprep.subr.mxu1 %v1364_v61  ;;  %2499 = vmatpush3.msra.mxu0 %v1285_v0  ;;  %v2018_v61 = vld [vmem:[#allocation13 + $0x1d0] sm:$0xff]  ;;  %v2049_v0 = vld [vmem:[#allocation13 + $0x2c8] sm:$0xff] }
 0x5b1   :  { %1726 = vmatpush2.msra.mxu1 %v1363_v1  ;;  %1870 = vmatmul.mubr.f32.vlgmr.msra.gmra.mxu0 %v2950_v59  ;;  %v2048_v1 = vld [vmem:[#allocation13 + $0x2c0] sm:$0xff] }
 0x5b2   :  { %1728 = vmatmul.mubr.f32.vlgmr.msra.gmra.mxu1 %v2950_v59  ;;  %2520 = vmatprep.subr.mxu1 %v2761_v63  ;;  %v1505_v59 = vld [vmem:[#allocation12 + $0x700] sm:$0xff] }
 0x5b3   :  { %2521 = vmatpush3.msra.mxu1 %v1520_v2  ;;  %2552 = vmatprep.mubr.msk.f32.mxu1 %vm2762_vm9, %v2761_v63  ;;  %v2016_v2 = vld [vmem:[#allocation13 + $0x1c0] sm:$0xff] }
 0x5b4   :  { %2522 = vmatprep.subr.mxu1 %v2761_v63  ;;  %2120 = vmatprep.subr.mxu0 %v1991_v3  ;;  %v2047_v3 = vld [vmem:[#allocation13 + $0x2b8] sm:$0xff] }
 0x5b5   :  { %2523 = vmatpush3.msra.mxu1 %v1515_v4  ;;  %2121 = vmatpush1.msra.mxu0 %v1990_v5  ;;  %v2015_v4 = vld [vmem:[#allocation13 + $0x1b8] sm:$0xff]  ;;  %v2046_v5 = vld [vmem:[#allocation13 + $0x2b0] sm:$0xff] }
 0x5b6   :  { %2524 = vmatprep.subr.mxu1 %v2761_v63  ;;  %2122 = vmatprep.subr.mxu0 %v1989_v6  ;;  %v2014_v6 = vld [vmem:[#allocation13 + $0x1b0] sm:$0xff] }
 0x5b7   :  { %2525 = vmatpush3.msra.mxu1 %v1510_v7  ;;  %2123 = vmatpush1.msra.mxu0 %v1988_v8  ;;  %v2045_v7 = vld [vmem:[#allocation13 + $0x2a8] sm:$0xff] }
 0x5b8   :  { %2526 = vmatprep.subr.mxu1 %v2761_v63  ;;  %2124 = vmatprep.subr.mxu0 %v1987_v9  ;;  %v2013_v8 = vld [vmem:[#allocation13 + $0x1a8] sm:$0xff]  ;;  %v2044_v9 = vld [vmem:[#allocation13 + $0x2a0] sm:$0xff] }
 0x5b9   :  { %2527 = vmatpush3.msra.mxu1 %v1505_v59  ;;  %2125 = vmatpush1.msra.mxu0 %v1986_v10  ;;  %v2012_v59 = vld [vmem:[#allocation13 + $0x1a0] sm:$0xff]  ;;  %v2043_v10 = vld [vmem:[#allocation13 + $0x298] sm:$0xff] }
 0x5ba   :  { %2528 = vmatprep.subr.mxu1 %v2761_v63  ;;  %2126 = vmatprep.subr.mxu0 %v1985_v11  ;;  %v2011_v11 = vld [vmem:[#allocation13 + $0x198] sm:$0xff] }
 0x5bb   :  { %2529 = vmatpush3.msra.mxu1 %v1500_v12  ;;  %2127 = vmatpush1.msra.mxu0 %v1984_v13  ;;  %v2042_v12 = vld [vmem:[#allocation13 + $0x290] sm:$0xff] }
 0x5bc   :  { %2530 = vmatprep.subr.mxu1 %v2761_v63  ;;  %2128 = vmatprep.subr.mxu0 %v1983_v14  ;;  %v2010_v13 = vld [vmem:[#allocation13 + $0x190] sm:$0xff]  ;;  %v2041_v14 = vld [vmem:[#allocation13 + $0x288] sm:$0xff] }
 0x5bd   :  { %2531 = vmatpush3.msra.mxu1 %v1495_v15  ;;  %2129 = vmatpush1.msra.mxu0 %v1982_v57  ;;  %v2009_v15 = vld [vmem:[#allocation13 + $0x188] sm:$0xff]  ;;  %v2040_v57 = vld [vmem:[#allocation13 + $0x280] sm:$0xff] }
 0x5be   :  { %2532 = vmatprep.subr.mxu1 %v2761_v63  ;;  %2130 = vmatprep.subr.mxu0 %v1981_v16  ;;  %v2008_v16 = vld [vmem:[#allocation13 + $0x180] sm:$0xff] }
 0x5bf   :  { %2533 = vmatpush3.msra.mxu1 %v1490_v17  ;;  %2131 = vmatpush1.msra.mxu0 %v1980_v18  ;;  %v2039_v17 = vld [vmem:[#allocation13 + $0x278] sm:$0xff] }
 0x5c0   :  { %2534 = vmatprep.subr.mxu1 %v2761_v63  ;;  %2132 = vmatprep.subr.mxu0 %v1979_v19  ;;  %v2007_v18 = vld [vmem:[#allocation13 + $0x178] sm:$0xff]  ;;  %v2038_v19 = vld [vmem:[#allocation13 + $0x270] sm:$0xff] }
 0x5c1   :  { %2535 = vmatpush3.msra.mxu1 %v1485_v20  ;;  %2133 = vmatpush1.msra.mxu0 %v1978_v21  ;;  %v2006_v20 = vld [vmem:[#allocation13 + $0x170] sm:$0xff]  ;;  %v2037_v21 = vld [vmem:[#allocation13 + $0x268] sm:$0xff] }
 0x5c2   :  { %2536 = vmatprep.subr.mxu1 %v2761_v63  ;;  %2134 = vmatprep.subr.mxu0 %v1977_v23  ;;  %v2005_v23 = vld [vmem:[#allocation13 + $0x168] sm:$0xff] }
 0x5c3   :  { %2537 = vmatpush3.msra.mxu1 %v1480_v25  ;;  %2135 = vmatpush1.msra.mxu0 %v1976_v22  ;;  %v2036_v25 = vld [vmem:[#allocation13 + $0x260] sm:$0xff] }
 0x5c4   :  { %2538 = vmatprep.subr.mxu1 %v2761_v63  ;;  %2136 = vmatprep.subr.mxu0 %v1975_v24  ;;  %v2004_v22 = vld [vmem:[#allocation13 + $0x160] sm:$0xff]  ;;  %v2035_v24 = vld [vmem:[#allocation13 + $0x258] sm:$0xff] }
 0x5c5   :  { %2539 = vmatpush3.msra.mxu1 %v1475_v26  ;;  %2137 = vmatpush1.msra.mxu0 %v1974_v27  ;;  %v2003_v26 = vld [vmem:[#allocation13 + $0x158] sm:$0xff]  ;;  %v2034_v27 = vld [vmem:[#allocation13 + $0x250] sm:$0xff] }
 0x5c6   :  { %2540 = vmatprep.subr.mxu1 %v2761_v63  ;;  %2138 = vmatprep.subr.mxu0 %v1973_v28  ;;  %v2002_v28 = vld [vmem:[#allocation13 + $0x150] sm:$0xff] }
 0x5c7   :  { %2541 = vmatpush3.msra.mxu1 %v1470_v29  ;;  %2139 = vmatpush1.msra.mxu0 %v1972_v30  ;;  %v2033_v29 = vld [vmem:[#allocation13 + $0x248] sm:$0xff] }
 0x5c8   :  { %2542 = vmatprep.subr.mxu1 %v2761_v63  ;;  %2140 = vmatprep.subr.mxu0 %v1971_v31  ;;  %v2001_v30 = vld [vmem:[#allocation13 + $0x148] sm:$0xff]  ;;  %v2032_v31 = vld [vmem:[#allocation13 + $0x240] sm:$0xff] }
 0x5c9   :  { %2543 = vmatpush3.msra.mxu1 %v1465_v32  ;;  %2141 = vmatpush1.msra.mxu0 %v1970_v33  ;;  %v2000_v32 = vld [vmem:[#allocation13 + $0x140] sm:$0xff]  ;;  %v2031_v33 = vld [vmem:[#allocation13 + $0x238] sm:$0xff] }
 0x5ca   :  { %2544 = vmatprep.subr.mxu1 %v2761_v63  ;;  %2142 = vmatprep.subr.mxu0 %v1969_v34  ;;  %v1999_v34 = vld [vmem:[#allocation13 + $0x138] sm:$0xff] }
 0x5cb   :  { %2545 = vmatpush3.msra.mxu1 %v1460_v35  ;;  %2143 = vmatpush1.msra.mxu0 %v1968_v36  ;;  %v2030_v35 = vld [vmem:[#allocation13 + $0x230] sm:$0xff] }
 0x5cc   :  { %2546 = vmatprep.subr.mxu1 %v2761_v63  ;;  %2144 = vmatprep.subr.mxu0 %v1967_v37  ;;  %v1998_v36 = vld [vmem:[#allocation13 + $0x130] sm:$0xff]  ;;  %v2029_v37 = vld [vmem:[#allocation13 + $0x228] sm:$0xff] }
 0x5cd   :  { %2547 = vmatpush3.msra.mxu1 %v1455_v38  ;;  %2145 = vmatpush1.msra.mxu0 %v1966_v39  ;;  %v1997_v38 = vld [vmem:[#allocation13 + $0x128] sm:$0xff]  ;;  %v2028_v39 = vld [vmem:[#allocation13 + $0x220] sm:$0xff] }
 0x5ce   :  { %2548 = vmatprep.subr.mxu1 %v2761_v63  ;;  %2146 = vmatprep.subr.mxu0 %v1965_v40  ;;  %v1996_v40 = vld [vmem:[#allocation13 + $0x120] sm:$0xff] }
 0x5cf   :  { %2549 = vmatpush3.msra.mxu1 %v1450_v41  ;;  %2147 = vmatpush1.msra.mxu0 %v1964_v42  ;;  %v2027_v41 = vld [vmem:[#allocation13 + $0x218] sm:$0xff] }
 0x5d0   :  { %2550 = vmatprep.subr.mxu1 %v2761_v63  ;;  %2148 = vmatprep.subr.mxu0 %v1963_v43  ;;  %v1995_v42 = vld [vmem:[#allocation13 + $0x118] sm:$0xff]  ;;  %v2026_v43 = vld [vmem:[#allocation13 + $0x210] sm:$0xff] }
 0x5d1   :  { %2551 = vmatpush3.msra.mxu1 %v1445_v44  ;;  %2149 = vmatpush1.msra.mxu0 %v1962_v45  ;;  %v1994_v44 = vld [vmem:[#allocation13 + $0x110] sm:$0xff]  ;;  %v2025_v45 = vld [vmem:[#allocation13 + $0x208] sm:$0xff] }
 0x5d2   :  { %2553 = vmatmul.mubr.f32.vlgmr.msra.gmra.mxu1 %v2953_v62  ;;  %2150 = vmatprep.subr.mxu0 %v1961_v46  ;;  %v2017_v62 = vld [vmem:[#allocation13 + $0x1c8] sm:$0xff] }
 0x5d3   :  { %2151 = vmatpush1.msra.mxu0 %v1960_v47  ;;  %2191 = vmatprep.subr.mxu1 %v2055_v48  ;;  %v1993_v46 = vld [vmem:[#allocation13 + $0x108] sm:$0xff]  ;;  %v2024_v47 = vld [vmem:[#allocation13 + $0x200] sm:$0xff] }
 0x5d4   :  { %2152 = vmatprep.subr.mxu0 %v2023_v49  ;;  %2192 = vmatpush1.msra.mxu1 %v2054_v50  ;;  %v1992_v48 = vld [vmem:[#allocation13 + $0x100] sm:$0xff]  ;;  %v2087_v49 = vld [vmem:[#allocation13 + $0x3f8] sm:$0xff]  ;;  %v2086_v50 = vld [vmem:[#allocation13 + $0x3f0] sm:$0xff] }
 0x5d5   :  { %2153 = vmatpush2.msra.mxu0 %v2022_v51  ;;  %2193 = vmatprep.subr.mxu1 %v2053_v52  ;;  %v2085_v51 = vld [vmem:[#allocation13 + $0x3e8] sm:$0xff]  ;;  %v2084_v52 = vld [vmem:[#allocation13 + $0x3e0] sm:$0xff] }
 0x5d6   :  { %2154 = vmatprep.subr.mxu0 %v2021_v53  ;;  %2194 = vmatpush1.msra.mxu1 %v2052_v54  ;;  %v2083_v53 = vld [vmem:[#allocation13 + $0x3d8] sm:$0xff]  ;;  %v2082_v54 = vld [vmem:[#allocation13 + $0x3d0] sm:$0xff] }
 0x5d7   :  { %2155 = vmatpush2.msra.mxu0 %v2020_v55  ;;  %2195 = vmatprep.subr.mxu1 %v2051_v56  ;;  %v2081_v55 = vld [vmem:[#allocation13 + $0x3c8] sm:$0xff]  ;;  %v2080_v56 = vld [vmem:[#allocation13 + $0x3c0] sm:$0xff] }
 0x5d8   :  { %2156 = vmatprep.subr.mxu0 %v2019_v58  ;;  %2196 = vmatpush1.msra.mxu1 %v2050_v60  ;;  %v2119_v58 = vld [vmem:[#allocation13 + $0x4f8] sm:$0xff] }
 0x5d9   :  { %2157 = vmatpush2.msra.mxu0 %v2018_v61  ;;  %2197 = vmatprep.subr.mxu1 %v2049_v0  ;;  %v2079_v60 = vld [vmem:[#allocation13 + $0x3b8] sm:$0xff]  ;;  %v2078_v61 = vld [vmem:[#allocation13 + $0x3b0] sm:$0xff]  ;;  %v2077_v0 = vld [vmem:[#allocation13 + $0x3a8] sm:$0xff] }
 0x5da   :  { %2158 = vmatprep.subr.mxu0 %v2017_v62  ;;  %2198 = vmatpush1.msra.mxu1 %v2048_v1  ;;  %v2076_v62 = vld [vmem:[#allocation13 + $0x3a0] sm:$0xff]  ;;  %v2075_v1 = vld [vmem:[#allocation13 + $0x398] sm:$0xff] }
 0x5db   :  { %2159 = vmatpush2.msra.mxu0 %v2016_v2  ;;  %2199 = vmatprep.subr.mxu1 %v2047_v3  ;;  %v2074_v2 = vld [vmem:[#allocation13 + $0x390] sm:$0xff]  ;;  %v2073_v3 = vld [vmem:[#allocation13 + $0x388] sm:$0xff] }
 0x5dc   :  { %2160 = vmatprep.subr.mxu0 %v2015_v4  ;;  %2200 = vmatpush1.msra.mxu1 %v2046_v5  ;;  %v2072_v4 = vld [vmem:[#allocation13 + $0x380] sm:$0xff]  ;;  %v2071_v5 = vld [vmem:[#allocation13 + $0x378] sm:$0xff] }
 0x5dd   :  { %2161 = vmatpush2.msra.mxu0 %v2014_v6  ;;  %2201 = vmatprep.subr.mxu1 %v2045_v7  ;;  %v2070_v6 = vld [vmem:[#allocation13 + $0x370] sm:$0xff]  ;;  %v2069_v7 = vld [vmem:[#allocation13 + $0x368] sm:$0xff] }
 0x5de   :  { %2162 = vmatprep.subr.mxu0 %v2013_v8  ;;  %2202 = vmatpush1.msra.mxu1 %v2044_v9  ;;  %v2068_v8 = vld [vmem:[#allocation13 + $0x360] sm:$0xff]  ;;  %v2067_v9 = vld [vmem:[#allocation13 + $0x358] sm:$0xff] }
 0x5df   :  { %2163 = vmatpush2.msra.mxu0 %v2012_v59  ;;  %2203 = vmatprep.subr.mxu1 %v2043_v10  ;;  %v2066_v59 = vld [vmem:[#allocation13 + $0x350] sm:$0xff]  ;;  %v2065_v10 = vld [vmem:[#allocation13 + $0x348] sm:$0xff] }
 0x5e0   :  { %2164 = vmatprep.subr.mxu0 %v2011_v11  ;;  %2204 = vmatpush1.msra.mxu1 %v2042_v12  ;;  %v2064_v11 = vld [vmem:[#allocation13 + $0x340] sm:$0xff]  ;;  %v2063_v12 = vld [vmem:[#allocation13 + $0x338] sm:$0xff] }
 0x5e1   :  { %2165 = vmatpush2.msra.mxu0 %v2010_v13  ;;  %2205 = vmatprep.subr.mxu1 %v2041_v14  ;;  %v2062_v13 = vld [vmem:[#allocation13 + $0x330] sm:$0xff]  ;;  %v2061_v14 = vld [vmem:[#allocation13 + $0x328] sm:$0xff] }
 0x5e2   :  { %2166 = vmatprep.subr.mxu0 %v2009_v15  ;;  %2206 = vmatpush1.msra.mxu1 %v2040_v57  ;;  %v2060_v15 = vld [vmem:[#allocation13 + $0x320] sm:$0xff]  ;;  %v2059_v57 = vld [vmem:[#allocation13 + $0x318] sm:$0xff] }
 0x5e3   :  { %2167 = vmatpush2.msra.mxu0 %v2008_v16  ;;  %2207 = vmatprep.subr.mxu1 %v2039_v17  ;;  %v2058_v16 = vld [vmem:[#allocation13 + $0x310] sm:$0xff]  ;;  %v2057_v17 = vld [vmem:[#allocation13 + $0x308] sm:$0xff] }
 0x5e4   :  { %2168 = vmatprep.subr.mxu0 %v2007_v18  ;;  %2208 = vmatpush1.msra.mxu1 %v2038_v19  ;;  %v2056_v18 = vld [vmem:[#allocation13 + $0x300] sm:$0xff] }
 0x5e5   :  { %2169 = vmatpush2.msra.mxu0 %v2006_v20  ;;  %2209 = vmatprep.subr.mxu1 %v2037_v21 }
 0x5e6   :  { %2170 = vmatprep.subr.mxu0 %v2005_v23  ;;  %2210 = vmatpush1.msra.mxu1 %v2036_v25 }
 0x5e7   :  { %2171 = vmatpush2.msra.mxu0 %v2004_v22  ;;  %2211 = vmatprep.subr.mxu1 %v2035_v24 }
 0x5e8   :  { %2172 = vmatprep.subr.mxu0 %v2003_v26  ;;  %2212 = vmatpush1.msra.mxu1 %v2034_v27 }
 0x5e9   :  { %2173 = vmatpush2.msra.mxu0 %v2002_v28  ;;  %2213 = vmatprep.subr.mxu1 %v2033_v29  ;;  %v2118_v28 = vld [vmem:[#allocation13 + $0x4f0] sm:$0xff] }
 0x5ea   :  { %2174 = vmatprep.subr.mxu0 %v2001_v30  ;;  %2214 = vmatpush1.msra.mxu1 %v2032_v31  ;;  %v2117_v30 = vld [vmem:[#allocation13 + $0x4e8] sm:$0xff]  ;;  %v2116_v31 = vld [vmem:[#allocation13 + $0x4e0] sm:$0xff] }
 0x5eb   :  { %2175 = vmatpush2.msra.mxu0 %v2000_v32  ;;  %2215 = vmatprep.subr.mxu1 %v2031_v33  ;;  %v2115_v32 = vld [vmem:[#allocation13 + $0x4d8] sm:$0xff]  ;;  %v2114_v33 = vld [vmem:[#allocation13 + $0x4d0] sm:$0xff] }
 0x5ec   :  { %2176 = vmatprep.subr.mxu0 %v1999_v34  ;;  %2216 = vmatpush1.msra.mxu1 %v2030_v35  ;;  %v2113_v34 = vld [vmem:[#allocation13 + $0x4c8] sm:$0xff]  ;;  %v2112_v35 = vld [vmem:[#allocation13 + $0x4c0] sm:$0xff] }
 0x5ed   :  { %2177 = vmatpush2.msra.mxu0 %v1998_v36  ;;  %2217 = vmatprep.subr.mxu1 %v2029_v37  ;;  %v2111_v36 = vld [vmem:[#allocation13 + $0x4b8] sm:$0xff]  ;;  %v2110_v37 = vld [vmem:[#allocation13 + $0x4b0] sm:$0xff] }
 0x5ee   :  { %2178 = vmatprep.subr.mxu0 %v1997_v38  ;;  %2218 = vmatpush1.msra.mxu1 %v2028_v39  ;;  %v2109_v38 = vld [vmem:[#allocation13 + $0x4a8] sm:$0xff]  ;;  %v2108_v39 = vld [vmem:[#allocation13 + $0x4a0] sm:$0xff] }
 0x5ef   :  { %2179 = vmatpush2.msra.mxu0 %v1996_v40  ;;  %2219 = vmatprep.subr.mxu1 %v2027_v41  ;;  %v2107_v40 = vld [vmem:[#allocation13 + $0x498] sm:$0xff]  ;;  %v2106_v41 = vld [vmem:[#allocation13 + $0x490] sm:$0xff] }
 0x5f0   :  { %2180 = vmatprep.subr.mxu0 %v1995_v42  ;;  %2220 = vmatpush1.msra.mxu1 %v2026_v43  ;;  %v2104_v42 = vld [vmem:[#allocation13 + $0x480] sm:$0xff]  ;;  %v2103_v43 = vld [vmem:[#allocation13 + $0x478] sm:$0xff] }
 0x5f1   :  { %2181 = vmatpush2.msra.mxu0 %v1994_v44  ;;  %2221 = vmatprep.subr.mxu1 %v2025_v45  ;;  %v2102_v44 = vld [vmem:[#allocation13 + $0x470] sm:$0xff]  ;;  %v2101_v45 = vld [vmem:[#allocation13 + $0x468] sm:$0xff] }
 0x5f2   :  { %2182 = vmatprep.subr.mxu0 %v1993_v46  ;;  %2222 = vmatpush1.msra.mxu1 %v2024_v47  ;;  %v2100_v46 = vld [vmem:[#allocation13 + $0x460] sm:$0xff]  ;;  %v2099_v47 = vld [vmem:[#allocation13 + $0x458] sm:$0xff] }
 0x5f3   :  { %2183 = vmatpush2.msra.mxu0 %v1992_v48  ;;  %2223 = vmatprep.subr.mxu1 %v2087_v49  ;;  %v2098_v48 = vld [vmem:[#allocation13 + $0x450] sm:$0xff]  ;;  %v2097_v49 = vld [vmem:[#allocation13 + $0x448] sm:$0xff] }
 0x5f4   :  { %2224 = vmatpush2.msra.mxu1 %v2086_v50  ;;  %2262 = vmatprep.subr.mxu0 %v2119_v58  ;;  %v2096_v50 = vld [vmem:[#allocation13 + $0x440] sm:$0xff]  ;;  %v2089_v58 = vld [vmem:[#allocation13 + $0x408] sm:$0xff] }
 0x5f5   :  { %2225 = vmatprep.subr.mxu1 %v2085_v51  ;;  %v2095_v51 = vld [vmem:[#allocation13 + $0x438] sm:$0xff] }
 0x5f6   :  { %2226 = vmatpush2.msra.mxu1 %v2084_v52  ;;  %v2094_v52 = vld [vmem:[#allocation13 + $0x430] sm:$0xff] }
 0x5f7   :  { %2227 = vmatprep.subr.mxu1 %v2083_v53  ;;  %v2093_v53 = vld [vmem:[#allocation13 + $0x428] sm:$0xff] }
 0x5f8   :  { %2228 = vmatpush2.msra.mxu1 %v2082_v54  ;;  %v2092_v54 = vld [vmem:[#allocation13 + $0x420] sm:$0xff] }
 0x5f9   :  { %2229 = vmatprep.subr.mxu1 %v2081_v55  ;;  %v2091_v55 = vld [vmem:[#allocation13 + $0x418] sm:$0xff] }
 0x5fa   :  { %2230 = vmatpush2.msra.mxu1 %v2080_v56  ;;  %v2090_v56 = vld [vmem:[#allocation13 + $0x410] sm:$0xff] }
 0x5fb   :  { %2231 = vmatprep.subr.mxu1 %v2079_v60  ;;  %v2088_v60 = vld [vmem:[#allocation13 + $0x400] sm:$0xff] }
 0x5fc   :  { %2232 = vmatpush2.msra.mxu1 %v2078_v61 }
 0x5fd   :  { %2233 = vmatprep.subr.mxu1 %v2077_v0 }
 0x5fe   :  { %2234 = vmatpush2.msra.mxu1 %v2076_v62 }
 0x5ff   :  { %2235 = vmatprep.subr.mxu1 %v2075_v1 }
 0x600   :  { %2236 = vmatpush2.msra.mxu1 %v2074_v2 }
 0x601   :  { %2237 = vmatprep.subr.mxu1 %v2073_v3 }
 0x602   :  { %2238 = vmatpush2.msra.mxu1 %v2072_v4 }
 0x603   :  { %2239 = vmatprep.subr.mxu1 %v2071_v5 }
 0x604   :  { %2240 = vmatpush2.msra.mxu1 %v2070_v6 }
 0x605   :  { %2241 = vmatprep.subr.mxu1 %v2069_v7 }
 0x606   :  { %2242 = vmatpush2.msra.mxu1 %v2068_v8 }
 0x607   :  { %2243 = vmatprep.subr.mxu1 %v2067_v9 }
 0x608   :  { %2244 = vmatpush2.msra.mxu1 %v2066_v59 }
 0x609   :  { %2245 = vmatprep.subr.mxu1 %v2065_v10 }
 0x60a   :  { %2246 = vmatpush2.msra.mxu1 %v2064_v11 }
 0x60b   :  { %2247 = vmatprep.subr.mxu1 %v2063_v12 }
 0x60c   :  { %2248 = vmatpush2.msra.mxu1 %v2062_v13 }
 0x60d   :  { %2249 = vmatprep.subr.mxu1 %v2061_v14 }
 0x60e   :  { %2250 = vmatpush2.msra.mxu1 %v2060_v15 }
 0x60f   :  { %2251 = vmatprep.subr.mxu1 %v2059_v57 }
 0x610   :  { %2252 = vmatpush2.msra.mxu1 %v2058_v16 }
 0x611   :  { %2253 = vmatprep.subr.mxu1 %v2057_v17 }
 0x612   :  { %2254 = vmatpush2.msra.mxu1 %v2056_v18 }
 0x62f   :  { %v1587_v19 = vpop.f32.mrf.mxu0 }
 0x630   :  { %v1658_v20 = vpop.f32.mrf.mxu1 }
 0x631   :  { %v1659_v21 = vadd.f32 %v1658_v20, %v1587_v19  ;;  %v1589_v23 = vpop.f32.mrf.mxu0 }
 0x632   :  { %v1660_v25 = vpop.f32.mrf.mxu1 }
 0x633   :  { %v1661_v22 = vadd.f32 %v1660_v25, %v1589_v23  ;;  %v1950_v24 = vmul.f32 0.2, %v1659_v21  ;;  %vm1945_vm10 = vcmp.ge.f32.partialorder %v1659_v21, 0.0 }
 0x635   :  { %v1951_v26 = vmul.f32 0.2, %v1661_v22  ;;  %vm1946_vm11 = vcmp.ge.f32.partialorder %v1661_v22, 0.0  ;;  %v1955_v29 = vsel %vm1945_vm10, %v1659_v21, %v1950_v24 }
 0x637   :  { %v1956_v27 = vsel %vm1946_vm11, %v1661_v22, %v1951_v26 }
 0x638   :  { %2184 = vmatprep.mubr.f32.mxu0 %v1956_v27 }
 0x639   :  { %2185 = vmatmul.mubr.f32.vlgmr.msra.gmra.mxu0 %v1955_v29 }
 0x63a   :  { %2263 = vmatpush1.msra.mxu0 %v2118_v28  ;;  %2326 = vmatprep.mubr.f32.mxu0 %v2761_v63  ;;  %v2105_v63 = vld [vmem:[#allocation13 + $0x488] sm:$0xff] }
 0x63b   :  { %2264 = vmatprep.subr.mxu0 %v2117_v30 }
 0x63c   :  { %2265 = vmatpush1.msra.mxu0 %v2116_v31 }
 0x63d   :  { %2266 = vmatprep.subr.mxu0 %v2115_v32 }
 0x63e   :  { %2267 = vmatpush1.msra.mxu0 %v2114_v33 }
 0x63f   :  { %2268 = vmatprep.subr.mxu0 %v2113_v34 }
 0x640   :  { %2269 = vmatpush1.msra.mxu0 %v2112_v35 }
 0x641   :  { %2270 = vmatprep.subr.mxu0 %v2111_v36 }
 0x642   :  { %2271 = vmatpush1.msra.mxu0 %v2110_v37 }
 0x643   :  { %2272 = vmatprep.subr.mxu0 %v2109_v38 }
 0x644   :  { %2273 = vmatpush1.msra.mxu0 %v2108_v39 }
 0x645   :  { %2274 = vmatprep.subr.mxu0 %v2107_v40 }
 0x646   :  { %2275 = vmatpush1.msra.mxu0 %v2106_v41 }
 0x647   :  { %2276 = vmatprep.subr.mxu0 %v2105_v63 }
 0x648   :  { %2277 = vmatpush1.msra.mxu0 %v2104_v42 }
 0x649   :  { %2278 = vmatprep.subr.mxu0 %v2103_v43 }
 0x64a   :  { %2279 = vmatpush1.msra.mxu0 %v2102_v44 }
 0x64b   :  { %2280 = vmatprep.subr.mxu0 %v2101_v45 }
 0x64c   :  { %2281 = vmatpush1.msra.mxu0 %v2100_v46 }
 0x64d   :  { %2282 = vmatprep.subr.mxu0 %v2099_v47 }
 0x64e   :  { %2283 = vmatpush1.msra.mxu0 %v2098_v48 }
 0x64f   :  { %2284 = vmatprep.subr.mxu0 %v2097_v49 }
 0x650   :  { %2285 = vmatpush1.msra.mxu0 %v2096_v50  ;;  %v1800_v61 = vpop.f32.mrf.mxu0 }
 0x651   :  { %2286 = vmatprep.subr.mxu0 %v2095_v51 }
 0x652   :  { %2287 = vmatpush1.msra.mxu0 %v2094_v52  ;;  %v1802_v1 = vpop.f32.mrf.mxu0 }
 0x653   :  { %2288 = vmatprep.subr.mxu0 %v2093_v53 }
 0x654   :  { %2289 = vmatpush1.msra.mxu0 %v2092_v54 }
 0x655   :  { %2290 = vmatprep.subr.mxu0 %v2091_v55 }
 0x656   :  { %2291 = vmatpush1.msra.mxu0 %v2090_v56 }
 0x657   :  { %2292 = vmatprep.subr.mxu0 %v2089_v58 }
 0x658   :  { %2293 = vmatpush1.msra.mxu0 %v2088_v60 }
 0x671   :  { %v2500_v8 = vpop.f32.mrf.mxu0 }
 0x672   :  { %v1729_v0 = vpop.f32.mrf.mxu1 }
 0x673   :  { %v1801_v62 = vadd.f32 %v1800_v61, %v1729_v0  ;;  %v2501_v9 = vpop.f32.mrf.mxu0 }
 0x674   :  { %v1731_v2 = vpop.f32.mrf.mxu1  ;;  %v2502_v59 = vadd.f32 %v2501_v9, %v2500_v8 }
 0x675   :  { %v1803_v3 = vadd.f32 %v1802_v1, %v1731_v2  ;;  %v1952_v4 = vmul.f32 0.2, %v1801_v62  ;;  %vm1947_vm12 = vcmp.ge.f32.partialorder %v1801_v62, 0.0 }
 0x677   :  { %v1953_v5 = vmul.f32 0.2, %v1803_v3  ;;  %vm1948_vm13 = vcmp.ge.f32.partialorder %v1803_v3, 0.0  ;;  %v1957_v7 = vsel %vm1947_vm12, %v1801_v62, %v1952_v4 }
 0x679   :  { %v1958_v6 = vsel %vm1948_vm13, %v1803_v3, %v1953_v5 }
 0x67a   :  { %2255 = vmatprep.mubr.f32.mxu1 %v1958_v6 }
 0x67b   :  { %2256 = vmatmul.mubr.f32.vlgmr.msra.gmra.mxu1 %v1957_v7 }
 0x692   :  { %v1941_v10 = vpop.f32.mrf.mxu1 }
 0x693   :  { %v1942_v11 = vadd.f32 %v2502_v59, %v1941_v10 }
 0x694   :  { %v2554_v12 = vpop.f32.mrf.mxu1 }
 0x695   :  { %vm1949_vm14 = vcmp.ge.f32.partialorder %v1942_v11, 0.0  ;;  %v1954_v13 = vmul.f32 0.2, %v1942_v11 }
 0x697   :  { %v1959_v14 = vsel %vm1949_vm14, %v1942_v11, %v1954_v13 }
 0x698   :  { %2327 = vmatmul.mubr.f32.vlgmr.msra.gmra.mxu0 %v1959_v14 }
 0x6f9   :  { %v2186_v15 = vpop.f32.mrf.mxu0 }
 0x6fb   :  { %v2188_v16 = vpop.f32.mrf.mxu0 }
 0x73b   :  { %v2257_v57 = vpop.f32.mrf.mxu1 }
 0x73c   :  { %v2258_v18 = vadd.f32 %v2257_v57, %v2186_v15 }
 0x73d   :  { %v2259_v17 = vpop.f32.mrf.mxu1 }
 0x73e   :  { %v2260_v20 = vadd.f32 %v2259_v17, %v2188_v16 }
 0x758   :  { %v2328_v19 = vpop.f32.mrf.mxu0 }
 0x759   :  { %v2329_v21 = vadd.f32 %v2328_v19, %v2258_v18 }
 0x75a   :  { %v2330_v23 = vpop.f32.mrf.mxu0 }
 0x75b   :  { %vm2333_vm15 = vcmp.ge.f32.partialorder %v2329_v21, 0.0  ;;  %v2335_v25 = vmul.f32 0.2, %v2329_v21  ;;  %v2331_v22 = vadd.f32 %v2330_v23, %v2260_v20 }
 0x75d   :  { %v2337_v24 = vsel %vm2333_vm15, %v2329_v21, %v2335_v25  ;;  %vm2334_vm0 = vcmp.ge.f32.partialorder %v2331_v22, 0.0  ;;  %v2336_v26 = vmul.f32 0.2, %v2331_v22 }
 0x75e   :  { %2339 = vst [vmem:[%s3005_s18] sm:$0xff] %v2337_v24 }
 0x75f   :  { %v2338_v27 = vsel %vm2334_vm0, %v2331_v22, %v2336_v26 }
 0x760   :  { %2340 = vst [vmem:[%s3005_s18 + $0x8] sm:$0xff] %v2338_v27 }
 0x761   :  { %2357 = vsyncpa [#allocation3], 1 }
 0x762   :  { %2358 = vsyncpa [#allocation5], 1 }
 0x763   :  { %2359 = vsyncpa [#allocation8], 1 }
 0x764   :  { %2360 = vsyncpa [#allocation11], 1 }
 0x765   :  { %2361 = vsyncpa [#allocation14], 1 }

</bundles_post_ra>
